<compile_context>
chip_gen: v5e
topology: v5e:2x2
jax: 0.10.0
libtpu: 0.0.40
codegen_flags: <defaults>
</compile_context>

<pallas_src>
import functools

import jax
import jax.numpy as jnp
import numpy as np
from jax import lax
from jax.experimental import pallas as pl
from jax.experimental.pallas import tpu as pltpu


def _round_up(x, m):
    return ((x + m - 1) // m) * m


def _kw_groups(fold, b):
    """Static (kw0, width) runs of the three kw taps sharing one folded wq block.

    Adjacent taps whose folded column index (wr) stays inside a single wq block
    are fused into one K = width*cin matmul.  fold=4, b=0 fuses all three taps
    (K = 3*cin); fold=4, b=1 and fold=2 fall back to (2, 1).
    """
    groups, kw = [], 0
    while kw < 3:
        wr = (2 * b + kw) % fold
        width = min(3 - kw, fold - wr)
        groups.append((kw, width))
        kw += width
    return groups


def _accum_conv3x3_s2(x_ref, w_ref, acc_ref, *, out_h, out_w, cin, fold, a, b):
    """Accumulate all taps of a 3x3 / stride-2 / pad-1 conv into acc_ref.

    x_ref : (nb, Hf, fold, Wf, fold*cin) zero-padded, parity-folded view where
            [n, hq, hr, wq, wr*cin + c] == x_pad[n, fold*hq+hr, fold*wq+wr, c].
    w_ref : (3, 3*cin, cout) weights laid out as [kh, kw*cin + ci, co].
    acc_ref: (nb*out_h*out_w, cout) f32 VMEM accumulator (overwritten here).
    Outputs covered: oh = (fold//2)*i + a, ow = (fold//2)*j + b
    (fold=2: dense output; fold=4: output-parity group (a, b)).
    """
    nb = x_ref.shape[0]
    m = nb * out_h * out_w
    first = True
    for kh in range(3):
        rh = 2 * a + kh
        hq, hr = rh // fold, rh % fold
        for kw0, width in _kw_groups(fold, b):
            rw = 2 * b + kw0
            wq, wr = rw // fold, rw % fold
            patch = x_ref[:, hq:hq + out_h, hr, wq:wq + out_w,
                          wr * cin:(wr + width) * cin]
            wmat = w_ref[kh, kw0 * cin:(kw0 + width) * cin, :]
            contrib = jnp.dot(patch.reshape(m, width * cin), wmat,
                              preferred_element_type=jnp.float32)
            if first:
                acc_ref[...] = contrib
                first = False
            else:
                acc_ref[...] += contrib


def _p6p7_kernel(xv_ref, w6_ref, b6_ref, w7_ref, b7_ref,
                 p6_ref, p7_ref, p6pad_ref, acc_ref, *, ho, wo, cin, cout):
    nb = xv_ref.shape[0]
    hoq, woq = ho // 2, wo // 2

    # Only two thin border strips of the relu(p6) scratch are read by conv2 but
    # never written by conv1 (the top padded row and the left padded column).
    # Zero just those, every step (megacore-safe); the interior is fully
    # overwritten by the conv1 parity stores below.
    p6pad_ref[:, 0, 0, :, :] = jnp.zeros((nb, woq + 1, 2 * cout), p6pad_ref.dtype)
    p6pad_ref[:, :, :, 0, 0:cout] = jnp.zeros((nb, hoq + 1, 2, cout),
                                              p6pad_ref.dtype)

    # ---- conv1 (p6): 4 output-parity groups, contiguous reads from mod-4 view
    for a in (0, 1):
        for b in (0, 1):
            _accum_conv3x3_s2(xv_ref, w6_ref, acc_ref,
                              out_h=hoq, out_w=woq, cin=cin, fold=4, a=a, b=b)
            blk = (acc_ref[...] + b6_ref[...]).reshape(nb, hoq, woq, cout)
            # pre-relu p6 -> output (parity layout; a free reshape outside
            # restores NHWC exactly).
            p6_ref[:, :, a, :, b * cout:(b + 1) * cout] = blk.astype(p6_ref.dtype)
            # relu(p6) -> zero-padded mod-2 parity scratch feeding conv2:
            # p6[2i+a, 2j+b] lands at padded coords (2i+a+1, 2j+b+1), i.e.
            # (hq=i+a, hr=1-a, wq=j+b, wr=1-b).
            p6pad_ref[:, a:a + hoq, 1 - a, b:b + woq,
                      (1 - b) * cout:(2 - b) * cout] = (
                          jnp.maximum(blk, 0.0).astype(p6pad_ref.dtype))

    # ---- conv2 (p7): dense output, contiguous reads from the parity scratch
    _accum_conv3x3_s2(p6pad_ref, w7_ref, acc_ref,
                      out_h=hoq, out_w=woq, cin=cout, fold=2, a=0, b=0)
    p7 = (acc_ref[...] + b7_ref[...]).reshape(nb, hoq, woq, cout)
    p7_ref[...] = p7.astype(p7_ref.dtype)


def last_level_p6p7(x_nhwc, w6k, b6, w7k, b7, *, block_n=None,
                    compute_dtype=None, vmem_budget_bytes=44 * 2**20):
    """Fused P6/P7 forward. x in NHWC; returns (p6, p7) in NHWC.

    w6k: (3, 3*Cin_k, Cout) packed conv1 weights; w7k: (3, 3*Cout, Cout).
    If x has fewer channels than Cin_k it is zero-padded (lane alignment); the
    extra channels multiply zero weights so the result is unchanged.
    """
    N, H, W, Cin = x_nhwc.shape
    Cin_k = w6k.shape[1] // 3
    Cout = w6k.shape[-1]
    assert H % 4 == 0 and W % 4 == 0, "fused P6/P7 kernel assumes H, W % 4 == 0"
    # TODO(synk): odd / non-multiple-of-4 spatial sizes (handled by PyTorch's
    # Conv2d stride-2/pad-1) would need edge masking in the kernel.
    assert Cin <= Cin_k
    if Cin < Cin_k:
        x_nhwc = jnp.pad(x_nhwc, ((0, 0), (0, 0), (0, 0), (0, Cin_k - Cin)))
        Cin = Cin_k

    out_dtype = x_nhwc.dtype
    Ho, Wo = H // 2, W // 2
    hoq, woq = Ho // 2, Wo // 2
    H4, W4 = (H + 4) // 4, (W + 4) // 4

    if compute_dtype is not None:
        x_nhwc = x_nhwc.astype(compute_dtype)
        w6k = w6k.astype(compute_dtype)
        w7k = w7k.astype(compute_dtype)
    cdt = x_nhwc.dtype

    # ---- VMEM-aware block_n: block several images per step so the matmul M
    # dimension is MXU-sized, but stay inside the VMEM budget and keep >= 2
    # grid steps so the input DMA pipelines / megacore can shard the grid.
    in_item = jnp.dtype(cdt).itemsize
    out_item = jnp.dtype(out_dtype).itemsize
    per_image = (H4 * 4 * W4 * 4 * Cin * in_item * 2            # input block (x2 buffered)
                 + hoq * 2 * woq * 2 * Cout * out_item * 2      # p6 block (x2 buffered)
                 + hoq * woq * Cout * out_item * 2              # p7 block (x2 buffered)
                 + (hoq + 1) * 2 * (woq + 1) * 2 * Cout * in_item  # relu(p6) scratch
                 + hoq * woq * Cout * 4)                        # f32 accumulator
    fixed = (3 * 3 * Cin * Cout + 3 * 3 * Cout * Cout) * in_item + 2 * Cout * 4
    if block_n is None:
        target = max(1, -(-512 // (hoq * woq)))   # aim for M ~ 512 rows
        block_n = 1
        for d in range(1, N + 1):
            if N % d != 0 or d > target:
                continue
            if N >= 2 and N // d < 2:             # keep >= 2 grid steps
                continue
            if fixed + d * per_image > vmem_budget_bytes:
                continue
            block_n = d
    nb = block_n
    assert N % nb == 0
    grid = (N // nb,)
    vmem_limit = int(min(64 * 2**20,
                         max(fixed + nb * per_image + (4 << 20), 32 * 2**20)))
    # TODO(synk): for very large Cin (e.g. C5 with 2048 channels) a Cin-
    # reduction grid axis (marked "arbitrary", last) with per-parity-group
    # accumulators would be needed instead of relying on block_n alone.

    # zero-pad (1 before, 3 after so H+4, W+4 are multiples of 4; the extra
    # rows/cols are never read), then a FREE reshape exposes the mod-4 parity
    # view with the W-parity folded into the lane (channel) dim.
    xp = jnp.pad(x_nhwc, ((0, 0), (1, 3), (1, 3), (0, 0)))
    xv = xp.reshape(N, H4, 4, W4, 4 * Cin)

    b6r = b6.reshape(1, Cout).astype(jnp.float32)
    b7r = b7.reshape(1, Cout).astype(jnp.float32)

    kernel = functools.partial(_p6p7_kernel, ho=Ho, wo=Wo, cin=Cin, cout=Cout)
    p6v, p7 = pl.pallas_call(
        kernel,
        out_shape=(
            jax.ShapeDtypeStruct((N, hoq, 2, woq, 2 * Cout), out_dtype),
            jax.ShapeDtypeStruct((N, hoq, woq, Cout), out_dtype),
        ),
        grid_spec=pltpu.PrefetchScalarGridSpec(
            num_scalar_prefetch=0,
            grid=grid,
            in_specs=[
                pl.BlockSpec((nb, H4, 4, W4, 4 * Cin),
                             lambda n: (n, 0, 0, 0, 0)),
                # Weights / biases are grid-invariant: whole-array VMEM
                # operands (single copy, not pipelined / double-buffered).
                pl.BlockSpec(memory_space=pltpu.MemorySpace.VMEM),   # w6k
                pl.BlockSpec(memory_space=pltpu.MemorySpace.VMEM),   # b6
                pl.BlockSpec(memory_space=pltpu.MemorySpace.VMEM),   # w7k
                pl.BlockSpec(memory_space=pltpu.MemorySpace.VMEM),   # b7
            ],
            out_specs=[
                pl.BlockSpec((nb, hoq, 2, woq, 2 * Cout),
                             lambda n: (n, 0, 0, 0, 0)),
                pl.BlockSpec((nb, hoq, woq, Cout), lambda n: (n, 0, 0, 0)),
            ],
            scratch_shapes=[
                pltpu.VMEM((nb, hoq + 1, 2, woq + 1, 2 * Cout), cdt),  # relu(p6), padded
                pltpu.VMEM((nb * hoq * woq, Cout), jnp.float32),       # f32 accumulator
            ],
        ),
        compiler_params=pltpu.CompilerParams(
            dimension_semantics=("parallel",),
            vmem_limit_bytes=vmem_limit),
    )(xv, w6k, b6r, w7k, b7r)

    # free reshape: parity layout (N, Ho/2, 2, Wo/2, 2*Cout) is exactly NHWC.
    p6 = p6v.reshape(N, Ho, Wo, Cout)
    return p6, p7


def _kaiming_uniform_oihw(key, shape, a=1.0):
    # matches nn.init.kaiming_uniform_(w, a=1) for Conv2d weight (O, I, kH, kW)
    _, in_ch, kh, kw = shape
    fan_in = in_ch * kh * kw
    gain = float(np.sqrt(2.0 / (1.0 + a * a)))
    bound = gain * float(np.sqrt(3.0 / fan_in))
    return jax.random.uniform(key, shape, jnp.float32, minval=-bound, maxval=bound)


class LastLevelP6P7:
    """JAX/Pallas port of the PyTorch LastLevelP6P7 module (NCHW interface)."""

    def __init__(self, in_channels, out_channels, key,
                 compute_dtype=jnp.bfloat16, lane_align=128):
        k1, k2 = jax.random.split(key)
        self.w6 = _kaiming_uniform_oihw(k1, (out_channels, in_channels, 3, 3))
        self.b6 = jnp.zeros((out_channels,), jnp.float32)
        self.w7 = _kaiming_uniform_oihw(k2, (out_channels, out_channels, 3, 3))
        self.b7 = jnp.zeros((out_channels,), jnp.float32)
        self.use_P5 = in_channels == out_channels
        self.compute_dtype = compute_dtype
        self.out_channels = out_channels

        # Lane alignment: pad channels to multiples of 128 with zero weights /
        # bias so every lane slice and store in the kernel is 128-lane dense;
        # the padded channels contribute exactly zero and are cropped after.
        cin_p = _round_up(in_channels, lane_align)
        cout_p = _round_up(out_channels, lane_align)
        w6p = jnp.pad(self.w6, ((0, cout_p - out_channels),
                                (0, cin_p - in_channels), (0, 0), (0, 0)))
        w7p = jnp.pad(self.w7, ((0, cout_p - out_channels),
                                (0, cout_p - out_channels), (0, 0), (0, 0)))
        # hoisted weight repack: OIHW -> HWIO -> (kh, kw*ci, co)
        self.w6k = jnp.transpose(w6p, (2, 3, 1, 0)).reshape(3, 3 * cin_p, cout_p)
        self.w7k = jnp.transpose(w7p, (2, 3, 1, 0)).reshape(3, 3 * cout_p, cout_p)
        self.b6p = jnp.pad(self.b6, (0, cout_p - out_channels))
        self.b7p = jnp.pad(self.b7, (0, cout_p - out_channels))

    def __call__(self, c5, p5):
        x = p5 if self.use_P5 else c5              # NCHW, PyTorch convention
        x_nhwc = jnp.transpose(x, (0, 2, 3, 1))
        p6, p7 = last_level_p6p7(x_nhwc, self.w6k, self.b6p, self.w7k, self.b7p,
                                 compute_dtype=self.compute_dtype)
        co = self.out_channels
        return [jnp.transpose(p6[..., :co], (0, 3, 1, 2)),
                jnp.transpose(p7[..., :co], (0, 3, 1, 2))]


def _conv_ref_nchw(x, w_oihw, b):
    y = lax.conv_general_dilated(
        x, w_oihw, window_strides=(2, 2), padding=((1, 1), (1, 1)),
        dimension_numbers=("NCHW", "OIHW", "NCHW"))
    return y + b[None, :, None, None]


if __name__ == "__main__":
    key = jax.random.PRNGKey(0)
    k_params, k_c5, k_p5 = jax.random.split(key, 3)

    in_channels, out_channels = 4, 8       # in != out -> use_P5 is False (uses c5)
    N, H, W = 2, 16, 16
    c5 = jax.random.normal(k_c5, (N, in_channels, H, W), jnp.float32)
    p5 = jax.random.normal(k_p5, (N, out_channels, H, W), jnp.float32)

    # Reference (same semantics as the PyTorch module).
    mod_f32 = LastLevelP6P7(in_channels, out_channels, k_params, compute_dtype=None)
    ref_p6 = _conv_ref_nchw(c5, mod_f32.w6, mod_f32.b6)
    ref_p7 = _conv_ref_nchw(jnp.maximum(ref_p6, 0.0), mod_f32.w7, mod_f32.b7)

    # --- strict check: f32 compute path ---
    p6, p7 = mod_f32(c5, p5)
    p6, p7 = jax.block_until_ready(p6), jax.block_until_ready(p7)
    assert p6.shape == (N, out_channels, H // 2, W // 2)
    assert p7.shape == (N, out_channels, H // 4, W // 4)
    np.testing.assert_allclose(np.asarray(p6), np.asarray(ref_p6), rtol=1e-4, atol=1e-4)
    np.testing.assert_allclose(np.asarray(p7), np.asarray(ref_p7), rtol=1e-4, atol=1e-4)

    # --- default path: bf16 MXU operands, f32 accumulation / f32 outputs ---
    mod_bf16 = LastLevelP6P7(in_channels, out_channels, k_params)
    p6b, p7b = mod_bf16(c5, p5)
    p6b, p7b = jax.block_until_ready(p6b), jax.block_until_ready(p7b)
    np.testing.assert_allclose(np.asarray(p6b), np.asarray(ref_p6), rtol=5e-2, atol=5e-2)
    np.testing.assert_allclose(np.asarray(p7b), np.asarray(ref_p7), rtol=5e-2, atol=5e-2)

    print("KERNEL_OK")
</pallas_src>

<mosaic_0001>
module attributes {stable_mosaic.version = 11 : i64} {
  func.func @_p6p7_kernel(%arg0: i32, %arg1: memref<1x5x4x5x512xf32, #tpu.memory_space<vmem>>, %arg2: memref<3x384x128xf32, #tpu.memory_space<vmem>>, %arg3: memref<1x128xf32, #tpu.memory_space<vmem>>, %arg4: memref<3x384x128xf32, #tpu.memory_space<vmem>>, %arg5: memref<1x128xf32, #tpu.memory_space<vmem>>, %arg6: memref<1x4x2x4x256xf32, #tpu.memory_space<vmem>>, %arg7: memref<1x4x4x128xf32, #tpu.memory_space<vmem>>, %arg8: memref<1x5x2x5x256xf32, #tpu.memory_space<vmem>>, %arg9: memref<16x128xf32, #tpu.memory_space<vmem>>) attributes {dimension_semantics = [#tpu.dimension_semantics<parallel>], iteration_bounds = array<i64: 2>, scalar_prefetch = 0 : i64, scratch_operands = 2 : i64, tpu.core_type = #tpu.core_type<tc>, window_params = [{transform_indices = @transform_0, window_bounds = array<i64: 1, 5, 4, 5, 512>}, {pipeline_mode = #tpu.pipeline_mode<synchronous>, transform_indices = @transform_1, window_bounds = array<i64: 3, 384, 128>}, {pipeline_mode = #tpu.pipeline_mode<synchronous>, transform_indices = @transform_2, window_bounds = array<i64: 1, 128>}, {pipeline_mode = #tpu.pipeline_mode<synchronous>, transform_indices = @transform_3, window_bounds = array<i64: 3, 384, 128>}, {pipeline_mode = #tpu.pipeline_mode<synchronous>, transform_indices = @transform_4, window_bounds = array<i64: 1, 128>}, {transform_indices = @transform_5, window_bounds = array<i64: 1, 4, 2, 4, 256>}, {transform_indices = @transform_6, window_bounds = array<i64: 1, 4, 4, 128>}]} {
    %cst = arith.constant 0.000000e+00 : f32
    %0 = vector.broadcast %cst : f32 to vector<1x5x256xf32>
    %c0 = arith.constant 0 : index
    %c0_0 = arith.constant 0 : index
    %c0_1 = arith.constant 0 : index
    %c0_2 = arith.constant 0 : index
    %c0_3 = arith.constant 0 : index
    %1 = vector.load %arg8[%c0, %c0_0, %c0_1, %c0_2, %c0_3] : memref<1x5x2x5x256xf32, #tpu.memory_space<vmem>>, vector<1x1x1x5x256xf32>
    %2 = vector.shape_cast %1 : vector<1x1x1x5x256xf32> to vector<1x5x256xf32>
    %3 = vector.shape_cast %0 : vector<1x5x256xf32> to vector<1x1x1x5x256xf32>
    tpu.vector_store %arg8[%c0, %c0_0, %c0_1, %c0_2, %c0_3], %3 {strides = array<i32>} : memref<1x5x2x5x256xf32, #tpu.memory_space<vmem>>, vector<1x1x1x5x256xf32>,
    %cst_4 = arith.constant 0.000000e+00 : f32
    %4 = vector.broadcast %cst_4 : f32 to vector<1x5x2x128xf32>
    %c0_5 = arith.constant 0 : index
    %c0_6 = arith.constant 0 : index
    %c0_7 = arith.constant 0 : index
    %c0_8 = arith.constant 0 : index
    %c0_9 = arith.constant 0 : index
    %5 = vector.load %arg8[%c0_5, %c0_6, %c0_7, %c0_8, %c0_9] : memref<1x5x2x5x256xf32, #tpu.memory_space<vmem>>, vector<1x5x2x1x128xf32>
    %6 = vector.shape_cast %5 : vector<1x5x2x1x128xf32> to vector<1x5x2x128xf32>
    %7 = vector.shape_cast %4 : vector<1x5x2x128xf32> to vector<1x5x2x1x128xf32>
    tpu.vector_store %arg8[%c0_5, %c0_6, %c0_7, %c0_8, %c0_9], %7 {strides = array<i32>} : memref<1x5x2x5x256xf32, #tpu.memory_space<vmem>>, vector<1x5x2x1x128xf32>,
    %c0_10 = arith.constant 0 : index
    %c0_11 = arith.constant 0 : index
    %c0_12 = arith.constant 0 : index
    %c0_13 = arith.constant 0 : index
    %c0_14 = arith.constant 0 : index
    %8 = vector.load %arg1[%c0_10, %c0_11, %c0_12, %c0_13, %c0_14] : memref<1x5x4x5x512xf32, #tpu.memory_space<vmem>>, vector<1x4x1x4x384xf32>
    %9 = vector.shape_cast %8 : vector<1x4x1x4x384xf32> to vector<1x4x4x384xf32>
    %c0_15 = arith.constant 0 : index
    %c0_16 = arith.constant 0 : index
    %c0_17 = arith.constant 0 : index
    %10 = vector.load %arg2[%c0_15, %c0_16, %c0_17] : memref<3x384x128xf32, #tpu.memory_space<vmem>>, vector<1x384x128xf32>
    %11 = vector.shape_cast %10 : vector<1x384x128xf32> to vector<384x128xf32>
    %12 = vector.shape_cast %9 : vector<1x4x4x384xf32> to vector<16x384xf32>
    %cst_18 = arith.constant dense<0.000000e+00> : vector<16x128xf32>
    %13 = tpu.matmul %12, %11, %cst_18 {dimension_numbers = #tpu.dot_dimension_numbers<[1], [0], [0], [1], [0, 0, 1, 1], [], []>} : vector<16x384xf32>, vector<384x128xf32>, vector<16x128xf32> -> vector<16x128xf32>
    %c0_19 = arith.constant 0 : index
    %c0_20 = arith.constant 0 : index
    %14 = vector.load %arg9[%c0_19, %c0_20] : memref<16x128xf32, #tpu.memory_space<vmem>>, vector<16x128xf32>
    tpu.vector_store %arg9[%c0_19, %c0_20], %13 {strides = array<i32>} : memref<16x128xf32, #tpu.memory_space<vmem>>, vector<16x128xf32>,
    %c0_21 = arith.constant 0 : index
    %c0_22 = arith.constant 0 : index
    %c1 = arith.constant 1 : index
    %c0_23 = arith.constant 0 : index
    %c0_24 = arith.constant 0 : index
    %15 = vector.load %arg1[%c0_21, %c0_22, %c1, %c0_23, %c0_24] : memref<1x5x4x5x512xf32, #tpu.memory_space<vmem>>, vector<1x4x1x4x384xf32>
    %16 = vector.shape_cast %15 : vector<1x4x1x4x384xf32> to vector<1x4x4x384xf32>
    %c1_25 = arith.constant 1 : index
    %c0_26 = arith.constant 0 : index
    %c0_27 = arith.constant 0 : index
    %17 = vector.load %arg2[%c1_25, %c0_26, %c0_27] : memref<3x384x128xf32, #tpu.memory_space<vmem>>, vector<1x384x128xf32>
    %18 = vector.shape_cast %17 : vector<1x384x128xf32> to vector<384x128xf32>
    %19 = vector.shape_cast %16 : vector<1x4x4x384xf32> to vector<16x384xf32>
    %cst_28 = arith.constant dense<0.000000e+00> : vector<16x128xf32>
    %20 = tpu.matmul %19, %18, %cst_28 {dimension_numbers = #tpu.dot_dimension_numbers<[1], [0], [0], [1], [0, 0, 1, 1], [], []>} : vector<16x384xf32>, vector<384x128xf32>, vector<16x128xf32> -> vector<16x128xf32>
    %c0_29 = arith.constant 0 : index
    %c0_30 = arith.constant 0 : index
    %21 = vector.load %arg9[%c0_29, %c0_30] : memref<16x128xf32, #tpu.memory_space<vmem>>, vector<16x128xf32>
    %22 = arith.addf %21, %20 : vector<16x128xf32>
    %c0_31 = arith.constant 0 : index
    %c0_32 = arith.constant 0 : index
    %23 = vector.load %arg9[%c0_31, %c0_32] : memref<16x128xf32, #tpu.memory_space<vmem>>, vector<16x128xf32>
    tpu.vector_store %arg9[%c0_31, %c0_32], %22 {strides = array<i32>} : memref<16x128xf32, #tpu.memory_space<vmem>>, vector<16x128xf32>,
    %c0_33 = arith.constant 0 : index
    %c0_34 = arith.constant 0 : index
    %c2 = arith.constant 2 : index
    %c0_35 = arith.constant 0 : index
    %c0_36 = arith.constant 0 : index
    %24 = vector.load %arg1[%c0_33, %c0_34, %c2, %c0_35, %c0_36] : memref<1x5x4x5x512xf32, #tpu.memory_space<vmem>>, vector<1x4x1x4x384xf32>
    %25 = vector.shape_cast %24 : vector<1x4x1x4x384xf32> to vector<1x4x4x384xf32>
    %c2_37 = arith.constant 2 : index
    %c0_38 = arith.constant 0 : index
    %c0_39 = arith.constant 0 : index
    %26 = vector.load %arg2[%c2_37, %c0_38, %c0_39] : memref<3x384x128xf32, #tpu.memory_space<vmem>>, vector<1x384x128xf32>
    %27 = vector.shape_cast %26 : vector<1x384x128xf32> to vector<384x128xf32>
    %28 = vector.shape_cast %25 : vector<1x4x4x384xf32> to vector<16x384xf32>
    %cst_40 = arith.constant dense<0.000000e+00> : vector<16x128xf32>
    %29 = tpu.matmul %28, %27, %cst_40 {dimension_numbers = #tpu.dot_dimension_numbers<[1], [0], [0], [1], [0, 0, 1, 1], [], []>} : vector<16x384xf32>, vector<384x128xf32>, vector<16x128xf32> -> vector<16x128xf32>
    %c0_41 = arith.constant 0 : index
    %c0_42 = arith.constant 0 : index
    %30 = vector.load %arg9[%c0_41, %c0_42] : memref<16x128xf32, #tpu.memory_space<vmem>>, vector<16x128xf32>
    %31 = arith.addf %30, %29 : vector<16x128xf32>
    %c0_43 = arith.constant 0 : index
    %c0_44 = arith.constant 0 : index
    %32 = vector.load %arg9[%c0_43, %c0_44] : memref<16x128xf32, #tpu.memory_space<vmem>>, vector<16x128xf32>
    tpu.vector_store %arg9[%c0_43, %c0_44], %31 {strides = array<i32>} : memref<16x128xf32, #tpu.memory_space<vmem>>, vector<16x128xf32>,
    %c0_45 = arith.constant 0 : index
    %c0_46 = arith.constant 0 : index
    %33 = vector.load %arg9[%c0_45, %c0_46] : memref<16x128xf32, #tpu.memory_space<vmem>>, vector<16x128xf32>
    %c0_47 = arith.constant 0 : index
    %c0_48 = arith.constant 0 : index
    %34 = vector.load %arg3[%c0_47, %c0_48] : memref<1x128xf32, #tpu.memory_space<vmem>>, vector<1x128xf32>
    %35 = vector.broadcast %34 : vector<1x128xf32> to vector<16x128xf32>
    %36 = arith.addf %33, %35 : vector<16x128xf32>
    %37 = vector.shape_cast %36 : vector<16x128xf32> to vector<1x4x4x128xf32>
    %c0_49 = arith.constant 0 : index
    %c0_50 = arith.constant 0 : index
    %c0_51 = arith.constant 0 : index
    %c0_52 = arith.constant 0 : index
    %c0_53 = arith.constant 0 : index
    %38 = vector.load %arg6[%c0_49, %c0_50, %c0_51, %c0_52, %c0_53] : memref<1x4x2x4x256xf32, #tpu.memory_space<vmem>>, vector<1x4x1x4x128xf32>
    %39 = vector.shape_cast %38 : vector<1x4x1x4x128xf32> to vector<1x4x4x128xf32>
    %40 = vector.shape_cast %37 : vector<1x4x4x128xf32> to vector<1x4x1x4x128xf32>
    tpu.vector_store %arg6[%c0_49, %c0_50, %c0_51, %c0_52, %c0_53], %40 {strides = array<i32>} : memref<1x4x2x4x256xf32, #tpu.memory_space<vmem>>, vector<1x4x1x4x128xf32>,
    %cst_54 = arith.constant 0.000000e+00 : f32
    %41 = vector.broadcast %cst_54 : f32 to vector<1x4x4x128xf32>
    %42 = arith.maximumf %37, %41 : vector<1x4x4x128xf32>
    %c0_55 = arith.constant 0 : index
    %c0_56 = arith.constant 0 : index
    %c1_57 = arith.constant 1 : index
    %c0_58 = arith.constant 0 : index
    %c128 = arith.constant 128 : index
    %43 = vector.load %arg8[%c0_55, %c0_56, %c1_57, %c0_58, %c128] : memref<1x5x2x5x256xf32, #tpu.memory_space<vmem>>, vector<1x4x1x4x128xf32>
    %44 = vector.shape_cast %43 : vector<1x4x1x4x128xf32> to vector<1x4x4x128xf32>
    %45 = vector.shape_cast %42 : vector<1x4x4x128xf32> to vector<1x4x1x4x128xf32>
    tpu.vector_store %arg8[%c0_55, %c0_56, %c1_57, %c0_58, %c128], %45 {strides = array<i32>} : memref<1x5x2x5x256xf32, #tpu.memory_space<vmem>>, vector<1x4x1x4x128xf32>,
    %c0_59 = arith.constant 0 : index
    %c0_60 = arith.constant 0 : index
    %c0_61 = arith.constant 0 : index
    %c0_62 = arith.constant 0 : index
    %c256 = arith.constant 256 : index
    %46 = vector.load %arg1[%c0_59, %c0_60, %c0_61, %c0_62, %c256] : memref<1x5x4x5x512xf32, #tpu.memory_space<vmem>>, vector<1x4x1x4x256xf32>
    %47 = vector.shape_cast %46 : vector<1x4x1x4x256xf32> to vector<1x4x4x256xf32>
    %c0_63 = arith.constant 0 : index
    %c0_64 = arith.constant 0 : index
    %c0_65 = arith.constant 0 : index
    %48 = vector.load %arg2[%c0_63, %c0_64, %c0_65] : memref<3x384x128xf32, #tpu.memory_space<vmem>>, vector<1x256x128xf32>
    %49 = vector.shape_cast %48 : vector<1x256x128xf32> to vector<256x128xf32>
    %50 = vector.shape_cast %47 : vector<1x4x4x256xf32> to vector<16x256xf32>
    %cst_66 = arith.constant dense<0.000000e+00> : vector<16x128xf32>
    %51 = tpu.matmul %50, %49, %cst_66 {dimension_numbers = #tpu.dot_dimension_numbers<[1], [0], [0], [1], [0, 0, 1, 1], [], []>} : vector<16x256xf32>, vector<256x128xf32>, vector<16x128xf32> -> vector<16x128xf32>
    %c0_67 = arith.constant 0 : index
    %c0_68 = arith.constant 0 : index
    %52 = vector.load %arg9[%c0_67, %c0_68] : memref<16x128xf32, #tpu.memory_space<vmem>>, vector<16x128xf32>
    tpu.vector_store %arg9[%c0_67, %c0_68], %51 {strides = array<i32>} : memref<16x128xf32, #tpu.memory_space<vmem>>, vector<16x128xf32>,
    %c0_69 = arith.constant 0 : index
    %c0_70 = arith.constant 0 : index
    %c0_71 = arith.constant 0 : index
    %c1_72 = arith.constant 1 : index
    %c0_73 = arith.constant 0 : index
    %53 = vector.load %arg1[%c0_69, %c0_70, %c0_71, %c1_72, %c0_73] : memref<1x5x4x5x512xf32, #tpu.memory_space<vmem>>, vector<1x4x1x4x128xf32>
    %54 = vector.shape_cast %53 : vector<1x4x1x4x128xf32> to vector<1x4x4x128xf32>
    %c0_74 = arith.constant 0 : index
    %c256_75 = arith.constant 256 : index
    %c0_76 = arith.constant 0 : index
    %55 = vector.load %arg2[%c0_74, %c256_75, %c0_76] : memref<3x384x128xf32, #tpu.memory_space<vmem>>, vector<1x128x128xf32>
    %56 = vector.shape_cast %55 : vector<1x128x128xf32> to vector<128x128xf32>
    %57 = vector.shape_cast %54 : vector<1x4x4x128xf32> to vector<16x128xf32>
    %cst_77 = arith.constant dense<0.000000e+00> : vector<16x128xf32>
    %58 = tpu.matmul %57, %56, %cst_77 {dimension_numbers = #tpu.dot_dimension_numbers<[1], [0], [0], [1], [0, 0, 1, 1], [], []>} : vector<16x128xf32>, vector<128x128xf32>, vector<16x128xf32> -> vector<16x128xf32>
    %c0_78 = arith.constant 0 : index
    %c0_79 = arith.constant 0 : index
    %59 = vector.load %arg9[%c0_78, %c0_79] : memref<16x128xf32, #tpu.memory_space<vmem>>, vector<16x128xf32>
    %60 = arith.addf %59, %58 : vector<16x128xf32>
    %c0_80 = arith.constant 0 : index
    %c0_81 = arith.constant 0 : index
    %61 = vector.load %arg9[%c0_80, %c0_81] : memref<16x128xf32, #tpu.memory_space<vmem>>, vector<16x128xf32>
    tpu.vector_store %arg9[%c0_80, %c0_81], %60 {strides = array<i32>} : memref<16x128xf32, #tpu.memory_space<vmem>>, vector<16x128xf32>,
    %c0_82 = arith.constant 0 : index
    %c0_83 = arith.constant 0 : index
    %c1_84 = arith.constant 1 : index
    %c0_85 = arith.constant 0 : index
    %c256_86 = arith.constant 256 : index
    %62 = vector.load %arg1[%c0_82, %c0_83, %c1_84, %c0_85, %c256_86] : memref<1x5x4x5x512xf32, #tpu.memory_space<vmem>>, vector<1x4x1x4x256xf32>
    %63 = vector.shape_cast %62 : vector<1x4x1x4x256xf32> to vector<1x4x4x256xf32>
    %c1_87 = arith.constant 1 : index
    %c0_88 = arith.constant 0 : index
    %c0_89 = arith.constant 0 : index
    %64 = vector.load %arg2[%c1_87, %c0_88, %c0_89] : memref<3x384x128xf32, #tpu.memory_space<vmem>>, vector<1x256x128xf32>
    %65 = vector.shape_cast %64 : vector<1x256x128xf32> to vector<256x128xf32>
    %66 = vector.shape_cast %63 : vector<1x4x4x256xf32> to vector<16x256xf32>
    %cst_90 = arith.constant dense<0.000000e+00> : vector<16x128xf32>
    %67 = tpu.matmul %66, %65, %cst_90 {dimension_numbers = #tpu.dot_dimension_numbers<[1], [0], [0], [1], [0, 0, 1, 1], [], []>} : vector<16x256xf32>, vector<256x128xf32>, vector<16x128xf32> -> vector<16x128xf32>
    %c0_91 = arith.constant 0 : index
    %c0_92 = arith.constant 0 : index
    %68 = vector.load %arg9[%c0_91, %c0_92] : memref<16x128xf32, #tpu.memory_space<vmem>>, vector<16x128xf32>
    %69 = arith.addf %68, %67 : vector<16x128xf32>
    %c0_93 = arith.constant 0 : index
    %c0_94 = arith.constant 0 : index
    %70 = vector.load %arg9[%c0_93, %c0_94] : memref<16x128xf32, #tpu.memory_space<vmem>>, vector<16x128xf32>
    tpu.vector_store %arg9[%c0_93, %c0_94], %69 {strides = array<i32>} : memref<16x128xf32, #tpu.memory_space<vmem>>, vector<16x128xf32>,
    %c0_95 = arith.constant 0 : index
    %c0_96 = arith.constant 0 : index
    %c1_97 = arith.constant 1 : index
    %c1_98 = arith.constant 1 : index
    %c0_99 = arith.constant 0 : index
    %71 = vector.load %arg1[%c0_95, %c0_96, %c1_97, %c1_98, %c0_99] : memref<1x5x4x5x512xf32, #tpu.memory_space<vmem>>, vector<1x4x1x4x128xf32>
    %72 = vector.shape_cast %71 : vector<1x4x1x4x128xf32> to vector<1x4x4x128xf32>
    %c1_100 = arith.constant 1 : index
    %c256_101 = arith.constant 256 : index
    %c0_102 = arith.constant 0 : index
    %73 = vector.load %arg2[%c1_100, %c256_101, %c0_102] : memref<3x384x128xf32, #tpu.memory_space<vmem>>, vector<1x128x128xf32>
    %74 = vector.shape_cast %73 : vector<1x128x128xf32> to vector<128x128xf32>
    %75 = vector.shape_cast %72 : vector<1x4x4x128xf32> to vector<16x128xf32>
    %cst_103 = arith.constant dense<0.000000e+00> : vector<16x128xf32>
    %76 = tpu.matmul %75, %74, %cst_103 {dimension_numbers = #tpu.dot_dimension_numbers<[1], [0], [0], [1], [0, 0, 1, 1], [], []>} : vector<16x128xf32>, vector<128x128xf32>, vector<16x128xf32> -> vector<16x128xf32>
    %c0_104 = arith.constant 0 : index
    %c0_105 = arith.constant 0 : index
    %77 = vector.load %arg9[%c0_104, %c0_105] : memref<16x128xf32, #tpu.memory_space<vmem>>, vector<16x128xf32>
    %78 = arith.addf %77, %76 : vector<16x128xf32>
    %c0_106 = arith.constant 0 : index
    %c0_107 = arith.constant 0 : index
    %79 = vector.load %arg9[%c0_106, %c0_107] : memref<16x128xf32, #tpu.memory_space<vmem>>, vector<16x128xf32>
    tpu.vector_store %arg9[%c0_106, %c0_107], %78 {strides = array<i32>} : memref<16x128xf32, #tpu.memory_space<vmem>>, vector<16x128xf32>,
    %c0_108 = arith.constant 0 : index
    %c0_109 = arith.constant 0 : index
    %c2_110 = arith.constant 2 : index
    %c0_111 = arith.constant 0 : index
    %c256_112 = arith.constant 256 : index
    %80 = vector.load %arg1[%c0_108, %c0_109, %c2_110, %c0_111, %c256_112] : memref<1x5x4x5x512xf32, #tpu.memory_space<vmem>>, vector<1x4x1x4x256xf32>
    %81 = vector.shape_cast %80 : vector<1x4x1x4x256xf32> to vector<1x4x4x256xf32>
    %c2_113 = arith.constant 2 : index
    %c0_114 = arith.constant 0 : index
    %c0_115 = arith.constant 0 : index
    %82 = vector.load %arg2[%c2_113, %c0_114, %c0_115] : memref<3x384x128xf32, #tpu.memory_space<vmem>>, vector<1x256x128xf32>
    %83 = vector.shape_cast %82 : vector<1x256x128xf32> to vector<256x128xf32>
    %84 = vector.shape_cast %81 : vector<1x4x4x256xf32> to vector<16x256xf32>
    %cst_116 = arith.constant dense<0.000000e+00> : vector<16x128xf32>
    %85 = tpu.matmul %84, %83, %cst_116 {dimension_numbers = #tpu.dot_dimension_numbers<[1], [0], [0], [1], [0, 0, 1, 1], [], []>} : vector<16x256xf32>, vector<256x128xf32>, vector<16x128xf32> -> vector<16x128xf32>
    %c0_117 = arith.constant 0 : index
    %c0_118 = arith.constant 0 : index
    %86 = vector.load %arg9[%c0_117, %c0_118] : memref<16x128xf32, #tpu.memory_space<vmem>>, vector<16x128xf32>
    %87 = arith.addf %86, %85 : vector<16x128xf32>
    %c0_119 = arith.constant 0 : index
    %c0_120 = arith.constant 0 : index
    %88 = vector.load %arg9[%c0_119, %c0_120] : memref<16x128xf32, #tpu.memory_space<vmem>>, vector<16x128xf32>
    tpu.vector_store %arg9[%c0_119, %c0_120], %87 {strides = array<i32>} : memref<16x128xf32, #tpu.memory_space<vmem>>, vector<16x128xf32>,
    %c0_121 = arith.constant 0 : index
    %c0_122 = arith.constant 0 : index
    %c2_123 = arith.constant 2 : index
    %c1_124 = arith.constant 1 : index
    %c0_125 = arith.constant 0 : index
    %89 = vector.load %arg1[%c0_121, %c0_122, %c2_123, %c1_124, %c0_125] : memref<1x5x4x5x512xf32, #tpu.memory_space<vmem>>, vector<1x4x1x4x128xf32>
    %90 = vector.shape_cast %89 : vector<1x4x1x4x128xf32> to vector<1x4x4x128xf32>
    %c2_126 = arith.constant 2 : index
    %c256_127 = arith.constant 256 : index
    %c0_128 = arith.constant 0 : index
    %91 = vector.load %arg2[%c2_126, %c256_127, %c0_128] : memref<3x384x128xf32, #tpu.memory_space<vmem>>, vector<1x128x128xf32>
    %92 = vector.shape_cast %91 : vector<1x128x128xf32> to vector<128x128xf32>
    %93 = vector.shape_cast %90 : vector<1x4x4x128xf32> to vector<16x128xf32>
    %cst_129 = arith.constant dense<0.000000e+00> : vector<16x128xf32>
    %94 = tpu.matmul %93, %92, %cst_129 {dimension_numbers = #tpu.dot_dimension_numbers<[1], [0], [0], [1], [0, 0, 1, 1], [], []>} : vector<16x128xf32>, vector<128x128xf32>, vector<16x128xf32> -> vector<16x128xf32>
    %c0_130 = arith.constant 0 : index
    %c0_131 = arith.constant 0 : index
    %95 = vector.load %arg9[%c0_130, %c0_131] : memref<16x128xf32, #tpu.memory_space<vmem>>, vector<16x128xf32>
    %96 = arith.addf %95, %94 : vector<16x128xf32>
    %c0_132 = arith.constant 0 : index
    %c0_133 = arith.constant 0 : index
    %97 = vector.load %arg9[%c0_132, %c0_133] : memref<16x128xf32, #tpu.memory_space<vmem>>, vector<16x128xf32>
    tpu.vector_store %arg9[%c0_132, %c0_133], %96 {strides = array<i32>} : memref<16x128xf32, #tpu.memory_space<vmem>>, vector<16x128xf32>,
    %c0_134 = arith.constant 0 : index
    %c0_135 = arith.constant 0 : index
    %98 = vector.load %arg9[%c0_134, %c0_135] : memref<16x128xf32, #tpu.memory_space<vmem>>, vector<16x128xf32>
    %c0_136 = arith.constant 0 : index
    %c0_137 = arith.constant 0 : index
    %99 = vector.load %arg3[%c0_136, %c0_137] : memref<1x128xf32, #tpu.memory_space<vmem>>, vector<1x128xf32>
    %100 = vector.broadcast %99 : vector<1x128xf32> to vector<16x128xf32>
    %101 = arith.addf %98, %100 : vector<16x128xf32>
    %102 = vector.shape_cast %101 : vector<16x128xf32> to vector<1x4x4x128xf32>
    %c0_138 = arith.constant 0 : index
    %c0_139 = arith.constant 0 : index
    %c0_140 = arith.constant 0 : index
    %c0_141 = arith.constant 0 : index
    %c128_142 = arith.constant 128 : index
    %103 = vector.load %arg6[%c0_138, %c0_139, %c0_140, %c0_141, %c128_142] : memref<1x4x2x4x256xf32, #tpu.memory_space<vmem>>, vector<1x4x1x4x128xf32>
    %104 = vector.shape_cast %103 : vector<1x4x1x4x128xf32> to vector<1x4x4x128xf32>
    %105 = vector.shape_cast %102 : vector<1x4x4x128xf32> to vector<1x4x1x4x128xf32>
    tpu.vector_store %arg6[%c0_138, %c0_139, %c0_140, %c0_141, %c128_142], %105 {strides = array<i32>} : memref<1x4x2x4x256xf32, #tpu.memory_space<vmem>>, vector<1x4x1x4x128xf32>,
    %cst_143 = arith.constant 0.000000e+00 : f32
    %106 = vector.broadcast %cst_143 : f32 to vector<1x4x4x128xf32>
    %107 = arith.maximumf %102, %106 : vector<1x4x4x128xf32>
    %c0_144 = arith.constant 0 : index
    %c0_145 = arith.constant 0 : index
    %c1_146 = arith.constant 1 : index
    %c1_147 = arith.constant 1 : index
    %c0_148 = arith.constant 0 : index
    %108 = vector.load %arg8[%c0_144, %c0_145, %c1_146, %c1_147, %c0_148] : memref<1x5x2x5x256xf32, #tpu.memory_space<vmem>>, vector<1x4x1x4x128xf32>
    %109 = vector.shape_cast %108 : vector<1x4x1x4x128xf32> to vector<1x4x4x128xf32>
    %110 = vector.shape_cast %107 : vector<1x4x4x128xf32> to vector<1x4x1x4x128xf32>
    tpu.vector_store %arg8[%c0_144, %c0_145, %c1_146, %c1_147, %c0_148], %110 {strides = array<i32>} : memref<1x5x2x5x256xf32, #tpu.memory_space<vmem>>, vector<1x4x1x4x128xf32>,
    %c0_149 = arith.constant 0 : index
    %c0_150 = arith.constant 0 : index
    %c2_151 = arith.constant 2 : index
    %c0_152 = arith.constant 0 : index
    %c0_153 = arith.constant 0 : index
    %111 = vector.load %arg1[%c0_149, %c0_150, %c2_151, %c0_152, %c0_153] : memref<1x5x4x5x512xf32, #tpu.memory_space<vmem>>, vector<1x4x1x4x384xf32>
    %112 = vector.shape_cast %111 : vector<1x4x1x4x384xf32> to vector<1x4x4x384xf32>
    %c0_154 = arith.constant 0 : index
    %c0_155 = arith.constant 0 : index
    %c0_156 = arith.constant 0 : index
    %113 = vector.load %arg2[%c0_154, %c0_155, %c0_156] : memref<3x384x128xf32, #tpu.memory_space<vmem>>, vector<1x384x128xf32>
    %114 = vector.shape_cast %113 : vector<1x384x128xf32> to vector<384x128xf32>
    %115 = vector.shape_cast %112 : vector<1x4x4x384xf32> to vector<16x384xf32>
    %cst_157 = arith.constant dense<0.000000e+00> : vector<16x128xf32>
    %116 = tpu.matmul %115, %114, %cst_157 {dimension_numbers = #tpu.dot_dimension_numbers<[1], [0], [0], [1], [0, 0, 1, 1], [], []>} : vector<16x384xf32>, vector<384x128xf32>, vector<16x128xf32> -> vector<16x128xf32>
    %c0_158 = arith.constant 0 : index
    %c0_159 = arith.constant 0 : index
    %117 = vector.load %arg9[%c0_158, %c0_159] : memref<16x128xf32, #tpu.memory_space<vmem>>, vector<16x128xf32>
    tpu.vector_store %arg9[%c0_158, %c0_159], %116 {strides = array<i32>} : memref<16x128xf32, #tpu.memory_space<vmem>>, vector<16x128xf32>,
    %c0_160 = arith.constant 0 : index
    %c0_161 = arith.constant 0 : index
    %c3 = arith.constant 3 : index
    %c0_162 = arith.constant 0 : index
    %c0_163 = arith.constant 0 : index
    %118 = vector.load %arg1[%c0_160, %c0_161, %c3, %c0_162, %c0_163] : memref<1x5x4x5x512xf32, #tpu.memory_space<vmem>>, vector<1x4x1x4x384xf32>
    %119 = vector.shape_cast %118 : vector<1x4x1x4x384xf32> to vector<1x4x4x384xf32>
    %c1_164 = arith.constant 1 : index
    %c0_165 = arith.constant 0 : index
    %c0_166 = arith.constant 0 : index
    %120 = vector.load %arg2[%c1_164, %c0_165, %c0_166] : memref<3x384x128xf32, #tpu.memory_space<vmem>>, vector<1x384x128xf32>
    %121 = vector.shape_cast %120 : vector<1x384x128xf32> to vector<384x128xf32>
    %122 = vector.shape_cast %119 : vector<1x4x4x384xf32> to vector<16x384xf32>
    %cst_167 = arith.constant dense<0.000000e+00> : vector<16x128xf32>
    %123 = tpu.matmul %122, %121, %cst_167 {dimension_numbers = #tpu.dot_dimension_numbers<[1], [0], [0], [1], [0, 0, 1, 1], [], []>} : vector<16x384xf32>, vector<384x128xf32>, vector<16x128xf32> -> vector<16x128xf32>
    %c0_168 = arith.constant 0 : index
    %c0_169 = arith.constant 0 : index
    %124 = vector.load %arg9[%c0_168, %c0_169] : memref<16x128xf32, #tpu.memory_space<vmem>>, vector<16x128xf32>
    %125 = arith.addf %124, %123 : vector<16x128xf32>
    %c0_170 = arith.constant 0 : index
    %c0_171 = arith.constant 0 : index
    %126 = vector.load %arg9[%c0_170, %c0_171] : memref<16x128xf32, #tpu.memory_space<vmem>>, vector<16x128xf32>
    tpu.vector_store %arg9[%c0_170, %c0_171], %125 {strides = array<i32>} : memref<16x128xf32, #tpu.memory_space<vmem>>, vector<16x128xf32>,
    %c0_172 = arith.constant 0 : index
    %c1_173 = arith.constant 1 : index
    %c0_174 = arith.constant 0 : index
    %c0_175 = arith.constant 0 : index
    %c0_176 = arith.constant 0 : index
    %127 = vector.load %arg1[%c0_172, %c1_173, %c0_174, %c0_175, %c0_176] : memref<1x5x4x5x512xf32, #tpu.memory_space<vmem>>, vector<1x4x1x4x384xf32>
    %128 = vector.shape_cast %127 : vector<1x4x1x4x384xf32> to vector<1x4x4x384xf32>
    %c2_177 = arith.constant 2 : index
    %c0_178 = arith.constant 0 : index
    %c0_179 = arith.constant 0 : index
    %129 = vector.load %arg2[%c2_177, %c0_178, %c0_179] : memref<3x384x128xf32, #tpu.memory_space<vmem>>, vector<1x384x128xf32>
    %130 = vector.shape_cast %129 : vector<1x384x128xf32> to vector<384x128xf32>
    %131 = vector.shape_cast %128 : vector<1x4x4x384xf32> to vector<16x384xf32>
    %cst_180 = arith.constant dense<0.000000e+00> : vector<16x128xf32>
    %132 = tpu.matmul %131, %130, %cst_180 {dimension_numbers = #tpu.dot_dimension_numbers<[1], [0], [0], [1], [0, 0, 1, 1], [], []>} : vector<16x384xf32>, vector<384x128xf32>, vector<16x128xf32> -> vector<16x128xf32>
    %c0_181 = arith.constant 0 : index
    %c0_182 = arith.constant 0 : index
    %133 = vector.load %arg9[%c0_181, %c0_182] : memref<16x128xf32, #tpu.memory_space<vmem>>, vector<16x128xf32>
    %134 = arith.addf %133, %132 : vector<16x128xf32>
    %c0_183 = arith.constant 0 : index
    %c0_184 = arith.constant 0 : index
    %135 = vector.load %arg9[%c0_183, %c0_184] : memref<16x128xf32, #tpu.memory_space<vmem>>, vector<16x128xf32>
    tpu.vector_store %arg9[%c0_183, %c0_184], %134 {strides = array<i32>} : memref<16x128xf32, #tpu.memory_space<vmem>>, vector<16x128xf32>,
    %c0_185 = arith.constant 0 : index
    %c0_186 = arith.constant 0 : index
    %136 = vector.load %arg9[%c0_185, %c0_186] : memref<16x128xf32, #tpu.memory_space<vmem>>, vector<16x128xf32>
    %c0_187 = arith.constant 0 : index
    %c0_188 = arith.constant 0 : index
    %137 = vector.load %arg3[%c0_187, %c0_188] : memref<1x128xf32, #tpu.memory_space<vmem>>, vector<1x128xf32>
    %138 = vector.broadcast %137 : vector<1x128xf32> to vector<16x128xf32>
    %139 = arith.addf %136, %138 : vector<16x128xf32>
    %140 = vector.shape_cast %139 : vector<16x128xf32> to vector<1x4x4x128xf32>
    %c0_189 = arith.constant 0 : index
    %c0_190 = arith.constant 0 : index
    %c1_191 = arith.constant 1 : index
    %c0_192 = arith.constant 0 : index
    %c0_193 = arith.constant 0 : index
    %141 = vector.load %arg6[%c0_189, %c0_190, %c1_191, %c0_192, %c0_193] : memref<1x4x2x4x256xf32, #tpu.memory_space<vmem>>, vector<1x4x1x4x128xf32>
    %142 = vector.shape_cast %141 : vector<1x4x1x4x128xf32> to vector<1x4x4x128xf32>
    %143 = vector.shape_cast %140 : vector<1x4x4x128xf32> to vector<1x4x1x4x128xf32>
    tpu.vector_store %arg6[%c0_189, %c0_190, %c1_191, %c0_192, %c0_193], %143 {strides = array<i32>} : memref<1x4x2x4x256xf32, #tpu.memory_space<vmem>>, vector<1x4x1x4x128xf32>,
    %cst_194 = arith.constant 0.000000e+00 : f32
    %144 = vector.broadcast %cst_194 : f32 to vector<1x4x4x128xf32>
    %145 = arith.maximumf %140, %144 : vector<1x4x4x128xf32>
    %c0_195 = arith.constant 0 : index
    %c1_196 = arith.constant 1 : index
    %c0_197 = arith.constant 0 : index
    %c0_198 = arith.constant 0 : index
    %c128_199 = arith.constant 128 : index
    %146 = vector.load %arg8[%c0_195, %c1_196, %c0_197, %c0_198, %c128_199] : memref<1x5x2x5x256xf32, #tpu.memory_space<vmem>>, vector<1x4x1x4x128xf32>
    %147 = vector.shape_cast %146 : vector<1x4x1x4x128xf32> to vector<1x4x4x128xf32>
    %148 = vector.shape_cast %145 : vector<1x4x4x128xf32> to vector<1x4x1x4x128xf32>
    tpu.vector_store %arg8[%c0_195, %c1_196, %c0_197, %c0_198, %c128_199], %148 {strides = array<i32>} : memref<1x5x2x5x256xf32, #tpu.memory_space<vmem>>, vector<1x4x1x4x128xf32>,
    %c0_200 = arith.constant 0 : index
    %c0_201 = arith.constant 0 : index
    %c2_202 = arith.constant 2 : index
    %c0_203 = arith.constant 0 : index
    %c256_204 = arith.constant 256 : index
    %149 = vector.load %arg1[%c0_200, %c0_201, %c2_202, %c0_203, %c256_204] : memref<1x5x4x5x512xf32, #tpu.memory_space<vmem>>, vector<1x4x1x4x256xf32>
    %150 = vector.shape_cast %149 : vector<1x4x1x4x256xf32> to vector<1x4x4x256xf32>
    %c0_205 = arith.constant 0 : index
    %c0_206 = arith.constant 0 : index
    %c0_207 = arith.constant 0 : index
    %151 = vector.load %arg2[%c0_205, %c0_206, %c0_207] : memref<3x384x128xf32, #tpu.memory_space<vmem>>, vector<1x256x128xf32>
    %152 = vector.shape_cast %151 : vector<1x256x128xf32> to vector<256x128xf32>
    %153 = vector.shape_cast %150 : vector<1x4x4x256xf32> to vector<16x256xf32>
    %cst_208 = arith.constant dense<0.000000e+00> : vector<16x128xf32>
    %154 = tpu.matmul %153, %152, %cst_208 {dimension_numbers = #tpu.dot_dimension_numbers<[1], [0], [0], [1], [0, 0, 1, 1], [], []>} : vector<16x256xf32>, vector<256x128xf32>, vector<16x128xf32> -> vector<16x128xf32>
    %c0_209 = arith.constant 0 : index
    %c0_210 = arith.constant 0 : index
    %155 = vector.load %arg9[%c0_209, %c0_210] : memref<16x128xf32, #tpu.memory_space<vmem>>, vector<16x128xf32>
    tpu.vector_store %arg9[%c0_209, %c0_210], %154 {strides = array<i32>} : memref<16x128xf32, #tpu.memory_space<vmem>>, vector<16x128xf32>,
    %c0_211 = arith.constant 0 : index
    %c0_212 = arith.constant 0 : index
    %c2_213 = arith.constant 2 : index
    %c1_214 = arith.constant 1 : index
    %c0_215 = arith.constant 0 : index
    %156 = vector.load %arg1[%c0_211, %c0_212, %c2_213, %c1_214, %c0_215] : memref<1x5x4x5x512xf32, #tpu.memory_space<vmem>>, vector<1x4x1x4x128xf32>
    %157 = vector.shape_cast %156 : vector<1x4x1x4x128xf32> to vector<1x4x4x128xf32>
    %c0_216 = arith.constant 0 : index
    %c256_217 = arith.constant 256 : index
    %c0_218 = arith.constant 0 : index
    %158 = vector.load %arg2[%c0_216, %c256_217, %c0_218] : memref<3x384x128xf32, #tpu.memory_space<vmem>>, vector<1x128x128xf32>
    %159 = vector.shape_cast %158 : vector<1x128x128xf32> to vector<128x128xf32>
    %160 = vector.shape_cast %157 : vector<1x4x4x128xf32> to vector<16x128xf32>
    %cst_219 = arith.constant dense<0.000000e+00> : vector<16x128xf32>
    %161 = tpu.matmul %160, %159, %cst_219 {dimension_numbers = #tpu.dot_dimension_numbers<[1], [0], [0], [1], [0, 0, 1, 1], [], []>} : vector<16x128xf32>, vector<128x128xf32>, vector<16x128xf32> -> vector<16x128xf32>
    %c0_220 = arith.constant 0 : index
    %c0_221 = arith.constant 0 : index
    %162 = vector.load %arg9[%c0_220, %c0_221] : memref<16x128xf32, #tpu.memory_space<vmem>>, vector<16x128xf32>
    %163 = arith.addf %162, %161 : vector<16x128xf32>
    %c0_222 = arith.constant 0 : index
    %c0_223 = arith.constant 0 : index
    %164 = vector.load %arg9[%c0_222, %c0_223] : memref<16x128xf32, #tpu.memory_space<vmem>>, vector<16x128xf32>
    tpu.vector_store %arg9[%c0_222, %c0_223], %163 {strides = array<i32>} : memref<16x128xf32, #tpu.memory_space<vmem>>, vector<16x128xf32>,
    %c0_224 = arith.constant 0 : index
    %c0_225 = arith.constant 0 : index
    %c3_226 = arith.constant 3 : index
    %c0_227 = arith.constant 0 : index
    %c256_228 = arith.constant 256 : index
    %165 = vector.load %arg1[%c0_224, %c0_225, %c3_226, %c0_227, %c256_228] : memref<1x5x4x5x512xf32, #tpu.memory_space<vmem>>, vector<1x4x1x4x256xf32>
    %166 = vector.shape_cast %165 : vector<1x4x1x4x256xf32> to vector<1x4x4x256xf32>
    %c1_229 = arith.constant 1 : index
    %c0_230 = arith.constant 0 : index
    %c0_231 = arith.constant 0 : index
    %167 = vector.load %arg2[%c1_229, %c0_230, %c0_231] : memref<3x384x128xf32, #tpu.memory_space<vmem>>, vector<1x256x128xf32>
    %168 = vector.shape_cast %167 : vector<1x256x128xf32> to vector<256x128xf32>
    %169 = vector.shape_cast %166 : vector<1x4x4x256xf32> to vector<16x256xf32>
    %cst_232 = arith.constant dense<0.000000e+00> : vector<16x128xf32>
    %170 = tpu.matmul %169, %168, %cst_232 {dimension_numbers = #tpu.dot_dimension_numbers<[1], [0], [0], [1], [0, 0, 1, 1], [], []>} : vector<16x256xf32>, vector<256x128xf32>, vector<16x128xf32> -> vector<16x128xf32>
    %c0_233 = arith.constant 0 : index
    %c0_234 = arith.constant 0 : index
    %171 = vector.load %arg9[%c0_233, %c0_234] : memref<16x128xf32, #tpu.memory_space<vmem>>, vector<16x128xf32>
    %172 = arith.addf %171, %170 : vector<16x128xf32>
    %c0_235 = arith.constant 0 : index
    %c0_236 = arith.constant 0 : index
    %173 = vector.load %arg9[%c0_235, %c0_236] : memref<16x128xf32, #tpu.memory_space<vmem>>, vector<16x128xf32>
    tpu.vector_store %arg9[%c0_235, %c0_236], %172 {strides = array<i32>} : memref<16x128xf32, #tpu.memory_space<vmem>>, vector<16x128xf32>,
    %c0_237 = arith.constant 0 : index
    %c0_238 = arith.constant 0 : index
    %c3_239 = arith.constant 3 : index
    %c1_240 = arith.constant 1 : index
    %c0_241 = arith.constant 0 : index
    %174 = vector.load %arg1[%c0_237, %c0_238, %c3_239, %c1_240, %c0_241] : memref<1x5x4x5x512xf32, #tpu.memory_space<vmem>>, vector<1x4x1x4x128xf32>
    %175 = vector.shape_cast %174 : vector<1x4x1x4x128xf32> to vector<1x4x4x128xf32>
    %c1_242 = arith.constant 1 : index
    %c256_243 = arith.constant 256 : index
    %c0_244 = arith.constant 0 : index
    %176 = vector.load %arg2[%c1_242, %c256_243, %c0_244] : memref<3x384x128xf32, #tpu.memory_space<vmem>>, vector<1x128x128xf32>
    %177 = vector.shape_cast %176 : vector<1x128x128xf32> to vector<128x128xf32>
    %178 = vector.shape_cast %175 : vector<1x4x4x128xf32> to vector<16x128xf32>
    %cst_245 = arith.constant dense<0.000000e+00> : vector<16x128xf32>
    %179 = tpu.matmul %178, %177, %cst_245 {dimension_numbers = #tpu.dot_dimension_numbers<[1], [0], [0], [1], [0, 0, 1, 1], [], []>} : vector<16x128xf32>, vector<128x128xf32>, vector<16x128xf32> -> vector<16x128xf32>
    %c0_246 = arith.constant 0 : index
    %c0_247 = arith.constant 0 : index
    %180 = vector.load %arg9[%c0_246, %c0_247] : memref<16x128xf32, #tpu.memory_space<vmem>>, vector<16x128xf32>
    %181 = arith.addf %180, %179 : vector<16x128xf32>
    %c0_248 = arith.constant 0 : index
    %c0_249 = arith.constant 0 : index
    %182 = vector.load %arg9[%c0_248, %c0_249] : memref<16x128xf32, #tpu.memory_space<vmem>>, vector<16x128xf32>
    tpu.vector_store %arg9[%c0_248, %c0_249], %181 {strides = array<i32>} : memref<16x128xf32, #tpu.memory_space<vmem>>, vector<16x128xf32>,
    %c0_250 = arith.constant 0 : index
    %c1_251 = arith.constant 1 : index
    %c0_252 = arith.constant 0 : index
    %c0_253 = arith.constant 0 : index
    %c256_254 = arith.constant 256 : index
    %183 = vector.load %arg1[%c0_250, %c1_251, %c0_252, %c0_253, %c256_254] : memref<1x5x4x5x512xf32, #tpu.memory_space<vmem>>, vector<1x4x1x4x256xf32>
    %184 = vector.shape_cast %183 : vector<1x4x1x4x256xf32> to vector<1x4x4x256xf32>
    %c2_255 = arith.constant 2 : index
    %c0_256 = arith.constant 0 : index
    %c0_257 = arith.constant 0 : index
    %185 = vector.load %arg2[%c2_255, %c0_256, %c0_257] : memref<3x384x128xf32, #tpu.memory_space<vmem>>, vector<1x256x128xf32>
    %186 = vector.shape_cast %185 : vector<1x256x128xf32> to vector<256x128xf32>
    %187 = vector.shape_cast %184 : vector<1x4x4x256xf32> to vector<16x256xf32>
    %cst_258 = arith.constant dense<0.000000e+00> : vector<16x128xf32>
    %188 = tpu.matmul %187, %186, %cst_258 {dimension_numbers = #tpu.dot_dimension_numbers<[1], [0], [0], [1], [0, 0, 1, 1], [], []>} : vector<16x256xf32>, vector<256x128xf32>, vector<16x128xf32> -> vector<16x128xf32>
    %c0_259 = arith.constant 0 : index
    %c0_260 = arith.constant 0 : index
    %189 = vector.load %arg9[%c0_259, %c0_260] : memref<16x128xf32, #tpu.memory_space<vmem>>, vector<16x128xf32>
    %190 = arith.addf %189, %188 : vector<16x128xf32>
    %c0_261 = arith.constant 0 : index
    %c0_262 = arith.constant 0 : index
    %191 = vector.load %arg9[%c0_261, %c0_262] : memref<16x128xf32, #tpu.memory_space<vmem>>, vector<16x128xf32>
    tpu.vector_store %arg9[%c0_261, %c0_262], %190 {strides = array<i32>} : memref<16x128xf32, #tpu.memory_space<vmem>>, vector<16x128xf32>,
    %c0_263 = arith.constant 0 : index
    %c1_264 = arith.constant 1 : index
    %c0_265 = arith.constant 0 : index
    %c1_266 = arith.constant 1 : index
    %c0_267 = arith.constant 0 : index
    %192 = vector.load %arg1[%c0_263, %c1_264, %c0_265, %c1_266, %c0_267] : memref<1x5x4x5x512xf32, #tpu.memory_space<vmem>>, vector<1x4x1x4x128xf32>
    %193 = vector.shape_cast %192 : vector<1x4x1x4x128xf32> to vector<1x4x4x128xf32>
    %c2_268 = arith.constant 2 : index
    %c256_269 = arith.constant 256 : index
    %c0_270 = arith.constant 0 : index
    %194 = vector.load %arg2[%c2_268, %c256_269, %c0_270] : memref<3x384x128xf32, #tpu.memory_space<vmem>>, vector<1x128x128xf32>
    %195 = vector.shape_cast %194 : vector<1x128x128xf32> to vector<128x128xf32>
    %196 = vector.shape_cast %193 : vector<1x4x4x128xf32> to vector<16x128xf32>
    %cst_271 = arith.constant dense<0.000000e+00> : vector<16x128xf32>
    %197 = tpu.matmul %196, %195, %cst_271 {dimension_numbers = #tpu.dot_dimension_numbers<[1], [0], [0], [1], [0, 0, 1, 1], [], []>} : vector<16x128xf32>, vector<128x128xf32>, vector<16x128xf32> -> vector<16x128xf32>
    %c0_272 = arith.constant 0 : index
    %c0_273 = arith.constant 0 : index
    %198 = vector.load %arg9[%c0_272, %c0_273] : memref<16x128xf32, #tpu.memory_space<vmem>>, vector<16x128xf32>
    %199 = arith.addf %198, %197 : vector<16x128xf32>
    %c0_274 = arith.constant 0 : index
    %c0_275 = arith.constant 0 : index
    %200 = vector.load %arg9[%c0_274, %c0_275] : memref<16x128xf32, #tpu.memory_space<vmem>>, vector<16x128xf32>
    tpu.vector_store %arg9[%c0_274, %c0_275], %199 {strides = array<i32>} : memref<16x128xf32, #tpu.memory_space<vmem>>, vector<16x128xf32>,
    %c0_276 = arith.constant 0 : index
    %c0_277 = arith.constant 0 : index
    %201 = vector.load %arg9[%c0_276, %c0_277] : memref<16x128xf32, #tpu.memory_space<vmem>>, vector<16x128xf32>
    %c0_278 = arith.constant 0 : index
    %c0_279 = arith.constant 0 : index
    %202 = vector.load %arg3[%c0_278, %c0_279] : memref<1x128xf32, #tpu.memory_space<vmem>>, vector<1x128xf32>
    %203 = vector.broadcast %202 : vector<1x128xf32> to vector<16x128xf32>
    %204 = arith.addf %201, %203 : vector<16x128xf32>
    %205 = vector.shape_cast %204 : vector<16x128xf32> to vector<1x4x4x128xf32>
    %c0_280 = arith.constant 0 : index
    %c0_281 = arith.constant 0 : index
    %c1_282 = arith.constant 1 : index
    %c0_283 = arith.constant 0 : index
    %c128_284 = arith.constant 128 : index
    %206 = vector.load %arg6[%c0_280, %c0_281, %c1_282, %c0_283, %c128_284] : memref<1x4x2x4x256xf32, #tpu.memory_space<vmem>>, vector<1x4x1x4x128xf32>
    %207 = vector.shape_cast %206 : vector<1x4x1x4x128xf32> to vector<1x4x4x128xf32>
    %208 = vector.shape_cast %205 : vector<1x4x4x128xf32> to vector<1x4x1x4x128xf32>
    tpu.vector_store %arg6[%c0_280, %c0_281, %c1_282, %c0_283, %c128_284], %208 {strides = array<i32>} : memref<1x4x2x4x256xf32, #tpu.memory_space<vmem>>, vector<1x4x1x4x128xf32>,
    %cst_285 = arith.constant 0.000000e+00 : f32
    %209 = vector.broadcast %cst_285 : f32 to vector<1x4x4x128xf32>
    %210 = arith.maximumf %205, %209 : vector<1x4x4x128xf32>
    %c0_286 = arith.constant 0 : index
    %c1_287 = arith.constant 1 : index
    %c0_288 = arith.constant 0 : index
    %c1_289 = arith.constant 1 : index
    %c0_290 = arith.constant 0 : index
    %211 = vector.load %arg8[%c0_286, %c1_287, %c0_288, %c1_289, %c0_290] : memref<1x5x2x5x256xf32, #tpu.memory_space<vmem>>, vector<1x4x1x4x128xf32>
    %212 = vector.shape_cast %211 : vector<1x4x1x4x128xf32> to vector<1x4x4x128xf32>
    %213 = vector.shape_cast %210 : vector<1x4x4x128xf32> to vector<1x4x1x4x128xf32>
    tpu.vector_store %arg8[%c0_286, %c1_287, %c0_288, %c1_289, %c0_290], %213 {strides = array<i32>} : memref<1x5x2x5x256xf32, #tpu.memory_space<vmem>>, vector<1x4x1x4x128xf32>,
    %c0_291 = arith.constant 0 : index
    %c0_292 = arith.constant 0 : index
    %c0_293 = arith.constant 0 : index
    %c0_294 = arith.constant 0 : index
    %c0_295 = arith.constant 0 : index
    %214 = vector.load %arg8[%c0_291, %c0_292, %c0_293, %c0_294, %c0_295] : memref<1x5x2x5x256xf32, #tpu.memory_space<vmem>>, vector<1x4x1x4x256xf32>
    %215 = vector.shape_cast %214 : vector<1x4x1x4x256xf32> to vector<1x4x4x256xf32>
    %c0_296 = arith.constant 0 : index
    %c0_297 = arith.constant 0 : index
    %c0_298 = arith.constant 0 : index
    %216 = vector.load %arg4[%c0_296, %c0_297, %c0_298] : memref<3x384x128xf32, #tpu.memory_space<vmem>>, vector<1x256x128xf32>
    %217 = vector.shape_cast %216 : vector<1x256x128xf32> to vector<256x128xf32>
    %218 = vector.shape_cast %215 : vector<1x4x4x256xf32> to vector<16x256xf32>
    %cst_299 = arith.constant dense<0.000000e+00> : vector<16x128xf32>
    %219 = tpu.matmul %218, %217, %cst_299 {dimension_numbers = #tpu.dot_dimension_numbers<[1], [0], [0], [1], [0, 0, 1, 1], [], []>} : vector<16x256xf32>, vector<256x128xf32>, vector<16x128xf32> -> vector<16x128xf32>
    %c0_300 = arith.constant 0 : index
    %c0_301 = arith.constant 0 : index
    %220 = vector.load %arg9[%c0_300, %c0_301] : memref<16x128xf32, #tpu.memory_space<vmem>>, vector<16x128xf32>
    tpu.vector_store %arg9[%c0_300, %c0_301], %219 {strides = array<i32>} : memref<16x128xf32, #tpu.memory_space<vmem>>, vector<16x128xf32>,
    %c0_302 = arith.constant 0 : index
    %c0_303 = arith.constant 0 : index
    %c0_304 = arith.constant 0 : index
    %c1_305 = arith.constant 1 : index
    %c0_306 = arith.constant 0 : index
    %221 = vector.load %arg8[%c0_302, %c0_303, %c0_304, %c1_305, %c0_306] : memref<1x5x2x5x256xf32, #tpu.memory_space<vmem>>, vector<1x4x1x4x128xf32>
    %222 = vector.shape_cast %221 : vector<1x4x1x4x128xf32> to vector<1x4x4x128xf32>
    %c0_307 = arith.constant 0 : index
    %c256_308 = arith.constant 256 : index
    %c0_309 = arith.constant 0 : index
    %223 = vector.load %arg4[%c0_307, %c256_308, %c0_309] : memref<3x384x128xf32, #tpu.memory_space<vmem>>, vector<1x128x128xf32>
    %224 = vector.shape_cast %223 : vector<1x128x128xf32> to vector<128x128xf32>
    %225 = vector.shape_cast %222 : vector<1x4x4x128xf32> to vector<16x128xf32>
    %cst_310 = arith.constant dense<0.000000e+00> : vector<16x128xf32>
    %226 = tpu.matmul %225, %224, %cst_310 {dimension_numbers = #tpu.dot_dimension_numbers<[1], [0], [0], [1], [0, 0, 1, 1], [], []>} : vector<16x128xf32>, vector<128x128xf32>, vector<16x128xf32> -> vector<16x128xf32>
    %c0_311 = arith.constant 0 : index
    %c0_312 = arith.constant 0 : index
    %227 = vector.load %arg9[%c0_311, %c0_312] : memref<16x128xf32, #tpu.memory_space<vmem>>, vector<16x128xf32>
    %228 = arith.addf %227, %226 : vector<16x128xf32>
    %c0_313 = arith.constant 0 : index
    %c0_314 = arith.constant 0 : index
    %229 = vector.load %arg9[%c0_313, %c0_314] : memref<16x128xf32, #tpu.memory_space<vmem>>, vector<16x128xf32>
    tpu.vector_store %arg9[%c0_313, %c0_314], %228 {strides = array<i32>} : memref<16x128xf32, #tpu.memory_space<vmem>>, vector<16x128xf32>,
    %c0_315 = arith.constant 0 : index
    %c0_316 = arith.constant 0 : index
    %c1_317 = arith.constant 1 : index
    %c0_318 = arith.constant 0 : index
    %c0_319 = arith.constant 0 : index
    %230 = vector.load %arg8[%c0_315, %c0_316, %c1_317, %c0_318, %c0_319] : memref<1x5x2x5x256xf32, #tpu.memory_space<vmem>>, vector<1x4x1x4x256xf32>
    %231 = vector.shape_cast %230 : vector<1x4x1x4x256xf32> to vector<1x4x4x256xf32>
    %c1_320 = arith.constant 1 : index
    %c0_321 = arith.constant 0 : index
    %c0_322 = arith.constant 0 : index
    %232 = vector.load %arg4[%c1_320, %c0_321, %c0_322] : memref<3x384x128xf32, #tpu.memory_space<vmem>>, vector<1x256x128xf32>
    %233 = vector.shape_cast %232 : vector<1x256x128xf32> to vector<256x128xf32>
    %234 = vector.shape_cast %231 : vector<1x4x4x256xf32> to vector<16x256xf32>
    %cst_323 = arith.constant dense<0.000000e+00> : vector<16x128xf32>
    %235 = tpu.matmul %234, %233, %cst_323 {dimension_numbers = #tpu.dot_dimension_numbers<[1], [0], [0], [1], [0, 0, 1, 1], [], []>} : vector<16x256xf32>, vector<256x128xf32>, vector<16x128xf32> -> vector<16x128xf32>
    %c0_324 = arith.constant 0 : index
    %c0_325 = arith.constant 0 : index
    %236 = vector.load %arg9[%c0_324, %c0_325] : memref<16x128xf32, #tpu.memory_space<vmem>>, vector<16x128xf32>
    %237 = arith.addf %236, %235 : vector<16x128xf32>
    %c0_326 = arith.constant 0 : index
    %c0_327 = arith.constant 0 : index
    %238 = vector.load %arg9[%c0_326, %c0_327] : memref<16x128xf32, #tpu.memory_space<vmem>>, vector<16x128xf32>
    tpu.vector_store %arg9[%c0_326, %c0_327], %237 {strides = array<i32>} : memref<16x128xf32, #tpu.memory_space<vmem>>, vector<16x128xf32>,
    %c0_328 = arith.constant 0 : index
    %c0_329 = arith.constant 0 : index
    %c1_330 = arith.constant 1 : index
    %c1_331 = arith.constant 1 : index
    %c0_332 = arith.constant 0 : index
    %239 = vector.load %arg8[%c0_328, %c0_329, %c1_330, %c1_331, %c0_332] : memref<1x5x2x5x256xf32, #tpu.memory_space<vmem>>, vector<1x4x1x4x128xf32>
    %240 = vector.shape_cast %239 : vector<1x4x1x4x128xf32> to vector<1x4x4x128xf32>
    %c1_333 = arith.constant 1 : index
    %c256_334 = arith.constant 256 : index
    %c0_335 = arith.constant 0 : index
    %241 = vector.load %arg4[%c1_333, %c256_334, %c0_335] : memref<3x384x128xf32, #tpu.memory_space<vmem>>, vector<1x128x128xf32>
    %242 = vector.shape_cast %241 : vector<1x128x128xf32> to vector<128x128xf32>
    %243 = vector.shape_cast %240 : vector<1x4x4x128xf32> to vector<16x128xf32>
    %cst_336 = arith.constant dense<0.000000e+00> : vector<16x128xf32>
    %244 = tpu.matmul %243, %242, %cst_336 {dimension_numbers = #tpu.dot_dimension_numbers<[1], [0], [0], [1], [0, 0, 1, 1], [], []>} : vector<16x128xf32>, vector<128x128xf32>, vector<16x128xf32> -> vector<16x128xf32>
    %c0_337 = arith.constant 0 : index
    %c0_338 = arith.constant 0 : index
    %245 = vector.load %arg9[%c0_337, %c0_338] : memref<16x128xf32, #tpu.memory_space<vmem>>, vector<16x128xf32>
    %246 = arith.addf %245, %244 : vector<16x128xf32>
    %c0_339 = arith.constant 0 : index
    %c0_340 = arith.constant 0 : index
    %247 = vector.load %arg9[%c0_339, %c0_340] : memref<16x128xf32, #tpu.memory_space<vmem>>, vector<16x128xf32>
    tpu.vector_store %arg9[%c0_339, %c0_340], %246 {strides = array<i32>} : memref<16x128xf32, #tpu.memory_space<vmem>>, vector<16x128xf32>,
    %c0_341 = arith.constant 0 : index
    %c1_342 = arith.constant 1 : index
    %c0_343 = arith.constant 0 : index
    %c0_344 = arith.constant 0 : index
    %c0_345 = arith.constant 0 : index
    %248 = vector.load %arg8[%c0_341, %c1_342, %c0_343, %c0_344, %c0_345] : memref<1x5x2x5x256xf32, #tpu.memory_space<vmem>>, vector<1x4x1x4x256xf32>
    %249 = vector.shape_cast %248 : vector<1x4x1x4x256xf32> to vector<1x4x4x256xf32>
    %c2_346 = arith.constant 2 : index
    %c0_347 = arith.constant 0 : index
    %c0_348 = arith.constant 0 : index
    %250 = vector.load %arg4[%c2_346, %c0_347, %c0_348] : memref<3x384x128xf32, #tpu.memory_space<vmem>>, vector<1x256x128xf32>
    %251 = vector.shape_cast %250 : vector<1x256x128xf32> to vector<256x128xf32>
    %252 = vector.shape_cast %249 : vector<1x4x4x256xf32> to vector<16x256xf32>
    %cst_349 = arith.constant dense<0.000000e+00> : vector<16x128xf32>
    %253 = tpu.matmul %252, %251, %cst_349 {dimension_numbers = #tpu.dot_dimension_numbers<[1], [0], [0], [1], [0, 0, 1, 1], [], []>} : vector<16x256xf32>, vector<256x128xf32>, vector<16x128xf32> -> vector<16x128xf32>
    %c0_350 = arith.constant 0 : index
    %c0_351 = arith.constant 0 : index
    %254 = vector.load %arg9[%c0_350, %c0_351] : memref<16x128xf32, #tpu.memory_space<vmem>>, vector<16x128xf32>
    %255 = arith.addf %254, %253 : vector<16x128xf32>
    %c0_352 = arith.constant 0 : index
    %c0_353 = arith.constant 0 : index
    %256 = vector.load %arg9[%c0_352, %c0_353] : memref<16x128xf32, #tpu.memory_space<vmem>>, vector<16x128xf32>
    tpu.vector_store %arg9[%c0_352, %c0_353], %255 {strides = array<i32>} : memref<16x128xf32, #tpu.memory_space<vmem>>, vector<16x128xf32>,
    %c0_354 = arith.constant 0 : index
    %c1_355 = arith.constant 1 : index
    %c0_356 = arith.constant 0 : index
    %c1_357 = arith.constant 1 : index
    %c0_358 = arith.constant 0 : index
    %257 = vector.load %arg8[%c0_354, %c1_355, %c0_356, %c1_357, %c0_358] : memref<1x5x2x5x256xf32, #tpu.memory_space<vmem>>, vector<1x4x1x4x128xf32>
    %258 = vector.shape_cast %257 : vector<1x4x1x4x128xf32> to vector<1x4x4x128xf32>
    %c2_359 = arith.constant 2 : index
    %c256_360 = arith.constant 256 : index
    %c0_361 = arith.constant 0 : index
    %259 = vector.load %arg4[%c2_359, %c256_360, %c0_361] : memref<3x384x128xf32, #tpu.memory_space<vmem>>, vector<1x128x128xf32>
    %260 = vector.shape_cast %259 : vector<1x128x128xf32> to vector<128x128xf32>
    %261 = vector.shape_cast %258 : vector<1x4x4x128xf32> to vector<16x128xf32>
    %cst_362 = arith.constant dense<0.000000e+00> : vector<16x128xf32>
    %262 = tpu.matmul %261, %260, %cst_362 {dimension_numbers = #tpu.dot_dimension_numbers<[1], [0], [0], [1], [0, 0, 1, 1], [], []>} : vector<16x128xf32>, vector<128x128xf32>, vector<16x128xf32> -> vector<16x128xf32>
    %c0_363 = arith.constant 0 : index
    %c0_364 = arith.constant 0 : index
    %263 = vector.load %arg9[%c0_363, %c0_364] : memref<16x128xf32, #tpu.memory_space<vmem>>, vector<16x128xf32>
    %264 = arith.addf %263, %262 : vector<16x128xf32>
    %c0_365 = arith.constant 0 : index
    %c0_366 = arith.constant 0 : index
    %265 = vector.load %arg9[%c0_365, %c0_366] : memref<16x128xf32, #tpu.memory_space<vmem>>, vector<16x128xf32>
    tpu.vector_store %arg9[%c0_365, %c0_366], %264 {strides = array<i32>} : memref<16x128xf32, #tpu.memory_space<vmem>>, vector<16x128xf32>,
    %c0_367 = arith.constant 0 : index
    %c0_368 = arith.constant 0 : index
    %266 = vector.load %arg9[%c0_367, %c0_368] : memref<16x128xf32, #tpu.memory_space<vmem>>, vector<16x128xf32>
    %c0_369 = arith.constant 0 : index
    %c0_370 = arith.constant 0 : index
    %267 = vector.load %arg5[%c0_369, %c0_370] : memref<1x128xf32, #tpu.memory_space<vmem>>, vector<1x128xf32>
    %268 = vector.broadcast %267 : vector<1x128xf32> to vector<16x128xf32>
    %269 = arith.addf %266, %268 : vector<16x128xf32>
    %270 = vector.shape_cast %269 : vector<16x128xf32> to vector<1x4x4x128xf32>
    %c0_371 = arith.constant 0 : index
    %c0_372 = arith.constant 0 : index
    %c0_373 = arith.constant 0 : index
    %c0_374 = arith.constant 0 : index
    %271 = vector.load %arg7[%c0_371, %c0_372, %c0_373, %c0_374] : memref<1x4x4x128xf32, #tpu.memory_space<vmem>>, vector<1x4x4x128xf32>
    tpu.vector_store %arg7[%c0_371, %c0_372, %c0_373, %c0_374], %270 {strides = array<i32>} : memref<1x4x4x128xf32, #tpu.memory_space<vmem>>, vector<1x4x4x128xf32>,
    return
  }
  func.func @transform_0(%arg0: i32) -> (i32, i32, i32, i32, i32) {
    %c0_i32 = arith.constant 0 : i32
    %c0_i32_0 = arith.constant 0 : i32
    %c0_i32_1 = arith.constant 0 : i32
    %c0_i32_2 = arith.constant 0 : i32
    %c0_i32_3 = arith.constant 0 : i32
    return %arg0, %c0_i32, %c0_i32_0, %c0_i32_1, %c0_i32_2 : i32, i32, i32, i32, i32
  }
  func.func @transform_1(%arg0: i32) -> (i32, i32, i32) {
    %c0_i32 = arith.constant 0 : i32
    %c0_i32_0 = arith.constant 0 : i32
    %c0_i32_1 = arith.constant 0 : i32
    %c0_i32_2 = arith.constant 0 : i32
    return %c0_i32, %c0_i32_0, %c0_i32_1 : i32, i32, i32
  }
  func.func @transform_2(%arg0: i32) -> (i32, i32) {
    %c0_i32 = arith.constant 0 : i32
    %c0_i32_0 = arith.constant 0 : i32
    %c0_i32_1 = arith.constant 0 : i32
    return %c0_i32, %c0_i32_0 : i32, i32
  }
  func.func @transform_3(%arg0: i32) -> (i32, i32, i32) {
    %c0_i32 = arith.constant 0 : i32
    %c0_i32_0 = arith.constant 0 : i32
    %c0_i32_1 = arith.constant 0 : i32
    %c0_i32_2 = arith.constant 0 : i32
    return %c0_i32, %c0_i32_0, %c0_i32_1 : i32, i32, i32
  }
  func.func @transform_4(%arg0: i32) -> (i32, i32) {
    %c0_i32 = arith.constant 0 : i32
    %c0_i32_0 = arith.constant 0 : i32
    %c0_i32_1 = arith.constant 0 : i32
    return %c0_i32, %c0_i32_0 : i32, i32
  }
  func.func @transform_5(%arg0: i32) -> (i32, i32, i32, i32, i32) {
    %c0_i32 = arith.constant 0 : i32
    %c0_i32_0 = arith.constant 0 : i32
    %c0_i32_1 = arith.constant 0 : i32
    %c0_i32_2 = arith.constant 0 : i32
    %c0_i32_3 = arith.constant 0 : i32
    return %arg0, %c0_i32, %c0_i32_0, %c0_i32_1, %c0_i32_2 : i32, i32, i32, i32, i32
  }
  func.func @transform_6(%arg0: i32) -> (i32, i32, i32, i32) {
    %c0_i32 = arith.constant 0 : i32
    %c0_i32_0 = arith.constant 0 : i32
    %c0_i32_1 = arith.constant 0 : i32
    %c0_i32_2 = arith.constant 0 : i32
    return %arg0, %c0_i32, %c0_i32_0, %c0_i32_1 : i32, i32, i32, i32
  }
}

</mosaic_0001>

<bundles_post_ra>
// kernel: tpu_custom_call.1
= control target key start
LH: loop header
LB: loop body
LE: loop exit
PB: predicated region body
PF: predicated region fallthrough
CT: control target
= control target key end

     0   :  { %s6870_s0 = inlined_call_operand.vmem [shape: f32[2,5,4,5,512], index: 0, kind: input, shape index: {}]   ;;  %s6871_s1 = inlined_call_operand.vmem [shape: f32[3,384,128], index: 1, kind: input, shape index: {}]   ;;  %s6872_s2 = inlined_call_operand.vmem [shape: f32[1,128], index: 2, kind: input, shape index: {}]   ;;  %s6873_s3 = inlined_call_operand.hbm [shape: f32[3,384,128], index: 3, kind: input, shape index: {}]   ;;  %s6874_s4 = inlined_call_operand.vmem [shape: f32[1,128], index: 4, kind: input, shape index: {}]   ;;  %s6875_s5 = inlined_call_operand.hbm [shape: f32[2,4,2,4,256], index: 5, kind: output, shape index: {0}]   ;;  %s6876_s6 = inlined_call_operand.hbm [shape: f32[2,4,4,128], index: 6, kind: output, shape index: {1}]  }
   0x1   :  { %7006 = sst [smem:[#allocation87_spill]] %s6870_s0 }
   0x2   :  { %12 = vsyncpa [#allocation5], 0 }
   0x3   :  { %13 = vsyncpa [#allocation6], 0 }
   0x4   :  { %15 = vsyncpa [#allocation6 + $0x1], 0 }
   0x5   :  { %16 = vsyncpa [#allocation9], 0 }
   0x6   :  { %18 = vsyncpa [#allocation9 + $0x1], 0  ;;  %s4413_s21 = smov 0   ;;  %s4415_s22 = smov 0  }
   0x7   :  { %s4417_s23 = smov 0   ;;  %s4419_s24 = smov 0  }
   0x8 LB: > { %s4434_s25 = sadd.s32 4294967295, %s4368_s24   ;;  %s3553_s26 = sadd.s32 4294967294, %s4368_s24   ;;  %s4368_s24 = sphi %s4419_s24, %s7271_s24   ;;  %s4364_s23 = sphi %s4417_s23, %s7270_s23   ;;  %s4360_s22 = sphi %s4415_s22, %s7269_s22   ;;  %s4356_s21 = sphi %s4413_s21, %s7268_s21  }
   0x9   : > { %s4438_s27 = sadd.s32 1, %s4368_s24   ;;  %s141_s28 = sadd.s32 1, %s4364_s23 }
   0xa   : > { %s138_s29 = ssub.s32 %s4368_s24, %s4438_s27  ;;  %p151_p0 = scmp.ne.s32.totalorder %s4364_s23, %s4360_s22 }
   0xb   : > { %p139_p1 = scmp.eq.s32.totalorder %s138_s29, 0  ;;  %p152_p2 = scmp.eq.s32.totalorder %s4434_s25, 1 }
   0xc   : > { %p157_p3 = scmp.ne.s32.totalorder %s4360_s22, %s4356_s21  ;;  %p158_p4 = scmp.eq.s32.totalorder %s3553_s26, 1 }
   0xd   : > { %s4449_s30 = scalar_select %p139_p1, %s4364_s23, %s141_s28  }
   0xe   : > { %p4451_p5 = por %p152_p2, %p151_p0  ;;  %p4455_p6 = por %p158_p4, %p157_p3 }
   0xf   : > { %p3554_p7 = scmp.ge.s32.totalorder %s4368_s24, 1  ;;  %p191_p8 = scmp.lt.s32.totalorder %s4368_s24, 3 }
  0x10   : > { %p4192_p9 = scmp.eq.s32.totalorder %s4434_s25, 0  ;;  %s208_s11 = sshll.u32 %s6873_s3, 4  ;;  %s209_s11 = int_to_ptr.hbm [resolvable:$true] %s208_s11 }
  0x11   : > { %p192_p10 = pnand %p3554_p7, %p191_p8  ;;  %s4370_s12 = smov [#allocation4]  }
  0x12   : > { %s210_s13 = sshll.u32 %s4370_s12, 4  ;;  %s4371_s14 = smov 128   ;;  %s211_s13 = int_to_ptr.vmem [resolvable:$true] %s210_s13 }
  0x13   : > { %p4181_p11 = pneg %p192_p10  ;;  %s4372_s15 = smov 8  }
  0x14   : > { %237 = sbr.rel (%p192_p10) target bundleno = 836 (0x344), region = 40 }
  0x15   : > { %p4182_p12 = pnand %p4192_p9, %p4181_p11 }
  0x17   : > { %4184 = dma.hbm_to_vmem [thread:$0]  (!%p4182_p12), %s209_s11, 18432, %s211_s13, [#allocation5], %s4371_s14, %s4371_s14, %s4372_s15  }
  0x19   : > { %4343 = dma.done.wait (%p4192_p9), [#allocation5], 18432  }
  0x1a   : > { %4345 = vsyncadd (%p4192_p9), [#allocation5], 4294948864  ;;  %v4474_v0 = vld [vmem:[%s6871_s1 + $0x78] sm:$0xff]  ;;  %v4479_v1 = vld [vmem:[%s6871_s1 + $0x70] sm:$0xff]  ;;  %p273_p13 = scmp.lt.s32.totalorder %s4434_s25, 1  ;;  %s7021_s0 = sld [smem:[#allocation87_spill]] }
  0x1b   : > { %v4484_v2 = vld [vmem:[%s6871_s1 + $0xf8] sm:$0xff]  ;;  %398 = vmatpush.msra.mxu0 %v4474_v0  ;;  %v4496_v4 = vld [vmem:[%s6871_s1 + $0xf0] sm:$0xff]  ;;  %v4502_v5 = vld [vmem:[%s6871_s1 + $0x68] sm:$0xff]  ;;  %vm366_vm0 = vcmask 1043456   ;;  %s5658_s16 = sand.u32 1, %s4360_s22   ;;  %s4154_s11 = sshll.u32 %s4434_s25, 6 }
  0x1c   : > { %421 = vmatpush.msra.mxu1 %v4484_v2  ;;  %v4491_v3 = vld [vmem:[%s6871_s1 + $0x178] sm:$0xff]  ;;  %v4507_v6 = vld [vmem:[%s6871_s1 + $0x170] sm:$0xff]  ;;  %v4512_v7 = vld [vmem:[%s6871_s1 + $0xe8] sm:$0xff]  ;;  %s4667_s28 = scalar_select %p273_p13, %s4434_s25, 1 }
  0x1d   : > { %444 = vmatpush.msra.mxu2 %v4491_v3  ;;  %399 = vmatpush.msra.mxu0 %v4479_v1  ;;  %v4519_v8 = vld [vmem:[%s6871_s1 + $0x168] sm:$0xff]  ;;  %v4525_v9 = vld [vmem:[%s6871_s1 + $0x60] sm:$0xff]  ;;  %v4543_v12 = vld [vmem:[%s6871_s1 + $0x58] sm:$0xff]  ;;  %s3559_s26 = sshll.u32 %s5658_s16, 6  ;;  %s3425_s14 = scalar_lea.hbm %s6875_s5, %s4154_s11 }
  0x1e   : > { %422 = vmatpush.msra.mxu1 %v4496_v4  ;;  %v4530_v10 = vld [vmem:[%s6871_s1 + $0xe0] sm:$0xff]  ;;  %v4548_v13 = vld [vmem:[%s6871_s1 + $0xd8] sm:$0xff]  ;;  %v4561_v15 = vld [vmem:[%s6871_s1 + $0x50] sm:$0xff]  ;;  %s4172_s10 = smul.u32 640, %s4667_s28  ;;  %s5704_s20 = scalar_lea.vmem [#allocation7], %s3559_s26 }
  0x1f   : > { %445 = vmatpush.msra.mxu2 %v4507_v6  ;;  %400 = vmatpush.msra.mxu0 %v4502_v5  ;;  %v4537_v11 = vld [vmem:[%s6871_s1 + $0x160] sm:$0xff]  ;;  %v4555_v14 = vld [vmem:[%s6871_s1 + $0x158] sm:$0xff]  ;;  %v4566_v16 = vld [vmem:[%s6871_s1 + $0xd0] sm:$0xff]  ;;  %s3426_s28 = sshll.u32 %s5704_s20, 4  ;;  %s3428_s17 = sshll.u32 %s3425_s14, 4  ;;  %s3427_s28 = int_to_ptr.vmem [resolvable:$true] %s3426_s28  ;;  %s3429_s17 = int_to_ptr.hbm [resolvable:$true] %s3428_s17 }
  0x20   : > { %423 = vmatpush.msra.mxu1 %v4512_v7  ;;  %v4573_v17 = vld [vmem:[%s6871_s1 + $0x150] sm:$0xff]  ;;  %v4579_v18 = vld [vmem:[%s6871_s1 + $0x48] sm:$0xff]  ;;  %v4596_v21 = vld [vmem:[%s6871_s1 + $0x1f8] sm:$0xff]  ;;  %s4769_s15 = scalar_lea.vmem %s7021_s0, %s4172_s10  ;;  %s4284_s18 = sshra.s32 %s3429_s17, 4  ;;  %s4285_s18 = int_to_ptr.hbm [resolvable:$true] %s4284_s18 }
  0x21   : > { %446 = vmatpush.msra.mxu2 %v4519_v8  ;;  %401 = vmatpush.msra.mxu0 %v4525_v9  ;;  %v4584_v19 = vld [vmem:[%s6871_s1 + $0xc8] sm:$0xff]  ;;  %v4602_v22 = vld [vmem:[%s6871_s1 + $0x40] sm:$0xff]  ;;  %v4613_v24 = vld [vmem:[%s6871_s1 + $0x1f0] sm:$0xff]  ;;  %s4286_s19 = scalar_lea.hbm %s4285_s18, 64  ;;  %s4290_s26 = scalar_lea.hbm %s6875_s5, 128 }
  0x22   : > { %424 = vmatpush.msra.mxu1 %v4530_v10  ;;  %v4591_v20 = vld [vmem:[%s6871_s1 + $0x148] sm:$0xff]  ;;  %v4607_v23 = vld [vmem:[%s6871_s1 + $0xc0] sm:$0xff]  ;;  %578 = vmatpush.msra.mxu3 %v4596_v21  ;;  %v4627_v26 = vld [vmem:[%s6871_s1 + $0x38] sm:$0xff]  ;;  %p4287_p0 = scmp.ne.s32.totalorder %s4285_s18, %s4286_s19  ;;  %p4291_p3 = scmp.lt.s32.totalorder %s4285_s18, %s6875_s5 }
  0x23   : > { %447 = vmatpush.msra.mxu2 %v4537_v11  ;;  %402 = vmatpush.msra.mxu0 %v4543_v12  ;;  %7009 = vst [vmem:[#allocation13_spill] sm:$0xff] %v4591_v20  ;;  %v4621_v25 = vld [vmem:[%s6871_s1 + $0x140] sm:$0xff]  ;;  %v4632_v27 = vld [vmem:[%s6871_s1 + $0xb8] sm:$0xff]  ;;  %v4638_v28 = vld [vmem:[%s6871_s1 + $0x1e8] sm:$0xff]  ;;  %p4292_p4 = scmp.lt.s32.totalorder %s4290_s26, %s4286_s19 }
  0x24   : > { %425 = vmatpush.msra.mxu1 %v4548_v13  ;;  %7010 = vst [vmem:[#allocation14_spill] sm:$0xff] %v4621_v25  ;;  %579 = vmatpush.msra.mxu3 %v4613_v24  ;;  %v4645_v29 = vld [vmem:[%s6871_s1 + $0x138] sm:$0xff]  ;;  %v4650_v30 = vld [vmem:[%s6871_s1 + $0x1e0] sm:$0xff]  ;;  %v4656_v31 = vld [vmem:[%s6871_s1 + $0x30] sm:$0xff]  ;;  %p4288_p1 = pnand %p4287_p0, %p4451_p5 }
  0x25   : > { %448 = vmatpush.msra.mxu2 %v4555_v14  ;;  %403 = vmatpush.msra.mxu0 %v4561_v15  ;;  %7011 = vst [vmem:[#allocation15_spill] sm:$0xff] %v4645_v29  ;;  %v4661_v32 = vld [vmem:[%s6871_s1 + $0xb0] sm:$0xff]  ;;  %v4679_v34 = vld [vmem:[%s6871_s1 + $0x1d8] sm:$0xff]  ;;  %v4685_v35 = vld [vmem:[%s6871_s1 + $0x28] sm:$0xff]  ;;  %p4293_p7 = por %p4292_p4, %p4291_p3 }
  0x26   : > { %426 = vmatpush.msra.mxu1 %v4566_v16  ;;  %7012 = vst [vmem:[#allocation16_spill] sm:$0xff] %v4650_v30  ;;  %580 = vmatpush.msra.mxu3 %v4638_v28  ;;  %v4674_v33 = vld [vmem:[%s6871_s1 + $0x130] sm:$0xff]  ;;  %v4690_v36 = vld [vmem:[%s6871_s1 + $0xa8] sm:$0xff]  ;;  %v4709_v39 = vld [vmem:[%s6871_s1 + $0x20] sm:$0xff]  ;;  %p4289_p2 = pneg %p4288_p1 }
  0x27   : > { %449 = vmatpush.msra.mxu2 %v4573_v17  ;;  %404 = vmatpush.msra.mxu0 %v4579_v18  ;;  %7013 = vst [vmem:[#allocation17_spill] sm:$0xff] %v4674_v33  ;;  %v4698_v37 = vld [vmem:[%s6871_s1 + $0x128] sm:$0xff]  ;;  %v4703_v38 = vld [vmem:[%s6871_s1 + $0x1d0] sm:$0xff]  ;;  %v4714_v40 = vld [vmem:[%s6871_s1 + $0xa0] sm:$0xff] }
  0x28   : > { %427 = vmatpush.msra.mxu1 %v4584_v19  ;;  %7014 = vst [vmem:[#allocation18_spill] sm:$0xff] %v4679_v34  ;;  %581 = vmatpush.msra.mxu3 %v4650_v30  ;;  %v4723_v41 = vld [vmem:[%s6871_s1 + $0x120] sm:$0xff]  ;;  %v4728_v42 = vld [vmem:[%s6871_s1 + $0x1c8] sm:$0xff]  ;;  %v4734_v43 = vld [vmem:[%s6871_s1 + $0x18] sm:$0xff]  ;;  %p4294_p8 = pnand %p4293_p7, %p4289_p2 }
  0x29   : > { %450 = vmatpush.msra.mxu2 %v4591_v20  ;;  %405 = vmatpush.msra.mxu0 %v4602_v22  ;;  %7015 = vst [vmem:[#allocation19_spill] sm:$0xff] %v4698_v37  ;;  %v4739_v44 = vld [vmem:[%s6871_s1 + $0x98] sm:$0xff]  ;;  %v4752_v46 = vld [vmem:[%s6871_s1 + $0x1c0] sm:$0xff]  ;;  %v4758_v47 = vld [vmem:[%s6871_s1 + $0x10] sm:$0xff] }
  0x2a   : > { %428 = vmatpush.msra.mxu1 %v4607_v23  ;;  %7016 = vst [vmem:[#allocation20_spill] sm:$0xff] %v4703_v38  ;;  %582 = vmatpush.msra.mxu3 %v4679_v34  ;;  %v4747_v45 = vld [vmem:[%s6871_s1 + $0x118] sm:$0xff]  ;;  %v4763_v48 = vld [vmem:[%s6871_s1 + $0x90] sm:$0xff]  ;;  %v4776_v49 = vld [vmem:[%s6871_s1 + $0x8] sm:$0xff] }
  0x2b   : > { %451 = vmatpush.msra.mxu2 %v4621_v25  ;;  %406 = vmatpush.msra.mxu0 %v4627_v26  ;;  %7017 = vst [vmem:[#allocation21_spill] sm:$0xff] %v4723_v41  ;;  %v4781_v50 = vld [vmem:[%s6871_s1 + $0x110] sm:$0xff]  ;;  %v4786_v51 = vld [vmem:[%s6871_s1 + $0x1b8] sm:$0xff]  ;;  %v4792_v52 = vld [vmem:[%s6871_s1] sm:$0xff] }
  0x2c   : > { %429 = vmatpush.msra.mxu1 %v4632_v27  ;;  %7018 = vst [vmem:[#allocation22_spill] sm:$0xff] %v4728_v42  ;;  %583 = vmatpush.msra.mxu3 %v4703_v38  ;;  %v4797_v53 = vld [vmem:[%s6871_s1 + $0x88] sm:$0xff]  ;;  %v4810_v55 = vld [vmem:[%s6871_s1 + $0x1b0] sm:$0xff]  ;;  %v290_v56 = vld [vmem:[%s4769_s15] sm:$0xf] }
  0x2d   : > { %452 = vmatpush.msra.mxu2 %v4645_v29  ;;  %407 = vmatpush.msra.mxu0 %v4656_v31  ;;  %7019 = vst [vmem:[#allocation23_spill] sm:$0xff] %v4747_v45  ;;  %v4802_v54 = vld [vmem:[%s6871_s1 + $0x108] sm:$0xff]  ;;  %v4818_v58 = vld [vmem:[%s6871_s1 + $0x80] sm:$0xff]  ;;  %v4828_v62 = vld [vmem:[%s6871_s1 + $0x278] sm:$0xff] }
  0x2e   : > { %430 = vmatpush.msra.mxu1 %v4661_v32  ;;  %7020 = vst [vmem:[#allocation24_spill] sm:$0xff] %v4752_v46  ;;  %584 = vmatpush.msra.mxu3 %v4728_v42  ;;  %v291_v57 = vld [vmem:[%s4769_s15 + $0x8] sm:$0xf]  ;;  %v293_v59 = vld [vmem:[%s4769_s15 + $0x80] sm:$0xf]  ;;  %v4911_v42 = vld [vmem:[%s6871_s1 + $0x258] sm:$0xff] }
  0x2f   : > { %453 = vmatpush.msra.mxu2 %v4674_v33  ;;  %408 = vmatpush.msra.mxu0 %v4685_v35  ;;  %7022 = vst [vmem:[#allocation25_spill] sm:$0xff] %v4781_v50  ;;  %v294_v60 = vld [vmem:[%s4769_s15 + $0x88] sm:$0xf]  ;;  %v362_v61 = vrot.slane %v291_v57, 4  ;;  %v4833_v63 = vld [vmem:[%s6871_s1 + $0x100] sm:$0xff]  ;;  %v4839_v57 = vld [vmem:[%s6871_s1 + $0x2f8] sm:$0xff] }
  0x30   : > { %431 = vmatpush.msra.mxu1 %v4690_v36  ;;  %7023 = vst [vmem:[#allocation26_spill] sm:$0xff] %v4786_v51  ;;  %585 = vmatpush.msra.mxu3 %v4752_v46  ;;  %v299_v46 = vld [vmem:[%s4769_s15 + $0x180] sm:$0xf]  ;;  %v3563_v25 = vld [vmem:[%s4769_s15 + $0x28] sm:$0xf] }
  0x31   : > { %454 = vmatpush.msra.mxu2 %v4698_v37  ;;  %409 = vmatpush.msra.mxu0 %v4709_v39  ;;  %7024 = vst [vmem:[#allocation27_spill] sm:$0xff] %v4802_v54  ;;  %v300_v37 = vld [vmem:[%s4769_s15 + $0x188] sm:$0xf]  ;;  %v4916_v33 = vld [vmem:[%s6871_s1 + $0x2e0] sm:$0xff]  ;;  %v543_v20 = vrot.slane %v3563_v25, 4 }
  0x32   : > { %432 = vmatpush.msra.mxu1 %v4714_v40  ;;  %7025 = vst [vmem:[#allocation28_spill] sm:$0xff] %v4810_v55  ;;  %586 = vmatpush.msra.mxu3 %v4786_v51  ;;  %v367_v51 = vsel %vm366_vm0, %v290_v56, %v362_v61  ;;  %v4871_v61 = vld [vmem:[%s6871_s1 + $0x2f0] sm:$0xff]  ;;  %v365_v29 = vrot.slane %v300_v37, 4  ;;  %v3562_v34 = vld [vmem:[%s4769_s15 + $0x20] sm:$0xf] }
  0x33   : > { %455 = vmatpush.msra.mxu2 %v4723_v41  ;;  %410 = vmatpush.msra.mxu0 %v4734_v43  ;;  %7026 = vst [vmem:[#allocation29_spill] sm:$0xff] %v4833_v63  ;;  %v4876_v41 = vld [vmem:[%s6871_s1 + $0x370] sm:$0xff]  ;;  %v3566_v30 = vld [vmem:[%s4769_s15 + $0xa8] sm:$0xf] }
  0x34   : > { %433 = vmatpush.msra.mxu1 %v4739_v44  ;;  %587 = vmatpush.msra.mxu3 %v4810_v55  ;;  %v4863_v55 = vld [vmem:[%s6871_s1 + $0x1a8] sm:$0xff]  ;;  %371 = vst [vmem:[#allocation1] ss:$2 sm:$0xff] %v367_v51  ;;  %v4888_v51 = vld [vmem:[%s6871_s1 + $0x260] sm:$0xff]  ;;  %v544_v25 = vrot.slane %v3566_v30, 4  ;;  %v3644_v30 = vld [vmem:[%s6871_s1 + $0x350] sm:$0xff] }
  0x35   : > { %456 = vmatpush.msra.mxu2 %v4747_v45  ;;  %411 = vmatpush.msra.mxu0 %v4758_v47  ;;  %v4844_v45 = vld [vmem:[%s6871_s1 + $0x378] sm:$0xff]  ;;  %7030 = vst [vmem:[#allocation33_spill] sm:$0xff] %v4863_v55 }
  0x36   : > { %434 = vmatpush.msra.mxu1 %v4763_v48  ;;  %7027 = vst [vmem:[#allocation30_spill] sm:$0xff] %v4844_v45  ;;  %588 = vmatpush.msra.mxu3 %v4863_v55  ;;  %v4921_v55 = vld [vmem:[%s6871_s1 + $0x198] sm:$0xff] }
  0x37   : > { %457 = vmatpush.msra.mxu2 %v4781_v50  ;;  %412 = vmatpush.msra.mxu0 %v4776_v49  ;;  %v363_v50 = vrot.slane %v294_v60, 4  ;;  %v4853_v60 = vld [vmem:[%s6871_s1 + $0x270] sm:$0xff]  ;;  %7031 = vst [vmem:[#allocation34_spill] sm:$0xff] %v4876_v41 }
  0x38   : > { %435 = vmatpush.msra.mxu1 %v4797_v53  ;;  %7028 = vst [vmem:[#allocation31_spill] sm:$0xff] %v4853_v60 }
  0x39   : > { %458 = vmatpush.msra.mxu2 %v4802_v54  ;;  %413 = vmatpush.msra.mxu0 %v4792_v52  ;;  %v4858_v54 = vld [vmem:[%s6871_s1 + $0x268] sm:$0xff]  ;;  %v368_v56 = vsel %vm366_vm0, %v293_v59, %v363_v50  ;;  %7032 = vst [vmem:[#allocation35_spill] sm:$0xff] %v4888_v51 }
  0x3a   : > { %436 = vmatpush.msra.mxu1 %v4818_v58  ;;  %7029 = vst [vmem:[#allocation32_spill] sm:$0xff] %v4858_v54  ;;  %v4881_v50 = vld [vmem:[%s6871_s1 + $0x2e8] sm:$0xff] }
  0x3b   : > { %601 = vmatpush.msrb.mxu0 %v4828_v62  ;;  %459 = vmatpush.msra.mxu2 %v4833_v63  ;;  %373 = vst [vmem:[#allocation1 + $0x1] ss:$2 sm:$0xff] %v368_v56  ;;  %v4893_v59 = vld [vmem:[%s6871_s1 + $0x368] sm:$0xff]  ;;  %v4898_v63 = vld [vmem:[%s6871_s1 + $0x1a0] sm:$0xff] }
  0x3c   : > { %624 = vmatpush.msrb.mxu1 %v4839_v57  ;;  %7033 = vst [vmem:[#allocation36_spill] sm:$0xff] %v4893_v59  ;;  %v296_v56 = vld [vmem:[%s4769_s15 + $0x100] sm:$0xf]  ;;  %589 = vmatpush.msra.mxu3 %v4898_v63 }
  0x3d   : > { %762 = vmatpush.msrb.mxu2 %v4844_v45  ;;  %7034 = vst [vmem:[#allocation37_spill] sm:$0xff] %v4898_v63  ;;  %602 = vmatpush.msrb.mxu0 %v4853_v60  ;;  %v297_v45 = vld [vmem:[%s4769_s15 + $0x108] sm:$0xf]  ;;  %v3565_v60 = vld [vmem:[%s4769_s15 + $0xa0] sm:$0xf]  ;;  %v4947_v63 = vld [vmem:[%s6871_s1 + $0x2d8] sm:$0xff] }
  0x3e   : > { %625 = vmatpush.msrb.mxu1 %v4871_v61  ;;  %7035 = vst [vmem:[#allocation38_spill] sm:$0xff] %v4911_v42  ;;  %v364_v38 = vrot.slane %v297_v45, 4  ;;  %v4937_v45 = vld [vmem:[%s6871_s1 + $0x250] sm:$0xff]  ;;  %590 = vmatpush.msra.mxu3 %v4921_v55 }
  0x3f   : > { %763 = vmatpush.msrb.mxu2 %v4876_v41  ;;  %7036 = vst [vmem:[#allocation39_spill] sm:$0xff] %v4916_v33  ;;  %603 = vmatpush.msrb.mxu0 %v4858_v54  ;;  %v4927_v41 = vld [vmem:[%s6871_s1 + $0x360] sm:$0xff]  ;;  %v370_v54 = vsel %vm366_vm0, %v299_v46, %v365_v29  ;;  %v4958_v29 = vld [vmem:[%s6871_s1 + $0x190] sm:$0xff] }
  0x40   : > { %7037 = vst [vmem:[#allocation40_spill] sm:$0xff] %v4921_v55  ;;  %626 = vmatpush.msrb.mxu1 %v4881_v50  ;;  %v369_v37 = vsel %vm366_vm0, %v296_v56, %v364_v38  ;;  %v547_v56 = vsel %vm366_vm0, %v3562_v34, %v543_v20  ;;  %v4967_v55 = vld [vmem:[%s6871_s1 + $0x2d0] sm:$0xff]  ;;  %v4979_v20 = vld [vmem:[%s6871_s1 + $0x248] sm:$0xff]  ;;  %591 = vmatpush.msra.mxu3 %v4958_v29 }
  0x41   : > { %7038 = vst [vmem:[#allocation41_spill] sm:$0xff] %v4927_v41  ;;  %764 = vmatpush.msrb.mxu2 %v4893_v59  ;;  %604 = vmatpush.msrb.mxu0 %v4888_v51  ;;  %v4952_v59 = vld [vmem:[%s6871_s1 + $0x358] sm:$0xff]  ;;  %v4984_v34 = vld [vmem:[%s6871_s1 + $0x188] sm:$0xff] }
  0x42   : > { %7039 = vst [vmem:[#allocation42_spill] sm:$0xff] %v4937_v45  ;;  %627 = vmatpush.msrb.mxu1 %v4916_v33  ;;  %v386_v38 = vld.sshfl [vmem:[#allocation1] sm:$0xff pattern:$0x75316420]  ;;  %592 = vmatpush.msra.mxu3 %v4984_v34  ;;  %v3569_v51 = vld [vmem:[%s4769_s15 + $0x128] sm:$0xf] }
  0x43   : > { %7040 = vst [vmem:[#allocation43_spill] sm:$0xff] %v4947_v63  ;;  %765 = vmatpush.msrb.mxu2 %v4927_v41  ;;  %v387_v46 = vld.sshfl [vmem:[#allocation1 + $0x8] sm:$0xff pattern:$0x75316420]  ;;  %605 = vmatpush.msrb.mxu0 %v4911_v42  ;;  %v292_v41 = vld [vmem:[%s4769_s15 + $0x10] sm:$0xf] }
  0x44   : > { %7041 = vst [vmem:[#allocation44_spill] sm:$0xff] %v4952_v59  ;;  %437 = vmatmul.f32.vlgmr.msra.gmra.mxu1 %v387_v46  ;;  %v295_v46 = vld [vmem:[%s4769_s15 + $0x90] sm:$0xf]  ;;  %414 = vmatmul.f32.vlgmr.msra.gmra.mxu0 %v386_v38  ;;  %v5038_v38 = vld [vmem:[%s6871_s1 + $0x3f8] sm:$0xff] }
  0x45   : > { %7042 = vst [vmem:[#allocation45_spill] sm:$0xff] %v4958_v29  ;;  %628 = vmatpush.msrb.mxu1 %v4947_v63  ;;  %766 = vmatpush.msrb.mxu2 %v4952_v59  ;;  %v5044_v59 = vld [vmem:[%s6871_s1 + $0x230] sm:$0xff]  ;;  %v3568_v63 = vld [vmem:[%s4769_s15 + $0x120] sm:$0xf] }
  0x46   : > { %379 = vst [vmem:[#allocation1 + $0x20] ss:$2 sm:$0xff] %v369_v37  ;;  %v548_v37 = vsel %vm366_vm0, %v3565_v60, %v544_v25  ;;  %606 = vmatpush.msrb.mxu0 %v4937_v45  ;;  %v4998_v60 = vld [vmem:[%s6871_s1 + $0x240] sm:$0xff]  ;;  %v5003_v25 = vld [vmem:[%s6871_s1 + $0x348] sm:$0xff]  ;;  %v5062_v29 = vld [vmem:[%s6871_s1 + $0x2b0] sm:$0xff] }
  0x47   : > { %7043 = vst [vmem:[#allocation46_spill] sm:$0xff] %v4967_v55  ;;  %629 = vmatpush.msrb.mxu1 %v4967_v55  ;;  %767 = vmatpush.msrb.mxu2 %v3644_v30  ;;  %v5015_v30 = vld [vmem:[%s6871_s1 + $0x180] sm:$0xff]  ;;  %v301_v42 = vld [vmem:[%s4769_s15 + $0x190] sm:$0xf] }
  0x48   : > { %381 = vst [vmem:[#allocation1 + $0x21] ss:$2 sm:$0xff] %v370_v54  ;;  %v4991_v54 = vld [vmem:[%s6871_s1 + $0x2c8] sm:$0xff]  ;;  %607 = vmatpush.msrb.mxu0 %v4979_v20  ;;  %593 = vmatpush.msra.mxu3 %v5015_v30  ;;  %v5108_v55 = vld [vmem:[%s6871_s1 + $0x320] sm:$0xff]  ;;  %v3570_v33 = vld [vmem:[%s4769_s15 + $0x130] sm:$0xf] }
  0x49   : > { %7044 = vst [vmem:[#allocation47_spill] sm:$0xff] %v4979_v20  ;;  %630 = vmatpush.msrb.mxu1 %v4991_v54  ;;  %768 = vmatpush.msrb.mxu2 %v5003_v25 }
  0x4a   : > { %7045 = vst [vmem:[#allocation48_spill] sm:$0xff] %v4984_v34  ;;  %608 = vmatpush.msrb.mxu0 %v4998_v60  ;;  %v5057_v34 = vld [vmem:[%s6871_s1 + $0x228] sm:$0xff]  ;;  %785 = vmatpush.msrb.mxu3 %v5038_v38 }
  0x4b   : > { %551 = vst [vmem:[#allocation1] ss:$2 sm:$0xff] %v547_v56  ;;  %v5009_v56 = vld [vmem:[%s6871_s1 + $0x2c0] sm:$0xff] }
  0x4c   : > { %7046 = vst [vmem:[#allocation49_spill] sm:$0xff] %v4991_v54  ;;  %631 = vmatpush.msrb.mxu1 %v5009_v56  ;;  %v3567_v54 = vld [vmem:[%s4769_s15 + $0xb0] sm:$0xf] }
  0x4d   : > { %553 = vst [vmem:[#allocation1 + $0x1] ss:$2 sm:$0xff] %v548_v37  ;;  %v5026_v37 = vld [vmem:[%s6871_s1 + $0x340] sm:$0xff] }
  0x4e   : > { %7047 = vst [vmem:[#allocation50_spill] sm:$0xff] %v4998_v60  ;;  %769 = vmatpush.msrb.mxu2 %v5026_v37  ;;  %v3640_v60 = vld [vmem:[%s6871_s1 + $0x330] sm:$0xff] }
  0x4f   : > { %7048 = vst [vmem:[#allocation51_spill] sm:$0xff] %v5003_v25  ;;  %v5049_v25 = vld [vmem:[%s6871_s1 + $0x338] sm:$0xff]  ;;  %v389_v20 = vld.sshfl [vmem:[#allocation1 + $0x20] sm:$0xff pattern:$0x75316420] }
  0x50   : > { %375 = vst [vmem:[#allocation1 + $0x10] ss:$2 sm:$0xff] %v292_v41  ;;  %v5021_v41 = vld [vmem:[%s6871_s1 + $0x238] sm:$0xff]  ;;  %770 = vmatpush.msrb.mxu2 %v5049_v25  ;;  %417 = vmatmul.f32.gmra.mxu0 %v389_v20  ;;  %v3571_v20 = vld [vmem:[%s4769_s15 + $0x1a0] sm:$0xf] }
  0x51   : > { %7049 = vst [vmem:[#allocation52_spill] sm:$0xff] %v5009_v56  ;;  %609 = vmatpush.msrb.mxu0 %v5021_v41  ;;  %v3564_v56 = vld [vmem:[%s4769_s15 + $0x30] sm:$0xf] }
  0x52   : > { %7050 = vst [vmem:[#allocation53_spill] sm:$0xff] %v5015_v30  ;;  %v5076_v30 = vld [vmem:[%s6871_s1 + $0x2a8] sm:$0xff]  ;;  %771 = vmatpush.msrb.mxu2 %v3640_v60  ;;  %v5119_v60 = vld [vmem:[%s6871_s1 + $0x210] sm:$0xff] }
  0x53   : > { %377 = vst [vmem:[#allocation1 + $0x11] ss:$2 sm:$0xff] %v295_v46  ;;  %v5033_v46 = vld [vmem:[%s6871_s1 + $0x2b8] sm:$0xff]  ;;  %610 = vmatpush.msrb.mxu0 %v5044_v59 }
  0x54   : > { %7051 = vst [vmem:[#allocation54_spill] sm:$0xff] %v5021_v41  ;;  %632 = vmatpush.msrb.mxu1 %v5033_v46  ;;  %v566_v41 = vld.sshfl [vmem:[#allocation1] sm:$0xff pattern:$0x75316420] }
  0x55   : > { %7052 = vst [vmem:[#allocation55_spill] sm:$0xff] %v5026_v37  ;;  %v5071_v37 = vld [vmem:[%s6871_s1 + $0x220] sm:$0xff]  ;;  %594 = vmatmul.f32.vlgmr.msra.gmra.mxu3 %v566_v41  ;;  %611 = vmatpush.msrb.mxu0 %v5057_v34  ;;  %v5113_v41 = vld [vmem:[%s6871_s1 + $0x298] sm:$0xff] }
  0x56   : > { %7053 = vst [vmem:[#allocation56_spill] sm:$0xff] %v5033_v46  ;;  %v5085_v46 = vld [vmem:[%s6871_s1 + $0x328] sm:$0xff]  ;;  %633 = vmatpush.msrb.mxu1 %v5062_v29 }
  0x57   : > { %7054 = vst [vmem:[#allocation57_spill] sm:$0xff] %v5038_v38  ;;  %v5092_v38 = vld [vmem:[%s6871_s1 + $0x218] sm:$0xff]  ;;  %612 = vmatpush.msrb.mxu0 %v5071_v37  ;;  %772 = vmatpush.msrb.mxu2 %v5085_v46 }
  0x58   : > { %7055 = vst [vmem:[#allocation58_spill] sm:$0xff] %v5044_v59  ;;  %v5102_v59 = vld [vmem:[%s6871_s1 + $0x3f0] sm:$0xff]  ;;  %634 = vmatpush.msrb.mxu1 %v5076_v30 }
  0x59   : > { %7056 = vst [vmem:[#allocation59_spill] sm:$0xff] %v5049_v25  ;;  %v5097_v25 = vld [vmem:[%s6871_s1 + $0x2a0] sm:$0xff]  ;;  %786 = vmatpush.msrb.mxu3 %v5102_v59  ;;  %613 = vmatpush.msrb.mxu0 %v5092_v38 }
  0x5a   : > { %7057 = vst [vmem:[#allocation60_spill] sm:$0xff] %v5057_v34  ;;  %v388_v45 = vld.sshfl [vmem:[#allocation1 + $0x10] sm:$0xff pattern:$0x75316420]  ;;  %635 = vmatpush.msrb.mxu1 %v5097_v25  ;;  %773 = vmatpush.msrb.mxu2 %v5108_v55 }
  0x5b   : > { %7058 = vst [vmem:[#allocation61_spill] sm:$0xff] %v5062_v29  ;;  %v390_v29 = vld.sshfl [vmem:[#allocation1 + $0x28] sm:$0xff pattern:$0x75316420]  ;;  %v298_v34 = vld [vmem:[%s4769_s15 + $0x110] sm:$0xf]  ;;  %614 = vmatpush.msrb.mxu0 %v5119_v60  ;;  %460 = vmatmul.f32.vlgmr.msra.gmra.mxu2 %v388_v45 }
  0x5c   : > { %7059 = vst [vmem:[#allocation62_spill] sm:$0xff] %v5071_v37  ;;  %440 = vmatmul.f32.gmra.mxu1 %v390_v29  ;;  %v5152_v29 = vld [vmem:[%s6871_s1 + $0x290] sm:$0xff]  ;;  %v5187_v45 = vld [vmem:[%s6871_s1 + $0x3d8] sm:$0xff] }
  0x5d   : > { %7060 = vst [vmem:[#allocation63_spill] sm:$0xff] %v5076_v30  ;;  %636 = vmatpush.msrb.mxu1 %v5113_v41  ;;  %v3626_v30 = vld [vmem:[%s4769_s15 + $0xc8] sm:$0xf] }
  0x5e   : > { %7061 = vst [vmem:[#allocation64_spill] sm:$0xff] %v5085_v46  ;;  %v5145_v46 = vld [vmem:[%s6871_s1 + $0x208] sm:$0xff] }
  0x5f   : > { %7062 = vst [vmem:[#allocation65_spill] sm:$0xff] %v5092_v38  ;;  %v5157_v38 = vld [vmem:[%s6871_s1 + $0x310] sm:$0xff]  ;;  %615 = vmatpush.msrb.mxu0 %v5145_v46  ;;  %637 = vmatpush.msrb.mxu1 %v5152_v29 }
  0x60   : > { %7063 = vst [vmem:[#allocation66_spill] sm:$0xff] %v5097_v25  ;;  %v5192_v25 = vld [vmem:[%s6871_s1 + $0x478] sm:$0xff] }
  0x61   : > { %7064 = vst [vmem:[#allocation67_spill] sm:$0xff] %v5102_v59 }
  0x62   : > { %7065 = vst [vmem:[#allocation68_spill] sm:$0xff] %v5108_v55  ;;  %v5173_v55 = vld [vmem:[%s6871_s1 + $0x288] sm:$0xff] }
  0x63   : > { %7066 = vst [vmem:[#allocation69_spill] sm:$0xff] %v5113_v41  ;;  %v5178_v41 = vld [vmem:[%s6871_s1 + $0x308] sm:$0xff]  ;;  %638 = vmatpush.msrb.mxu1 %v5173_v55 }
  0x64   : > { %555 = vst [vmem:[#allocation1 + $0x10] ss:$2 sm:$0xff] %v3564_v56  ;;  %v3572_v56 = vld [vmem:[%s4769_s15 + $0x1a8] sm:$0xf] }
  0x65   : > { %7067 = vst [vmem:[#allocation70_spill] sm:$0xff] %v5119_v60  ;;  %v546_v59 = vrot.slane %v3572_v56, 4  ;;  %v5168_v56 = vld [vmem:[%s6871_s1 + $0x200] sm:$0xff] }
  0x66   : > { %557 = vst [vmem:[#allocation1 + $0x11] ss:$2 sm:$0xff] %v3567_v54  ;;  %v5135_v54 = vld [vmem:[%s6871_s1 + $0x318] sm:$0xff]  ;;  %616 = vmatpush.msrb.mxu0 %v5168_v56 }
  0x67   : > { %383 = vst [vmem:[#allocation1 + $0x30] ss:$2 sm:$0xff] %v298_v34  ;;  %v5140_v34 = vld [vmem:[%s6871_s1 + $0x3e8] sm:$0xff]  ;;  %v550_v60 = vsel %vm366_vm0, %v3571_v20, %v546_v59  ;;  %774 = vmatpush.msrb.mxu2 %v5135_v54 }
  0x68   : > { %385 = vst [vmem:[#allocation1 + $0x31] ss:$2 sm:$0xff] %v301_v42  ;;  %v545_v42 = vrot.slane %v3569_v51, 4  ;;  %v5162_v51 = vld [vmem:[%s6871_s1 + $0x3e0] sm:$0xff]  ;;  %787 = vmatpush.msrb.mxu3 %v5140_v34  ;;  %v3623_v59 = vld [vmem:[%s4769_s15 + $0x48] sm:$0xf]  ;;  %808 = vmatpush.msra.mxu0 %v5192_v25 }
  0x69   : > { %7068 = vst [vmem:[#allocation71_spill] sm:$0xff] %v5135_v54  ;;  %v567_v20 = vld.sshfl [vmem:[#allocation1 + $0x8] sm:$0xff pattern:$0x75316420]  ;;  %v727_v54 = vrot.slane %v3623_v59, 4  ;;  %775 = vmatpush.msrb.mxu2 %v5157_v38 }
  0x6a   : > { %7069 = vst [vmem:[#allocation72_spill] sm:$0xff] %v5140_v34  ;;  %v549_v37 = vsel %vm366_vm0, %v3568_v63, %v545_v42  ;;  %v3622_v63 = vld [vmem:[%s4769_s15 + $0x40] sm:$0xf]  ;;  %788 = vmatpush.msrb.mxu3 %v5162_v51  ;;  %617 = vmatmul.f32.vlgmr.msrb.gmra.mxu0 %v567_v20  ;;  %v3629_v20 = vld [vmem:[%s4769_s15 + $0x148] sm:$0xf] }
  0x6b   : > { %7070 = vst [vmem:[#allocation73_spill] sm:$0xff] %v5145_v46  ;;  %v5201_v42 = vld [vmem:[%s6871_s1 + $0x280] sm:$0xff]  ;;  %776 = vmatpush.msrb.mxu2 %v5178_v41 }
  0x6c   : > { %7071 = vst [vmem:[#allocation74_spill] sm:$0xff] %v5152_v29  ;;  %v5213_v46 = vld [vmem:[%s6871_s1 + $0x300] sm:$0xff]  ;;  %v3573_v29 = vld [vmem:[%s4769_s15 + $0x1b0] sm:$0xf]  ;;  %789 = vmatpush.msrb.mxu3 %v5187_v45  ;;  %639 = vmatpush.msrb.mxu1 %v5201_v42 }
  0x6d   : > { %7072 = vst [vmem:[#allocation75_spill] sm:$0xff] %v5157_v38  ;;  %v568_v34 = vld.sshfl [vmem:[#allocation1 + $0x10] sm:$0xff pattern:$0x75316420]  ;;  %v728_v38 = vrot.slane %v3626_v30, 4  ;;  %v5240_v30 = vld [vmem:[%s6871_s1 + $0x468] sm:$0xff]  ;;  %777 = vmatpush.msrb.mxu2 %v5213_v46 }
  0x6e   : > { %7073 = vst [vmem:[#allocation76_spill] sm:$0xff] %v5162_v51  ;;  %v731_v51 = vsel %vm366_vm0, %v3622_v63, %v727_v54  ;;  %v3628_v63 = vld [vmem:[%s4769_s15 + $0x140] sm:$0xf]  ;;  %640 = vmatmul.f32.vlgmr.msrb.gmra.mxu1 %v568_v34 }
  0x6f   : > { %7074 = vst [vmem:[#allocation77_spill] sm:$0xff] %v5168_v56  ;;  %v5220_v59 = vld.sshfl [vmem:[#allocation1 + $0x30] sm:$0xff pattern:$0x75316420]  ;;  %958 = vmatpush.msra.mxu2 %v4484_v2  ;;  %935 = vmatpush.msra.mxu1 %v4474_v0  ;;  %v5267_v34 = vld [vmem:[%s6871_s1 + $0x460] sm:$0xff]  ;;  %v5282_v0 = vld [vmem:[%s6871_s1 + $0x458] sm:$0xff] }
  0x70   : > { %7075 = vst [vmem:[#allocation78_spill] sm:$0xff] %v5173_v55  ;;  %v5227_v56 = vld [vmem:[%s6871_s1 + $0x470] sm:$0xff]  ;;  %v5232_v55 = vld [vmem:[%s6871_s1 + $0x3c8] sm:$0xff]  ;;  %463 = vmatmul.f32.gmra.mxu2 %v5220_v59  ;;  %v983_v59 = vld [vmem:[%s4769_s15] sm:$0x1e] }
  0x71   : > { %7076 = vst [vmem:[#allocation79_spill] sm:$0xff] %v5178_v41  ;;  %v3631_v41 = vld [vmem:[%s4769_s15 + $0x1c0] sm:$0xf]  ;;  %809 = vmatpush.msra.mxu0 %v5227_v56  ;;  %959 = vmatpush.msra.mxu2 %v4496_v4  ;;  %v5295_v4 = vld [vmem:[%s6871_s1 + $0x450] sm:$0xff] }
  0x72   : > { %7077 = vst [vmem:[#allocation80_spill] sm:$0xff] %v5187_v45  ;;  %v3632_v45 = vld [vmem:[%s4769_s15 + $0x1c8] sm:$0xf]  ;;  %936 = vmatpush.msra.mxu1 %v4479_v1 }
  0x73   : > { %7078 = vst [vmem:[#allocation81_spill] sm:$0xff] %v5192_v25  ;;  %810 = vmatpush.msra.mxu0 %v5240_v30  ;;  %960 = vmatpush.msra.mxu2 %v4512_v7  ;;  %v5321_v7 = vld [vmem:[%s6871_s1 + $0x3a0] sm:$0xff] }
  0x74   : > { %559 = vst [vmem:[#allocation1 + $0x20] ss:$2 sm:$0xff] %v549_v37  ;;  %v3625_v37 = vld [vmem:[%s4769_s15 + $0xc0] sm:$0xf]  ;;  %937 = vmatpush.msra.mxu1 %v4502_v5 }
  0x75   : > { %561 = vst [vmem:[#allocation1 + $0x21] ss:$2 sm:$0xff] %v550_v60  ;;  %v5218_v60 = vld [vmem:[%s6871_s1 + $0x3d0] sm:$0xff]  ;;  %v732_v54 = vsel %vm366_vm0, %v3625_v37, %v728_v38  ;;  %v730_v38 = vrot.slane %v3632_v45, 4  ;;  %811 = vmatpush.msra.mxu0 %v5267_v34  ;;  %961 = vmatpush.msra.mxu2 %v4530_v10  ;;  %v5335_v10 = vld [vmem:[%s6871_s1 + $0x440] sm:$0xff] }
  0x76   : > { %7079 = vst [vmem:[#allocation82_spill] sm:$0xff] %v5213_v46  ;;  %790 = vmatpush.msrb.mxu3 %v5218_v60  ;;  %v3624_v37 = vld [vmem:[%s4769_s15 + $0x50] sm:$0xf]  ;;  %938 = vmatpush.msra.mxu1 %v4525_v9  ;;  %v869_v9 = vld [vmem:[%s4769_s15 + $0x118] sm:$0xf] }
  0x77   : > { %7080 = vst [vmem:[#allocation83_spill] sm:$0xff] %v5232_v55  ;;  %v734_v45 = vsel %vm366_vm0, %v3631_v41, %v730_v38  ;;  %v864_v41 = vld [vmem:[%s4769_s15 + $0x10] sm:$0xf]  ;;  %v5304_v38 = vld [vmem:[%s6871_s1 + $0x3a8] sm:$0xff]  ;;  %812 = vmatpush.msra.mxu0 %v5282_v0  ;;  %962 = vmatpush.msra.mxu2 %v4548_v13  ;;  %v5349_v13 = vld [vmem:[%s6871_s1 + $0x398] sm:$0xff] }
  0x78   : > { %735 = vst [vmem:[#allocation1] ss:$2 sm:$0xff] %v731_v51  ;;  %v5250_v51 = vld [vmem:[%s6871_s1 + $0x3c0] sm:$0xff]  ;;  %791 = vmatpush.msrb.mxu3 %v5232_v55  ;;  %939 = vmatpush.msra.mxu1 %v4543_v12 }
  0x79   : > { %563 = vst [vmem:[#allocation1 + $0x30] ss:$2 sm:$0xff] %v3570_v33  ;;  %v729_v33 = vrot.slane %v3629_v20, 4  ;;  %v5287_v20 = vld [vmem:[%s6871_s1 + $0x3b0] sm:$0xff]  ;;  %813 = vmatpush.msra.mxu0 %v5295_v4  ;;  %963 = vmatpush.msra.mxu2 %v4566_v16  ;;  %v914_v16 = vrot.slane %v869_v9, 4  ;;  %v3682_v9 = vrot.slane %v983_v59, 9 }
  0x7a   : > { %7081 = vst [vmem:[#allocation84_spill] sm:$0xff] %v5250_v51  ;;  %792 = vmatpush.msrb.mxu3 %v5250_v51  ;;  %v866_v51 = vld [vmem:[%s4769_s15 + $0x90] sm:$0xf]  ;;  %940 = vmatpush.msra.mxu1 %v4561_v15 }
  0x7b   : > { %737 = vst [vmem:[#allocation1 + $0x1] ss:$2 sm:$0xff] %v732_v54  ;;  %v733_v2 = vsel %vm366_vm0, %v3628_v63, %v729_v33  ;;  %v3627_v54 = vld [vmem:[%s4769_s15 + $0xd0] sm:$0xf]  ;;  %v865_v33 = vld [vmem:[%s4769_s15 + $0x18] sm:$0xf]  ;;  %964 = vmatpush.msra.mxu2 %v4584_v19 }
  0x7c   : > { %565 = vst [vmem:[#allocation1 + $0x31] ss:$2 sm:$0xff] %v3573_v29  ;;  %v5258_v46 = vld.sshfl [vmem:[#allocation1 + $0x20] sm:$0xff pattern:$0x75316420]  ;;  %v5272_v29 = vld [vmem:[%s6871_s1 + $0x3b8] sm:$0xff]  ;;  %941 = vmatpush.msra.mxu1 %v4579_v18 }
  0x7d   : > { %v5260_v25 = vld.sshfl [vmem:[#allocation1 + $0x28] sm:$0xff pattern:$0x75316420]  ;;  %7082 = vst [vmem:[#allocation85_spill] sm:$0xff] %v5272_v29  ;;  %v3630_v63 = vld [vmem:[%s4769_s15 + $0x150] sm:$0xf]  ;;  %793 = vmatpush.msrb.mxu3 %v5272_v29  ;;  %965 = vmatpush.msra.mxu2 %v4607_v23 }
  0x7e   : > { %739 = vst [vmem:[#allocation1 + $0x10] ss:$2 sm:$0xff] %v3624_v37  ;;  %v867_v37 = vld [vmem:[%s4769_s15 + $0x98] sm:$0xf]  ;;  %v912_v1 = vrot.slane %v865_v33, 4  ;;  %597 = vmatmul.f32.gmra.mxu3 %v5258_v46  ;;  %v5374_v15 = vld [vmem:[%s6871_s1 + $0x430] sm:$0xff]  ;;  %942 = vmatpush.msra.mxu1 %v4602_v22 }
  0x7f   : > { %7083 = vst [vmem:[#allocation86_spill] sm:$0xff] %v5282_v0  ;;  %v913_v29 = vrot.slane %v867_v37, 4  ;;  %794 = vmatpush.msrb.mxu3 %v5287_v20  ;;  %v5387_v19 = vld [vmem:[%s6871_s1 + $0x388] sm:$0xff]  ;;  %966 = vmatpush.msra.mxu2 %v4632_v27  ;;  %v5401_v23 = vld [vmem:[%s6871_s1 + $0x380] sm:$0xff]  ;;  %v3691_v27 = vld [vmem:[%s4769_s15 + $0x38] sm:$0xf] }
  0x80   : > { %743 = vst [vmem:[#allocation1 + $0x20] ss:$2 sm:$0xff] %v733_v2  ;;  %v5312_v2 = vld [vmem:[%s6871_s1 + $0x448] sm:$0xff]  ;;  %v916_v55 = vsel %vm366_vm0, %v864_v41, %v912_v1  ;;  %v871_v41 = vld [vmem:[%s4769_s15 + $0x198] sm:$0xf]  ;;  %943 = vmatpush.msra.mxu1 %v4627_v26  ;;  %620 = vmatmul.f32.gmra.mxu0 %v5260_v25 }
  0x81   : > { %745 = vst [vmem:[#allocation1 + $0x21] ss:$2 sm:$0xff] %v734_v45  ;;  %v3633_v45 = vld [vmem:[%s4769_s15 + $0x1d0] sm:$0xf]  ;;  %v917_v0 = vsel %vm366_vm0, %v866_v51, %v913_v29  ;;  %795 = vmatpush.msrb.mxu3 %v5304_v38  ;;  %814 = vmatpush.msra.mxu0 %v5312_v2  ;;  %v5354_v51 = vld [vmem:[%s6871_s1 + $0x438] sm:$0xff]  ;;  %v915_v37 = vrot.slane %v871_v41, 4 }
  0x82   : > { %741 = vst [vmem:[#allocation1 + $0x11] ss:$2 sm:$0xff] %v3627_v54  ;;  %v5323_v54 = vld.sshfl [vmem:[#allocation1] sm:$0xff pattern:$0x75316420]  ;;  %v5392_v46 = vld [vmem:[%s6871_s1 + $0x428] sm:$0xff]  ;;  %967 = vmatpush.msra.mxu2 %v4661_v32  ;;  %944 = vmatpush.msra.mxu1 %v4656_v31 }
  0x83   : > { %v5325_v5 = vld.sshfl [vmem:[#allocation1 + $0x8] sm:$0xff pattern:$0x75316420]  ;;  %v5327_v33 = vld.sshfl [vmem:[#allocation1 + $0x30] sm:$0xff pattern:$0x75316420]  ;;  %796 = vmatpush.msrb.mxu3 %v5321_v7  ;;  %815 = vmatpush.msra.mxu0 %v5335_v10 }
  0x84   : > { %747 = vst [vmem:[#allocation1 + $0x30] ss:$2 sm:$0xff] %v3630_v63  ;;  %v868_v29 = vld [vmem:[%s4769_s15 + $0x110] sm:$0xf]  ;;  %v984_v1 = vld [vmem:[%s4769_s15 + $0x80] sm:$0x1e]  ;;  %778 = vmatmul.f32.vlgmr.msrb.gmra.mxu2 %v5323_v54  ;;  %945 = vmatpush.msra.mxu1 %v4685_v35 }
  0x85   : > { %749 = vst [vmem:[#allocation1 + $0x31] ss:$2 sm:$0xff] %v3633_v45  ;;  %v870_v63 = vld [vmem:[%s4769_s15 + $0x190] sm:$0xf]  ;;  %797 = vmatpush.msrb.mxu3 %v5349_v13  ;;  %816 = vmatpush.msra.mxu0 %v5354_v51  ;;  %v3684_v18 = vrot.slane %v984_v1, 9  ;;  %v5406_v41 = vld [vmem:[%s6871_s1 + $0x420] sm:$0xff] }
  0x86   : > { %920 = vst [vmem:[#allocation1] ss:$2 sm:$0xff] %v916_v55  ;;  %v5365_v55 = vld [vmem:[%s6871_s1 + $0x390] sm:$0xff]  ;;  %v919_v45 = vsel %vm366_vm0, %v870_v63, %v915_v37  ;;  %v5423_v63 = vld [vmem:[%s6871_s1 + $0x418] sm:$0xff]  ;;  %v1118_v32 = vrot.slane %v3691_v27, 4  ;;  %968 = vmatpush.msra.mxu2 %v4690_v36  ;;  %643 = vmatmul.f32.gmra.mxu1 %v5327_v33  ;;  %v5451_v36 = vld [vmem:[%s6871_s1 + $0x408] sm:$0xff] }
  0x87   : > { %922 = vst [vmem:[#allocation1 + $0x1] ss:$2 sm:$0xff] %v917_v0  ;;  %v918_v0 = vsel %vm366_vm0, %v868_v29, %v914_v16  ;;  %798 = vmatpush.msrb.mxu3 %v5365_v55  ;;  %817 = vmatpush.msra.mxu0 %v5374_v15  ;;  %v3693_v29 = vld [vmem:[%s4769_s15 + $0xb8] sm:$0xf]  ;;  %v3690_v26 = vld [vmem:[%s4769_s15 + $0x30] sm:$0xf] }
  0x88   : > { %v1119_v37 = vrot.slane %v3693_v29, 4  ;;  %v5440_v31 = vld [vmem:[%s6871_s1 + $0x410] sm:$0xff]  ;;  %969 = vmatpush.msra.mxu2 %v4714_v40  ;;  %946 = vmatpush.msra.mxu1 %v4709_v39  ;;  %v753_v40 = vld.sshfl [vmem:[#allocation1 + $0x20] sm:$0xff pattern:$0x75316420] }
  0x89   : > { %v5358_v12 = vld.sshfl [vmem:[#allocation1 + $0x10] sm:$0xff pattern:$0x75316420]  ;;  %799 = vmatpush.msrb.mxu3 %v5387_v19  ;;  %818 = vmatpush.msra.mxu0 %v5392_v46  ;;  %v754_v39 = vld.sshfl [vmem:[#allocation1 + $0x28] sm:$0xff pattern:$0x75316420] }
  0x8a   : > { %924 = vst [vmem:[#allocation1 + $0x10] ss:$2 sm:$0xff] %v918_v0  ;;  %v985_v0 = vld [vmem:[%s4769_s15 + $0x100] sm:$0x1e]  ;;  %v3692_v25 = vld [vmem:[%s4769_s15 + $0xb0] sm:$0xf]  ;;  %970 = vmatpush.msra.mxu2 %v4739_v44  ;;  %947 = vmatpush.msra.mxu1 %v4734_v43 }
  0x8b   : > { %926 = vst [vmem:[#allocation1 + $0x11] ss:$2 sm:$0xff] %v919_v45  ;;  %800 = vmatpush.msrb.mxu3 %v5401_v23  ;;  %819 = vmatpush.msra.mxu0 %v5406_v41  ;;  %v986_v45 = vld [vmem:[%s4769_s15 + $0x180] sm:$0x1e]  ;;  %v1123_v35 = vsel %vm366_vm0, %v3692_v25, %v1119_v37  ;;  %v3697_v27 = vld [vmem:[%s4769_s15 + $0x1b8] sm:$0xf] }
  0x8c   : > { %801 = vmatmul.f32.vlgmr.msrb.gmra.mxu3 %v5325_v5  ;;  %v3688_v54 = vrot.slane %v986_v45, 9  ;;  %v1122_v5 = vsel %vm366_vm0, %v3690_v26, %v1118_v32  ;;  %971 = vmatpush.msra.mxu2 %v4763_v48  ;;  %v3730_v44 = vld [vmem:[%s4769_s15 + $0x20] sm:$0x1e]  ;;  %v3694_v43 = vld [vmem:[%s4769_s15 + $0x130] sm:$0xf]  ;;  %v1121_v32 = vrot.slane %v3697_v27, 4 }
  0x8d   : > { %820 = vmatpush.msra.mxu0 %v5423_v63  ;;  %1041 = vmatpush.msra.mxu3 %v4491_v3  ;;  %v5459_v3 = vld [vmem:[%s6871_s1 + $0x400] sm:$0xff]  ;;  %v3696_v26 = vld [vmem:[%s4769_s15 + $0x1b0] sm:$0xf]  ;;  %v3750_v48 = vrot.slane %v3730_v44, 9  ;;  %v7090_v45 = vld [vmem:[#allocation39_spill] sm:$0xff] }
  0x8e   : > { %v5410_v16 = vld.sshfl [vmem:[#allocation1 + $0x8] sm:$0xff pattern:$0x75316420]  ;;  %v5412_v22 = vld.sshfl [vmem:[#allocation1] sm:$0xff pattern:$0x75316420]  ;;  %948 = vmatpush.msra.mxu1 %v4758_v47  ;;  %781 = vmatmul.f32.gmra.mxu2 %v753_v40  ;;  %v1125_v37 = vsel %vm366_vm0, %v3696_v26, %v1121_v32 }
  0x8f   : > { %1030 = vst [vmem:[#allocation1] ss:$2 sm:$0xff] %v3682_v9  ;;  %v3686_v9 = vrot.slane %v985_v0, 9  ;;  %821 = vmatpush.msra.mxu0 %v5440_v31  ;;  %1042 = vmatpush.msra.mxu3 %v4507_v6  ;;  %v3731_v6 = vld [vmem:[%s4769_s15 + $0xa0] sm:$0x1e]  ;;  %v7096_v40 = vld [vmem:[#allocation22_spill] sm:$0xff] }
  0x90   : > { %1032 = vst [vmem:[#allocation1 + $0x1] ss:$2 sm:$0xff] %v3684_v18  ;;  %v3695_v18 = vld [vmem:[%s4769_s15 + $0x138] sm:$0xf]  ;;  %972 = vmatpush.msra.mxu2 %v4797_v53  ;;  %949 = vmatpush.msra.mxu1 %v4776_v49  ;;  %v3752_v0 = vrot.slane %v3731_v6, 9  ;;  %v7085_v53 = vld [vmem:[#allocation16_spill] sm:$0xff] }
  0x91   : > { %822 = vmatpush.msra.mxu0 %v5451_v36  ;;  %1043 = vmatpush.msra.mxu3 %v4519_v8  ;;  %v1120_v29 = vrot.slane %v3695_v18, 4  ;;  %v755_v49 = vld.sshfl [vmem:[#allocation1 + $0x30] sm:$0xff pattern:$0x75316420]  ;;  %v7099_v18 = vld [vmem:[#allocation19_spill] sm:$0xff]  ;;  %v7100_v6 = vld [vmem:[#allocation24_spill] sm:$0xff] }
  0x92   : > { %v5431_v59 = vld.sshfl [vmem:[#allocation1 + $0x18] sm:$0xff pattern:$0x75316420]  ;;  %v5433_v1 = vld.sshfl [vmem:[#allocation1 + $0x10] sm:$0xff pattern:$0x75316420]  ;;  %973 = vmatpush.msra.mxu2 %v4818_v58  ;;  %950 = vmatpush.msra.mxu1 %v4792_v52 }
  0x93   : > { %1034 = vst [vmem:[#allocation1 + $0x10] ss:$2 sm:$0xff] %v3686_v9  ;;  %823 = vmatpush.msra.mxu0 %v5459_v3  ;;  %v1124_v8 = vsel %vm366_vm0, %v3694_v43, %v1120_v29  ;;  %1044 = vmatpush.msra.mxu3 %v4537_v11  ;;  %v7084_v52 = vld [vmem:[#allocation13_spill] sm:$0xff]  ;;  %v7091_v9 = vld [vmem:[#allocation15_spill] sm:$0xff]  ;;  %v7098_v44 = vld [vmem:[#allocation46_spill] sm:$0xff] }
  0x94   : > { %1036 = vst [vmem:[#allocation1 + $0x11] ss:$2 sm:$0xff] %v3688_v54  ;;  %804 = vmatmul.f32.gmra.mxu3 %v754_v39  ;;  %824 = vmatmul.f32.vlgmr.msra.gmra.mxu0 %v5358_v12  ;;  %v7088_v12 = vld [vmem:[#allocation18_spill] sm:$0xff]  ;;  %v7092_v54 = vld [vmem:[#allocation20_spill] sm:$0xff]  ;;  %v7102_v29 = vld [vmem:[#allocation49_spill] sm:$0xff] }
  0x95   : > { %1141 = vmatpush.msrb.mxu0 %v4596_v21  ;;  %1045 = vmatpush.msra.mxu3 %v4555_v14  ;;  %v3732_v14 = vld [vmem:[%s4769_s15 + $0x120] sm:$0x1e]  ;;  %v7097_v39 = vld [vmem:[#allocation38_spill] sm:$0xff]  ;;  %v7103_v43 = vld [vmem:[#allocation21_spill] sm:$0xff] }
  0x96   : > { %1248 = vmatpush.msrb.mxu2 %v4839_v57  ;;  %1164 = vmatpush.msrb.mxu1 %v4828_v62  ;;  %v3754_v58 = vrot.slane %v3732_v14, 9  ;;  %v7086_v57 = vld [vmem:[#allocation31_spill] sm:$0xff]  ;;  %v7089_v62 = vld [vmem:[#allocation32_spill] sm:$0xff]  ;;  %v7101_v27 = vld [vmem:[#allocation42_spill] sm:$0xff] }
  0x97   : > { %v5464_v33 = vld.sshfl [vmem:[#allocation1] sm:$0xff pattern:$0x75316420]  ;;  %1142 = vmatpush.msrb.mxu0 %v4613_v24  ;;  %1046 = vmatpush.msra.mxu3 %v4573_v17  ;;  %v7104_v26 = vld [vmem:[#allocation26_spill] sm:$0xff]  ;;  %v7105_v32 = vld [vmem:[#allocation47_spill] sm:$0xff] }
  0x98   : > { %1126 = vst [vmem:[#allocation1] ss:$2 sm:$0xff] %v1122_v5  ;;  %1249 = vmatpush.msrb.mxu2 %v4871_v61  ;;  %v3733_v24 = vld [vmem:[%s4769_s15 + $0x1a0] sm:$0x1e]  ;;  %1165 = vmatpush.msrb.mxu1 %v7086_v57  ;;  %v7094_v5 = vld [vmem:[#allocation43_spill] sm:$0xff] }
  0x99   : > { %1128 = vst [vmem:[#allocation1 + $0x1] ss:$2 sm:$0xff] %v1123_v35  ;;  %1143 = vmatpush.msrb.mxu0 %v4638_v28  ;;  %1047 = vmatpush.msra.mxu3 %v7084_v52  ;;  %v3756_v17 = vrot.slane %v3733_v24, 9  ;;  %v7087_v28 = vld [vmem:[#allocation14_spill] sm:$0xff]  ;;  %v7095_v35 = vld [vmem:[#allocation17_spill] sm:$0xff]  ;;  %v7110_v52 = vld [vmem:[#allocation56_spill] sm:$0xff] }
  0x9a   : > { %1250 = vmatpush.msrb.mxu2 %v4881_v50  ;;  %1166 = vmatpush.msrb.mxu1 %v7089_v62  ;;  %v7093_v50 = vld [vmem:[#allocation35_spill] sm:$0xff]  ;;  %v7109_v24 = vld [vmem:[#allocation50_spill] sm:$0xff] }
  0x9b   : > { %v5483_v47 = vld.sshfl [vmem:[#allocation1 + $0x10] sm:$0xff pattern:$0x75316420]  ;;  %1144 = vmatpush.msrb.mxu0 %v7085_v53  ;;  %1048 = vmatpush.msra.mxu3 %v7087_v28 }
  0x9c   : > { %1130 = vst [vmem:[#allocation1 + $0x10] ss:$2 sm:$0xff] %v1124_v8  ;;  %827 = vmatmul.f32.gmra.mxu0 %v755_v49  ;;  %1251 = vmatpush.msrb.mxu2 %v7090_v45  ;;  %v7106_v8 = vld [vmem:[#allocation52_spill] sm:$0xff]  ;;  %v3761_v49 = vld [vmem:[%s4769_s15 + $0xd8] sm:$0xf]  ;;  %v7113_v62 = vld [vmem:[#allocation54_spill] sm:$0xff] }
  0x9d   : > { %1132 = vst [vmem:[#allocation1 + $0x11] ss:$2 sm:$0xff] %v1125_v37  ;;  %1145 = vmatpush.msrb.mxu0 %v7088_v12  ;;  %1049 = vmatpush.msra.mxu3 %v7091_v9  ;;  %v3759_v37 = vld [vmem:[%s4769_s15 + $0x58] sm:$0xf]  ;;  %v3758_v53 = vld [vmem:[%s4769_s15 + $0x50] sm:$0xf] }
  0x9e   : > { %1167 = vmatpush.msrb.mxu1 %v7093_v50  ;;  %1252 = vmatpush.msrb.mxu2 %v7094_v5  ;;  %v1325_v14 = vrot.slane %v3759_v37, 4  ;;  %v1326_v57 = vrot.slane %v3761_v49, 4  ;;  %v7112_v12 = vld [vmem:[#allocation33_spill] sm:$0xff]  ;;  %v7117_v50 = vld [vmem:[#allocation58_spill] sm:$0xff]  ;;  %v7118_v5 = vld [vmem:[#allocation63_spill] sm:$0xff] }
  0x9f   : > { %1146 = vmatpush.msrb.mxu0 %v7092_v54  ;;  %1050 = vmatpush.msra.mxu3 %v7095_v35  ;;  %v7114_v9 = vld [vmem:[#allocation61_spill] sm:$0xff]  ;;  %v7115_v54 = vld [vmem:[#allocation27_spill] sm:$0xff]  ;;  %v7125_v37 = vld [vmem:[#allocation62_spill] sm:$0xff] }
  0xa0   : > { %v5492_v11 = vld.sshfl [vmem:[#allocation1] sm:$0xff pattern:$0x75316420]  ;;  %v5494_v21 = vld.sshfl [vmem:[#allocation1 + $0x8] sm:$0xff pattern:$0x75316420]  ;;  %1168 = vmatpush.msrb.mxu1 %v7097_v39  ;;  %1253 = vmatpush.msrb.mxu2 %v7098_v44 }
  0xa1   : > { %1237 = vst [vmem:[#allocation1] ss:$2 sm:$0xff] %v3750_v48  ;;  %1147 = vmatpush.msrb.mxu0 %v7096_v40  ;;  %1051 = vmatpush.msra.mxu3 %v7099_v18  ;;  %v7107_v48 = vld [vmem:[#allocation23_spill] sm:$0xff]  ;;  %v7119_v35 = vld [vmem:[#allocation29_spill] sm:$0xff]  ;;  %v7120_v40 = vld [vmem:[#allocation40_spill] sm:$0xff] }
  0xa2   : > { %1239 = vst [vmem:[#allocation1 + $0x1] ss:$2 sm:$0xff] %v3752_v0  ;;  %1169 = vmatpush.msrb.mxu1 %v7101_v27  ;;  %1254 = vmatpush.msrb.mxu2 %v7102_v29  ;;  %v7108_v0 = vld [vmem:[#allocation28_spill] sm:$0xff]  ;;  %v3763_v44 = vld [vmem:[%s4769_s15 + $0x158] sm:$0xf]  ;;  %v7123_v27 = vld [vmem:[#allocation30_spill] sm:$0xff] }
  0xa3   : > { %1148 = vmatpush.msrb.mxu0 %v7100_v6  ;;  %1052 = vmatpush.msra.mxu3 %v7103_v43  ;;  %v7121_v39 = vld [vmem:[#allocation60_spill] sm:$0xff]  ;;  %v3765_v18 = vld [vmem:[%s4769_s15 + $0x1d8] sm:$0xf]  ;;  %v7122_v6 = vld [vmem:[#allocation66_spill] sm:$0xff]  ;;  %v1327_v43 = vrot.slane %v3763_v44, 4 }
  0xa4   : > { %v5509_v61 = vld.sshfl [vmem:[#allocation1 + $0x10] sm:$0xff pattern:$0x75316420]  ;;  %v5511_v25 = vld.sshfl [vmem:[#allocation1 + $0x18] sm:$0xff pattern:$0x75316420]  ;;  %1170 = vmatpush.msrb.mxu1 %v7105_v32  ;;  %1255 = vmatpush.msrb.mxu2 %v7106_v8 }
  0xa5   : > { %1241 = vst [vmem:[#allocation1 + $0x10] ss:$2 sm:$0xff] %v3754_v58  ;;  %1149 = vmatpush.msrb.mxu0 %v7104_v26  ;;  %1053 = vmatpush.msra.mxu3 %v7107_v48  ;;  %v3760_v58 = vld [vmem:[%s4769_s15 + $0xd0] sm:$0xf]  ;;  %v1328_v26 = vrot.slane %v3765_v18, 4  ;;  %v7124_v32 = vld [vmem:[#allocation45_spill] sm:$0xff] }
  0xa6   : > { %1243 = vst [vmem:[#allocation1 + $0x11] ss:$2 sm:$0xff] %v3756_v17  ;;  %974 = vmatmul.f32.vlgmr.msra.gmra.mxu2 %v5410_v16  ;;  %1171 = vmatpush.msrb.mxu1 %v7109_v24  ;;  %v7111_v17 = vld [vmem:[#allocation25_spill] sm:$0xff]  ;;  %v1329_v16 = vsel %vm366_vm0, %v3758_v53, %v1325_v14  ;;  %v1330_v45 = vsel %vm366_vm0, %v3760_v58, %v1326_v57  ;;  %v3762_v8 = vld [vmem:[%s4769_s15 + $0x150] sm:$0xf]  ;;  %v7128_v57 = vld [vmem:[#allocation48_spill] sm:$0xff] }
  0xa7   : > { %1150 = vmatpush.msrb.mxu0 %v7108_v0  ;;  %1256 = vmatpush.msrb.mxu2 %v7110_v52  ;;  %v3764_v48 = vld [vmem:[%s4769_s15 + $0x1d0] sm:$0xf]  ;;  %v7126_v0 = vld [vmem:[#allocation69_spill] sm:$0xff]  ;;  %v1331_v49 = vsel %vm366_vm0, %v3762_v8, %v1327_v43  ;;  %v3798_v24 = vld [vmem:[%s4769_s15 + $0x40] sm:$0x1e] }
  0xa8   : > { %951 = vmatmul.f32.vlgmr.msra.gmra.mxu1 %v5412_v22  ;;  %1054 = vmatpush.msra.mxu3 %v7111_v17  ;;  %v7116_v22 = vld [vmem:[#allocation37_spill] sm:$0xff]  ;;  %v1332_v14 = vsel %vm366_vm0, %v3764_v48, %v1328_v26  ;;  %v3799_v52 = vld [vmem:[%s4769_s15 + $0xc0] sm:$0x1e]  ;;  %v7127_v53 = vld [vmem:[#allocation34_spill] sm:$0xff] }
  0xa9   : > { %v1244_v28 = vld.sshfl [vmem:[#allocation1] sm:$0xff pattern:$0x75316420]  ;;  %1151 = vmatpush.msrb.mxu0 %v7112_v12  ;;  %1172 = vmatpush.msrb.mxu1 %v7113_v62  ;;  %v7129_v17 = vld [vmem:[#allocation65_spill] sm:$0xff]  ;;  %v3820_v12 = vrot.slane %v3799_v52, 9  ;;  %v7130_v62 = vld [vmem:[#allocation74_spill] sm:$0xff] }
  0xaa   : > { %1333 = vst [vmem:[#allocation1] ss:$2 sm:$0xff] %v1329_v16  ;;  %1257 = vmatpush.msrb.mxu2 %v7114_v9  ;;  %1055 = vmatpush.msra.mxu3 %v7115_v54  ;;  %v7133_v9 = vld [vmem:[#allocation70_spill] sm:$0xff]  ;;  %v3801_v44 = vld [vmem:[%s4769_s15 + $0x1c0] sm:$0x1e]  ;;  %v7140_v18 = vld [vmem:[#allocation77_spill] sm:$0xff] }
  0xab   : > { %1335 = vst [vmem:[#allocation1 + $0x1] ss:$2 sm:$0xff] %v1330_v45  ;;  %1152 = vmatpush.msrb.mxu0 %v7116_v22  ;;  %1173 = vmatpush.msrb.mxu1 %v7117_v50  ;;  %v7131_v45 = vld [vmem:[#allocation36_spill] sm:$0xff]  ;;  %v7134_v54 = vld [vmem:[#allocation78_spill] sm:$0xff]  ;;  %v7135_v22 = vld [vmem:[#allocation41_spill] sm:$0xff] }
  0xac   : > { %1258 = vmatpush.msrb.mxu2 %v7118_v5  ;;  %1056 = vmatpush.msra.mxu3 %v7119_v35  ;;  %v7136_v50 = vld [vmem:[#allocation57_spill] sm:$0xff]  ;;  %v5590_v35 = vld [vmem:[%s6871_s1 + $0x350] sm:$0xff]  ;;  %v7141_v43 = vld [vmem:[#allocation72_spill] sm:$0xff] }
  0xad   : > { %1153 = vmatpush.msrb.mxu0 %v7120_v40  ;;  %1174 = vmatpush.msrb.mxu1 %v7121_v39  ;;  %v5557_v29 = vld.sshfl [vmem:[#allocation1 + $0x10] sm:$0xff pattern:$0x75316420]  ;;  %v7137_v5 = vld [vmem:[#allocation73_spill] sm:$0xff]  ;;  %v7139_v40 = vld [vmem:[#allocation67_spill] sm:$0xff] }
  0xae   : > { %1259 = vmatpush.msrb.mxu2 %v7122_v6  ;;  %1348 = vmatpush.msrb.mxu3 %v7123_v27  ;;  %1337 = vst [vmem:[#allocation1 + $0x10] ss:$2 sm:$0xff] %v1331_v49  ;;  %v3800_v39 = vld [vmem:[%s4769_s15 + $0x140] sm:$0x1e]  ;;  %v3824_v27 = vrot.slane %v3801_v44, 9  ;;  %v7143_v8 = vld [vmem:[#allocation51_spill] sm:$0xff] }
  0xaf   : > { %977 = vmatmul.f32.gmra.mxu2 %v5431_v59  ;;  %1154 = vmatpush.msrb.mxu0 %v7124_v32  ;;  %v3818_v59 = vrot.slane %v3798_v24, 9  ;;  %1339 = vst [vmem:[#allocation1 + $0x11] ss:$2 sm:$0xff] %v1332_v14  ;;  %v3822_v6 = vrot.slane %v3800_v39, 9  ;;  %v7142_v32 = vld [vmem:[#allocation81_spill] sm:$0xff]  ;;  %v7144_v48 = vld [vmem:[#allocation76_spill] sm:$0xff] }
  0xb0   : > { %1175 = vmatpush.msrb.mxu1 %v7125_v37  ;;  %1260 = vmatpush.msrb.mxu2 %v7126_v0  ;;  %v7146_v37 = vld [vmem:[#allocation80_spill] sm:$0xff]  ;;  %v5654_v14 = vld [vmem:[%s6871_s1 + $0x78] sm:$0xff]  ;;  %v5702_v44 = vld [vmem:[%s6871_s1 + $0xe8] sm:$0xff] }
  0xb1   : > { %1349 = vmatpush.msrb.mxu3 %v7127_v53  ;;  %954 = vmatmul.f32.gmra.mxu1 %v5433_v1  ;;  %v7132_v1 = vld [vmem:[#allocation53_spill] sm:$0xff]  ;;  %v7151_v0 = vld [vmem:[#allocation84_spill] sm:$0xff] }
  0xb2   : > { %v5571_v58 = vld.sshfl [vmem:[#allocation1] sm:$0xff pattern:$0x75316420]  ;;  %1155 = vmatpush.msrb.mxu0 %v7128_v57  ;;  %1176 = vmatpush.msrb.mxu1 %v7129_v17  ;;  %v5575_v16 = vld.sshfl [vmem:[#allocation1 + $0x8] sm:$0xff pattern:$0x75316420] }
  0xb3   : > { %1261 = vmatpush.msrb.mxu2 %v7130_v62  ;;  %1350 = vmatpush.msrb.mxu3 %v7131_v45  ;;  %1444 = vst [vmem:[#allocation1] ss:$2 sm:$0xff] %v3818_v59  ;;  %v5668_v59 = vld [vmem:[%s6871_s1 + $0x68] sm:$0xff]  ;;  %v5673_v57 = vld [vmem:[%s6871_s1 + $0xf8] sm:$0xff]  ;;  %v4235_v62 = vld [vmem:[%s6872_s2] ss:$0 sm:$0xff] }
  0xb4   : > { %1057 = vmatmul.f32.vlgmr.msra.gmra.mxu3 %v5464_v33  ;;  %1156 = vmatpush.msrb.mxu0 %v7132_v1  ;;  %1446 = vst [vmem:[#allocation1 + $0x1] ss:$2 sm:$0xff] %v3820_v12  ;;  %v7138_v33 = vld [vmem:[#allocation44_spill] sm:$0xff] }
  0xb5   : > { %1177 = vmatpush.msrb.mxu1 %v7133_v9  ;;  %1262 = vmatpush.msrb.mxu2 %v7134_v54 }
  0xb6   : > { %1351 = vmatpush.msrb.mxu3 %v7135_v22  ;;  %1371 = vmatpush.msra.mxu0 %v7136_v50  ;;  %v1343_v26 = vld.sshfl [vmem:[#allocation1 + $0x18] sm:$0xff pattern:$0x75316420]  ;;  %v5685_v22 = vld [vmem:[%s6871_s1 + $0x60] sm:$0xff]  ;;  %v5690_v50 = vld [vmem:[%s6871_s1 + $0xf0] sm:$0xff] }
  0xb7   : > { %1178 = vmatpush.msrb.mxu1 %v7137_v5  ;;  %1263 = vmatpush.msrb.mxu2 %v5201_v42  ;;  %v1342_v42 = vld.sshfl [vmem:[#allocation1 + $0x10] sm:$0xff pattern:$0x75316420]  ;;  %v5695_v5 = vld [vmem:[%s6871_s1 + $0x58] sm:$0xff] }
  0xb8   : > { %1352 = vmatpush.msrb.mxu3 %v7138_v33  ;;  %1372 = vmatpush.msra.mxu0 %v7139_v40  ;;  %1448 = vst [vmem:[#allocation1 + $0x10] ss:$2 sm:$0xff] %v3822_v6 }
  0xb9   : > { %1179 = vmatpush.msrb.mxu1 %v7140_v18  ;;  %1264 = vmatmul.f32.vlgmr.msrb.gmra.mxu2 %v1244_v28  ;;  %1450 = vst [vmem:[#allocation1 + $0x11] ss:$2 sm:$0xff] %v3824_v27  ;;  %v7145_v28 = vld [vmem:[#allocation55_spill] sm:$0xff] }
  0xba   : > { %1353 = vmatpush.msrb.mxu3 %v5590_v35  ;;  %1373 = vmatpush.msra.mxu0 %v7141_v43 }
  0xbb   : > { %1455 = vmatpush.msra.mxu1 %v7142_v32  ;;  %1157 = vmatmul.f32.vlgmr.msrb.gmra.mxu0 %v5492_v11  ;;  %v5612_v11 = vld [vmem:[%s6871_s1 + $0x330] sm:$0xff] }
  0xbc   : > { %1180 = vmatmul.f32.vlgmr.msrb.gmra.mxu1 %v5494_v21  ;;  %1354 = vmatpush.msrb.mxu3 %v7143_v8  ;;  %v7147_v21 = vld [vmem:[#allocation59_spill] sm:$0xff] }
  0xbd   : > { %1374 = vmatpush.msra.mxu0 %v7144_v48  ;;  %1456 = vmatpush.msra.mxu1 %v5227_v56  ;;  %v7148_v56 = vld [vmem:[#allocation83_spill] sm:$0xff] }
  0xbe   : > { %1060 = vmatmul.f32.gmra.mxu3 %v5483_v47  ;;  %v7149_v47 = vld [vmem:[#allocation86_spill] sm:$0xff]  ;;  %1640 = vmatpush.msra.mxu2 %v5654_v14 }
  0xbf   : > { %1355 = vmatpush.msrb.mxu3 %v7145_v28  ;;  %1375 = vmatpush.msra.mxu0 %v7146_v37  ;;  %v5713_v28 = vld [vmem:[%s6871_s1 + $0x50] sm:$0xff]  ;;  %v5718_v37 = vld [vmem:[%s6871_s1 + $0xe0] sm:$0xff] }
  0xc0   : > { %1457 = vmatpush.msra.mxu1 %v5240_v30  ;;  %v7150_v30 = vld [vmem:[#allocation64_spill] sm:$0xff] }
  0xc1   : > { %1356 = vmatpush.msrb.mxu3 %v7147_v21  ;;  %1376 = vmatpush.msra.mxu0 %v5218_v60  ;;  %v7152_v60 = vld [vmem:[#allocation68_spill] sm:$0xff]  ;;  %v5723_v21 = vld [vmem:[%s6871_s1 + $0x48] sm:$0xff] }
  0xc2   : > { %1458 = vmatpush.msra.mxu1 %v5267_v34  ;;  %1267 = vmatmul.f32.gmra.mxu2 %v5557_v29  ;;  %v7153_v34 = vld [vmem:[#allocation85_spill] sm:$0xff]  ;;  %v7154_v29 = vld [vmem:[#allocation71_spill] sm:$0xff] }
  0xc3   : > { %1357 = vmatpush.msrb.mxu3 %v5612_v11  ;;  %1377 = vmatpush.msra.mxu0 %v7148_v56 }
  0xc4   : > { %1459 = vmatpush.msra.mxu1 %v7149_v47  ;;  %1160 = vmatmul.f32.gmra.mxu0 %v5509_v61  ;;  %v7155_v61 = vld [vmem:[#allocation75_spill] sm:$0xff] }
  0xc5   : > { %1183 = vmatmul.f32.gmra.mxu1 %v5511_v25  ;;  %1358 = vmatpush.msrb.mxu3 %v7150_v30  ;;  %v7156_v25 = vld [vmem:[#allocation79_spill] sm:$0xff] }
  0xc6   : > { %1378 = vmatpush.msra.mxu0 %v7151_v0  ;;  %1460 = vmatpush.msra.mxu1 %v5295_v4  ;;  %v7157_v4 = vld [vmem:[#allocation82_spill] sm:$0xff]  ;;  %v5730_v47 = vld [vmem:[%s6871_s1 + $0xd8] sm:$0xff]  ;;  %v5737_v0 = vld [vmem:[%s6871_s1 + $0x40] sm:$0xff] }
  0xc7   : > { %1359 = vmatpush.msrb.mxu3 %v7152_v60  ;;  %v5742_v60 = vld [vmem:[%s6871_s1 + $0xd0] sm:$0xff] }
  0xc8   : > { %1379 = vmatpush.msra.mxu0 %v7153_v34  ;;  %1461 = vmatpush.msra.mxu1 %v5312_v2  ;;  %v415_v2 = vpop.f32.mrf.mxu0  ;;  %v5747_v34 = vld [vmem:[%s6871_s1 + $0x178] sm:$0xff] }
  0xc9   : > { %1360 = vmatpush.msrb.mxu3 %v7154_v29 }
  0xca   : > { %1380 = vmatpush.msra.mxu0 %v5287_v20  ;;  %1462 = vmatpush.msra.mxu1 %v5335_v10  ;;  %v1451_v20 = vld.sshfl [vmem:[#allocation1] sm:$0xff pattern:$0x75316420] }
  0xcb   : > { %1361 = vmatpush.msrb.mxu3 %v7155_v61 }
  0xcc   : > { %1381 = vmatpush.msra.mxu0 %v5304_v38  ;;  %1463 = vmatpush.msra.mxu1 %v5354_v51  ;;  %v1452_v38 = vld.sshfl [vmem:[#allocation1 + $0x10] sm:$0xff pattern:$0x75316420] }
  0xcd   : > { %1362 = vmatpush.msrb.mxu3 %v7156_v25  ;;  %v5755_v25 = vld [vmem:[%s6871_s1 + $0x38] sm:$0xff] }
  0xce   : > { %1382 = vmatpush.msra.mxu0 %v5321_v7  ;;  %1464 = vmatpush.msra.mxu1 %v5374_v15  ;;  %v4373_v7 = vmov 0.0  }
  0xcf   : > { %1363 = vmatpush.msrb.mxu3 %v7157_v4  ;;  %278 = vst [vmem:[#allocation2] sm:$0x1f] %v4373_v7  ;;  %v5760_v4 = vld [vmem:[%s6871_s1 + $0xc8] sm:$0xff] }
  0xd0   : > { %1383 = vmatpush.msra.mxu0 %v5349_v13  ;;  %1465 = vmatpush.msra.mxu1 %v5392_v46  ;;  %279 = vst [vmem:[#allocation2 + $0x60] sm:$0x1f] %v4373_v7  ;;  %v418_v10 = vpop.f32.mrf.mxu0  ;;  %v438_v13 = vpop.f32.mrf.mxu1 }
  0xd1   : > { %1364 = vmatmul.f32.vlgmr.msrb.gmra.mxu3 %v5571_v58  ;;  %280 = vst [vmem:[#allocation2] sm:$0x1] %v4373_v7  ;;  %v5663_v58 = vld [vmem:[%s6871_s1 + $0x70] sm:$0xff] }
  0xd2   : > { %1384 = vmatpush.msra.mxu0 %v5365_v55  ;;  %1466 = vmatpush.msra.mxu1 %v5406_v41  ;;  %281 = vst [vmem:[#allocation2 + $0x90] sm:$0x1] %v4373_v7 }
  0xd3   : > { %282 = vst [vmem:[#allocation2 + $0x20] sm:$0x1] %v4373_v7  ;;  %1641 = vmatpush.msra.mxu2 %v5663_v58  ;;  %1663 = vmatpush.msra.mxu3 %v5673_v57 }
  0xd4   : > { %1385 = vmatpush.msra.mxu0 %v5387_v19  ;;  %1467 = vmatpush.msra.mxu1 %v5423_v63  ;;  %283 = vst [vmem:[#allocation2 + $0x50] sm:$0x1] %v4373_v7  ;;  %v439_v63 = vadd.f32 %v438_v13, %v415_v2  ;;  %v5774_v2 = vld [vmem:[%s6871_s1 + $0x30] sm:$0xff]  ;;  %v5791_v13 = vld [vmem:[%s6871_s1 + $0x28] sm:$0xff] }
  0xd5   : > { %284 = vst [vmem:[#allocation2 + $0x58] sm:$0x1] %v4373_v7  ;;  %1642 = vmatpush.msra.mxu2 %v5668_v59  ;;  %1664 = vmatpush.msra.mxu3 %v5690_v50 }
  0xd6   : > { %1386 = vmatpush.msra.mxu0 %v5401_v23  ;;  %1468 = vmatpush.msra.mxu1 %v5440_v31  ;;  %286 = vst [vmem:[#allocation2 + $0x48] sm:$0x1] %v4373_v7 }
  0xd7   : > { %1387 = vmatmul.f32.vlgmr.msra.gmra.mxu0 %v5575_v16  ;;  %288 = vst [vmem:[#allocation2 + $0x68] sm:$0x1] %v4373_v7  ;;  %1643 = vmatpush.msra.mxu2 %v5685_v22 }
  0xd8   : > { %1469 = vmatpush.msra.mxu1 %v5451_v36  ;;  %285 = vst [vmem:[#allocation2 + $0x28] sm:$0x1] %v4373_v7  ;;  %v595_v55 = vpop.f32.mrf.mxu3  ;;  %1665 = vmatpush.msra.mxu3 %v5702_v44 }
  0xd9   : > { %1367 = vmatmul.f32.gmra.mxu3 %v1342_v42  ;;  %287 = vst [vmem:[#allocation2 + $0x8] sm:$0x1] %v4373_v7  ;;  %v441_v19 = vpop.f32.mrf.mxu1  ;;  %1644 = vmatpush.msra.mxu2 %v5695_v5  ;;  %v5779_v7 = vld [vmem:[%s6871_s1 + $0xc0] sm:$0xff] }
  0xda   : > { %1470 = vmatpush.msra.mxu1 %v5459_v3  ;;  %v442_v45 = vadd.f32 %v441_v19, %v418_v10  ;;  %1666 = vmatpush.msra.mxu3 %v5718_v37  ;;  %v5786_v10 = vld [vmem:[%s6871_s1 + $0x168] sm:$0xff]  ;;  %v5815_v19 = vld [vmem:[%s6871_s1 + $0xb0] sm:$0xff] }
  0xdb   : > { %1471 = vmatmul.f32.vlgmr.msra.gmra.mxu1 %v1451_v20  ;;  %1645 = vmatpush.msra.mxu2 %v5713_v28 }
  0xdc   : > { %1667 = vmatpush.msra.mxu3 %v5730_v47  ;;  %1686 = vmatpush.msrb.mxu0 %v5747_v34 }
  0xdd   : > { %1646 = vmatpush.msra.mxu2 %v5723_v21 }
  0xde   : > { %v461_v51 = vpop.f32.mrf.mxu2  ;;  %1668 = vmatpush.msra.mxu3 %v5742_v60 }
  0xdf   : > { %1390 = vmatmul.f32.gmra.mxu0 %v1343_v26  ;;  %v462_v24 = vadd.f32 %v461_v51, %v439_v63  ;;  %1647 = vmatpush.msra.mxu2 %v5737_v0  ;;  %v5796_v51 = vld [vmem:[%s6871_s1 + $0xb8] sm:$0xff]  ;;  %v5838_v63 = vld [vmem:[%s6871_s1 + $0x150] sm:$0xff] }
  0xe0   : > { %1669 = vmatpush.msra.mxu3 %v5760_v4 }
  0xe1   : > { %1648 = vmatpush.msra.mxu2 %v5755_v25 }
  0xe2   : > { %1670 = vmatpush.msra.mxu3 %v5779_v7 }
  0xe3   : > { %1474 = vmatmul.f32.gmra.mxu1 %v1452_v38  ;;  %v5769_v38 = vld [vmem:[%s6871_s1 + $0x170] sm:$0xff]  ;;  %1649 = vmatpush.msra.mxu2 %v5774_v2 }
  0xe4   : > { %1687 = vmatpush.msrb.mxu0 %v5769_v38  ;;  %1671 = vmatpush.msra.mxu3 %v5796_v51 }
  0xe5   : > { %1650 = vmatpush.msra.mxu2 %v5791_v13 }
  0xe6   : > { %1688 = vmatpush.msrb.mxu0 %v5786_v10  ;;  %1672 = vmatpush.msra.mxu3 %v5815_v19 }
  0xe7   : > { %v618_v15 = vpop.f32.mrf.mxu0 }
  0xe8   : > { %v619_v31 = vadd.f32 %v618_v15, %v595_v55  ;;  %v5804_v55 = vld [vmem:[%s6871_s1 + $0x160] sm:$0xff] }
  0xe9   : > { %v5810_v15 = vld [vmem:[%s6871_s1 + $0x20] sm:$0xff]  ;;  %1689 = vmatpush.msrb.mxu0 %v5804_v55 }
  0xea   : > { %1651 = vmatpush.msra.mxu2 %v5810_v15 }
  0xeb   : > { %v641_v36 = vpop.f32.mrf.mxu1 }
  0xec   : > { %v642_v52 = vadd.f32 %v641_v36, %v619_v31  ;;  %v5843_v31 = vld [vmem:[%s6871_s1 + $0x10] sm:$0xff]  ;;  %v5850_v36 = vld [vmem:[%s6871_s1 + $0xa0] sm:$0xff] }
  0xee   : > { %v649_v16 = vadd.f32 %v642_v52, %v462_v24  ;;  %v5866_v24 = vld [vmem:[%s6871_s1 + $0x98] sm:$0xff]  ;;  %v1585_v52 = vld [vmem:[%s6871_s1 + $0x140] sm:$0xff] }
  0xf3   : > { %v464_v46 = vpop.f32.mrf.mxu2 }
  0xf4   : > { %v465_v18 = vadd.f32 %v464_v46, %v442_v45  ;;  %v5822_v46 = vld [vmem:[%s6871_s1 + $0x158] sm:$0xff]  ;;  %v5901_v45 = vld [vmem:[%s6871_s1 + $0x270] sm:$0xff] }
  0xf5   : > { %1690 = vmatpush.msrb.mxu0 %v5822_v46 }
  0xf7   : > { %1691 = vmatpush.msrb.mxu0 %v5838_v63 }
  0xfd   : > { %v621_v41 = vpop.f32.mrf.mxu0 }
 0x101   : > { %v598_v23 = vpop.f32.mrf.mxu3 }
 0x102   : > { %v622_v1 = vadd.f32 %v621_v41, %v598_v23  ;;  %v5827_v23 = vld [vmem:[%s6871_s1 + $0x18] sm:$0xff]  ;;  %v5832_v41 = vld [vmem:[%s6871_s1 + $0xa8] sm:$0xff] }
 0x103   : > { %v644_v9 = vpop.f32.mrf.mxu1  ;;  %1652 = vmatpush.msra.mxu2 %v5827_v23  ;;  %1673 = vmatpush.msra.mxu3 %v5832_v41 }
 0x104   : > { %v645_v6 = vadd.f32 %v644_v9, %v622_v1  ;;  %v1583_v1 = vld [vmem:[%s6871_s1 + $0x130] sm:$0xff]  ;;  %v5911_v9 = vld [vmem:[%s6871_s1 + $0x80] sm:$0xff] }
 0x105   : > { %1653 = vmatpush.msra.mxu2 %v5843_v31  ;;  %1674 = vmatpush.msra.mxu3 %v5850_v36  ;;  %7158 = vst [vmem:[#allocation13_spill] sm:$0xff] %v5911_v9 }
 0x106   : > { %v650_v8 = vadd.f32 %v645_v6, %v465_v18  ;;  %v5935_v18 = vld [vmem:[%s6871_s1 + $0x1f8] sm:$0xff]  ;;  %v1581_v6 = vld [vmem:[%s6871_s1 + $0x120] sm:$0xff] }
 0x107   : > { %v779_v3 = vpop.f32.mrf.mxu2  ;;  %1675 = vmatpush.msra.mxu3 %v5866_v24  ;;  %1819 = vmatpush.msrb.mxu1 %v5935_v18 }
 0x10f   : > { %v802_v49 = vpop.f32.mrf.mxu3 }
 0x110   : > { %v803_v53 = vadd.f32 %v802_v49, %v779_v3  ;;  %v1586_v3 = vld [vmem:[%s6871_s1 + $0x148] sm:$0xff] }
 0x111   : > { %v825_v17 = vpop.f32.mrf.mxu0  ;;  %v782_v40 = vpop.f32.mrf.mxu2  ;;  %v5859_v49 = vld [vmem:[%s6871_s1 + $0x8] sm:$0xff]  ;;  %1692 = vmatpush.msrb.mxu0 %v1586_v3  ;;  %v6000_v3 = vld [vmem:[%s6871_s1 + $0x1e0] sm:$0xff] }
 0x112   : > { %v826_v12 = vadd.f32 %v825_v17, %v803_v53  ;;  %v5875_v53 = vld [vmem:[%s6871_s1] sm:$0xff]  ;;  %1654 = vmatpush.msra.mxu2 %v5859_v49  ;;  %v5881_v17 = vld [vmem:[%s6871_s1 + $0x90] sm:$0xff] }
 0x113   : > { %1693 = vmatpush.msrb.mxu0 %v1585_v52  ;;  %1676 = vmatpush.msra.mxu3 %v5881_v17  ;;  %v1578_v52 = vld [vmem:[%s6871_s1 + $0x108] sm:$0xff] }
 0x114   : > { %v833_v54 = vadd.f32 %v826_v12, %v649_v16  ;;  %v5886_v16 = vld [vmem:[%s6871_s1 + $0x278] sm:$0xff]  ;;  %1655 = vmatpush.msra.mxu2 %v5875_v53 }
 0x115   : > { %v1584_v12 = vld [vmem:[%s6871_s1 + $0x138] sm:$0xff] }
 0x116   : > { %v843_v33 = vadd.f32 %v4235_v62, %v833_v54  ;;  %1842 = vmatpush.msrb.mxu2 %v5886_v16  ;;  %1694 = vmatpush.msrb.mxu0 %v1584_v12  ;;  %v6010_v12 = vld [vmem:[%s6871_s1 + $0x248] sm:$0xff] }
 0x117   : > { %v805_v39 = vpop.f32.mrf.mxu3  ;;  %7166 = vst [vmem:[#allocation20_spill] sm:$0xff] %v6010_v12 }
 0x118   : > { %v806_v27 = vadd.f32 %v805_v39, %v782_v40  ;;  %v847_v43 = vrot.slane %v843_v33, 4  ;;  %851 = vst [vmem:[%s5704_s20] sm:$0xf] %v843_v33  ;;  %v855_v42 = vmax.f32 %v843_v33, 0.0  ;;  %1843 = vmatpush.msrb.mxu2 %v5901_v45  ;;  %1695 = vmatpush.msrb.mxu0 %v1583_v1  ;;  %v1582_v33 = vld [vmem:[%s6871_s1 + $0x128] sm:$0xff]  ;;  %v5928_v39 = vld [vmem:[%s6871_s1 + $0x2f8] sm:$0xff] }
 0x119   : > { %v828_v32 = vpop.f32.mrf.mxu0  ;;  %v5923_v40 = vld [vmem:[%s6871_s1 + $0x268] sm:$0xff]  ;;  %7159 = vst [vmem:[#allocation16_spill] sm:$0xff] %v5928_v39  ;;  %v6015_v1 = vld [vmem:[%s6871_s1 + $0x2d8] sm:$0xff] }
 0x11a   : > { %852 = vst [vmem:[%s5704_s20 + $0x10] sm:$0xf] %v847_v43  ;;  %v856_v26 = vmax.f32 %v847_v43, 0.0  ;;  %v829_v48 = vadd.f32 %v828_v32, %v806_v27  ;;  %1844 = vmatpush.msrb.mxu2 %v5923_v40  ;;  %1696 = vmatpush.msrb.mxu0 %v1582_v33  ;;  %v5944_v27 = vld [vmem:[%s6871_s1 + $0x260] sm:$0xff]  ;;  %v5949_v43 = vld [vmem:[%s6871_s1 + $0x2f0] sm:$0xff]  ;;  %v5966_v32 = vld [vmem:[%s6871_s1 + $0x258] sm:$0xff] }
 0x11b   : > { %860 = vst [vmem:[#allocation2 + $0x70] sm:$0xf] %v855_v42  ;;  %v5956_v42 = vld [vmem:[%s6871_s1 + $0x1f0] sm:$0xff]  ;;  %v6021_v33 = vld [vmem:[%s6871_s1 + $0x1d8] sm:$0xff] }
 0x11c   : > { %861 = vst [vmem:[#allocation2 + $0x18] sm:$0xf] %v856_v26  ;;  %v834_v56 = vadd.f32 %v829_v48, %v650_v8  ;;  %1845 = vmatpush.msrb.mxu2 %v5944_v27  ;;  %1697 = vmatpush.msrb.mxu0 %v1581_v6  ;;  %v1580_v26 = vld [vmem:[%s6871_s1 + $0x118] sm:$0xff]  ;;  %v5971_v8 = vld [vmem:[%s6871_s1 + $0x2e8] sm:$0xff]  ;;  %v1577_v6 = vld [vmem:[%s6871_s1 + $0x100] sm:$0xff] }
 0x11d   : > { %7160 = vst [vmem:[#allocation31_spill] sm:$0xff] %v5944_v27  ;;  %1820 = vmatpush.msrb.mxu1 %v5956_v42  ;;  %v5978_v48 = vld [vmem:[%s6871_s1 + $0x1e8] sm:$0xff]  ;;  %v3832_v27 = vld [vmem:[%s4769_s15 + $0x140] sm:$0xf] }
 0x11e   : > { %v844_v30 = vadd.f32 %v4235_v62, %v834_v56  ;;  %v5896_v62 = vld [vmem:[%s6871_s1 + $0x88] sm:$0xff]  ;;  %7161 = vst [vmem:[#allocation14_spill] sm:$0xff] %v5949_v43  ;;  %1698 = vmatpush.msrb.mxu0 %v1580_v26  ;;  %1846 = vmatpush.msrb.mxu2 %v5966_v32  ;;  %v1579_v56 = vld [vmem:[%s6871_s1 + $0x110] sm:$0xff]  ;;  %v6031_v26 = vld [vmem:[%s6871_s1 + $0x240] sm:$0xff] }
 0x11f   : > { %1677 = vmatpush.msra.mxu3 %v5896_v62  ;;  %7162 = vst [vmem:[#allocation18_spill] sm:$0xff] %v5966_v32  ;;  %1821 = vmatpush.msrb.mxu1 %v5978_v48  ;;  %v3917_v32 = vld [vmem:[%s6871_s1 + $0x338] sm:$0xff] }
 0x120   : > { %v848_v29 = vrot.slane %v844_v30, 4  ;;  %853 = vst [vmem:[%s5704_s20 + $0x20] sm:$0xf] %v844_v30  ;;  %v857_v61 = vmax.f32 %v844_v30, 0.0  ;;  %v5987_v30 = vld [vmem:[%s6871_s1 + $0x250] sm:$0xff]  ;;  %1699 = vmatpush.msrb.mxu0 %v1579_v56 }
 0x121   : > { %1678 = vmatpush.msra.mxu3 %v5911_v9  ;;  %7163 = vst [vmem:[#allocation32_spill] sm:$0xff] %v5971_v8  ;;  %1847 = vmatpush.msrb.mxu2 %v5987_v30  ;;  %v6036_v56 = vld [vmem:[%s6871_s1 + $0x2d0] sm:$0xff] }
 0x122   : > { %854 = vst [vmem:[%s5704_s20 + $0x30] sm:$0xf] %v848_v29  ;;  %v858_v20 = vmax.f32 %v848_v29, 0.0  ;;  %v5992_v29 = vld [vmem:[%s6871_s1 + $0x2e0] sm:$0xff]  ;;  %1822 = vmatpush.msrb.mxu1 %v6000_v3  ;;  %1700 = vmatpush.msrb.mxu0 %v1578_v52  ;;  %v6042_v52 = vld [vmem:[%s6871_s1 + $0x1d0] sm:$0xff] }
 0x123   : > { %862 = vst [vmem:[#allocation2 + $0x10] sm:$0xf] %v857_v61  ;;  %1865 = vmatpush.msrb.mxu3 %v5928_v39  ;;  %1848 = vmatpush.msrb.mxu2 %v6010_v12  ;;  %v6094_v39 = vld [vmem:[%s6871_s1 + $0x228] sm:$0xff]  ;;  %v6155_v9 = vld [vmem:[%s6871_s1 + $0x210] sm:$0xff] }
 0x124   : > { %863 = vst [vmem:[#allocation2 + $0x30] sm:$0xf] %v858_v20  ;;  %1823 = vmatpush.msrb.mxu1 %v6021_v33  ;;  %1701 = vmatpush.msrb.mxu0 %v1577_v6  ;;  %v6052_v6 = vld [vmem:[%s6871_s1 + $0x238] sm:$0xff] }
 0x125   : > { %v5913_v54 = vpop.f32.mrf.mxu1  ;;  %1866 = vmatpush.msrb.mxu3 %v5949_v43  ;;  %7164 = vst [vmem:[#allocation39_spill] sm:$0xff] %v5987_v30  ;;  %1849 = vmatpush.msrb.mxu2 %v6031_v26  ;;  %v6073_v43 = vld [vmem:[%s6871_s1 + $0x230] sm:$0xff]  ;;  %v6116_v30 = vld [vmem:[%s6871_s1 + $0x220] sm:$0xff] }
 0x126   : > { %7165 = vst [vmem:[#allocation15_spill] sm:$0xff] %v5992_v29  ;;  %1824 = vmatpush.msrb.mxu1 %v6042_v52 }
 0x127   : > { %1867 = vmatpush.msrb.mxu3 %v5971_v8  ;;  %7167 = vst [vmem:[#allocation35_spill] sm:$0xff] %v6015_v1  ;;  %1850 = vmatpush.msrb.mxu2 %v6052_v6 }
 0x128   : > { %7168 = vst [vmem:[#allocation43_spill] sm:$0xff] %v6021_v33  ;;  %v6326_v33 = vld [vmem:[%s6871_s1 + $0x3c8] sm:$0xff] }
 0x129   : > { %v975_v61 = vpop.f32.mrf.mxu2  ;;  %1868 = vmatpush.msrb.mxu3 %v5992_v29  ;;  %7169 = vst [vmem:[#allocation17_spill] sm:$0xff] %v6031_v26  ;;  %v6057_v26 = vld [vmem:[%s6871_s1 + $0x2c8] sm:$0xff]  ;;  %1851 = vmatpush.msrb.mxu2 %v6073_v43 }
 0x12a   : > { %7170 = vst [vmem:[#allocation22_spill] sm:$0xff] %v6036_v56 }
 0x12b   : > { %1869 = vmatpush.msrb.mxu3 %v6015_v1  ;;  %7171 = vst [vmem:[#allocation38_spill] sm:$0xff] %v6042_v52  ;;  %v3925_v1 = vld [vmem:[%s6871_s1 + $0x378] sm:$0xff]  ;;  %1852 = vmatpush.msrb.mxu2 %v6094_v39 }
 0x12c   : > { %2002 = vmatpush.msra.mxu0 %v3925_v1  ;;  %7172 = vst [vmem:[#allocation46_spill] sm:$0xff] %v6052_v6  ;;  %v3924_v1 = vld [vmem:[%s6871_s1 + $0x370] sm:$0xff] }
 0x12d   : > { %1870 = vmatpush.msrb.mxu3 %v6036_v56  ;;  %7173 = vst [vmem:[#allocation19_spill] sm:$0xff] %v6057_v26  ;;  %v6064_v56 = vld [vmem:[%s6871_s1 + $0x1c8] sm:$0xff]  ;;  %1853 = vmatpush.msrb.mxu2 %v6116_v30 }
 0x12e   : > { %v5994_v20 = vpop.f32.mrf.mxu1  ;;  %7174 = vst [vmem:[#allocation24_spill] sm:$0xff] %v6064_v56  ;;  %1825 = vmatpush.msrb.mxu1 %v6064_v56  ;;  %2003 = vmatpush.msra.mxu0 %v3924_v1  ;;  %v6085_v1 = vld [vmem:[%s6871_s1 + $0x1c0] sm:$0xff]  ;;  %v3923_v56 = vld [vmem:[%s6871_s1 + $0x368] sm:$0xff] }
 0x12f   : > { %1871 = vmatpush.msrb.mxu3 %v6057_v26  ;;  %7175 = vst [vmem:[#allocation42_spill] sm:$0xff] %v6073_v43  ;;  %v6078_v26 = vld [vmem:[%s6871_s1 + $0x2c0] sm:$0xff]  ;;  %v6106_v43 = vld [vmem:[%s6871_s1 + $0x1b8] sm:$0xff] }
 0x130   : > { %7176 = vst [vmem:[#allocation49_spill] sm:$0xff] %v6078_v26  ;;  %1826 = vmatpush.msrb.mxu1 %v6085_v1  ;;  %2004 = vmatpush.msra.mxu0 %v3923_v56  ;;  %v976_v56 = vadd.f32 %v975_v61, %v5913_v54  ;;  %v6127_v54 = vld [vmem:[%s6871_s1 + $0x1b0] sm:$0xff]  ;;  %v3921_v61 = vld [vmem:[%s6871_s1 + $0x358] sm:$0xff] }
 0x131   : > { %1872 = vmatpush.msrb.mxu3 %v6078_v26  ;;  %7177 = vst [vmem:[#allocation21_spill] sm:$0xff] %v6085_v1  ;;  %v6099_v26 = vld [vmem:[%s6871_s1 + $0x2b8] sm:$0xff]  ;;  %v3922_v1 = vld [vmem:[%s6871_s1 + $0x360] sm:$0xff] }
 0x132   : > { %v978_v6 = vpop.f32.mrf.mxu2  ;;  %7178 = vst [vmem:[#allocation26_spill] sm:$0xff] %v6094_v39  ;;  %1827 = vmatpush.msrb.mxu1 %v6106_v43  ;;  %2005 = vmatpush.msra.mxu0 %v3922_v1  ;;  %v6137_v39 = vld [vmem:[%s6871_s1 + $0x218] sm:$0xff]  ;;  %v6142_v1 = vld [vmem:[%s6871_s1 + $0x2a8] sm:$0xff] }
 0x133   : > { %7179 = vst [vmem:[#allocation47_spill] sm:$0xff] %v6099_v26  ;;  %1873 = vmatpush.msrb.mxu3 %v6099_v26  ;;  %v6121_v26 = vld [vmem:[%s6871_s1 + $0x2b0] sm:$0xff]  ;;  %1854 = vmatpush.msrb.mxu2 %v6137_v39 }
 0x134   : > { %7180 = vst [vmem:[#allocation52_spill] sm:$0xff] %v6106_v43  ;;  %1828 = vmatpush.msrb.mxu1 %v6127_v54  ;;  %2006 = vmatpush.msra.mxu0 %v3921_v61  ;;  %v6160_v61 = vld [vmem:[%s6871_s1 + $0x2a0] sm:$0xff] }
 0x135   : > { %7181 = vst [vmem:[#allocation23_spill] sm:$0xff] %v6116_v30  ;;  %1874 = vmatpush.msrb.mxu3 %v6121_v26  ;;  %1855 = vmatpush.msrb.mxu2 %v6155_v9 }
 0x136   : > { %7182 = vst [vmem:[#allocation28_spill] sm:$0xff] %v6121_v26  ;;  %v6148_v26 = vld [vmem:[%s6871_s1 + $0x1a8] sm:$0xff]  ;;  %2007 = vmatpush.msra.mxu0 %v5590_v35  ;;  %v6182_v35 = vld [vmem:[%s6871_s1 + $0x298] sm:$0xff] }
 0x137   : > { %v1058_v29 = vpop.f32.mrf.mxu3  ;;  %7183 = vst [vmem:[#allocation50_spill] sm:$0xff] %v6127_v54  ;;  %1875 = vmatpush.msrb.mxu3 %v6142_v1  ;;  %1829 = vmatpush.msrb.mxu1 %v6148_v26 }
 0x138   : > { %v1158_v8 = vpop.f32.mrf.mxu0  ;;  %7184 = vst [vmem:[#allocation56_spill] sm:$0xff] %v6137_v39  ;;  %v1066_v54 = vadd.f32 %v1058_v29, %v976_v56  ;;  %v3919_v29 = vld [vmem:[%s6871_s1 + $0x348] sm:$0xff]  ;;  %v979_v39 = vadd.f32 %v978_v6, %v5994_v20 }
 0x139   : > { %v1181_v12 = vpop.f32.mrf.mxu1  ;;  %7185 = vst [vmem:[#allocation25_spill] sm:$0xff] %v6142_v1  ;;  %1876 = vmatpush.msrb.mxu3 %v6160_v61  ;;  %2008 = vmatpush.msra.mxu0 %v3919_v29  ;;  %v6199_v29 = vld [vmem:[%s6871_s1 + $0x200] sm:$0xff] }
 0x13a   : > { %7186 = vst [vmem:[#allocation33_spill] sm:$0xff] %v6148_v26  ;;  %v1182_v52 = vadd.f32 %v1181_v12, %v1158_v8  ;;  %v6167_v8 = vld [vmem:[%s6871_s1 + $0x1a0] sm:$0xff]  ;;  %v6177_v12 = vld [vmem:[%s6871_s1 + $0x208] sm:$0xff]  ;;  %v6211_v26 = vld [vmem:[%s6871_s1 + $0x190] sm:$0xff] }
 0x13b   : > { %7187 = vst [vmem:[#allocation54_spill] sm:$0xff] %v6155_v9  ;;  %1830 = vmatpush.msrb.mxu1 %v6167_v8  ;;  %1856 = vmatpush.msrb.mxu2 %v6177_v12  ;;  %v3918_v9 = vld [vmem:[%s6871_s1 + $0x340] sm:$0xff] }
 0x13c   : > { %7188 = vst [vmem:[#allocation61_spill] sm:$0xff] %v6160_v61  ;;  %v1265_v56 = vpop.f32.mrf.mxu2  ;;  %v6188_v61 = vld [vmem:[%s6871_s1 + $0x198] sm:$0xff]  ;;  %1877 = vmatpush.msrb.mxu3 %v6182_v35  ;;  %2009 = vmatpush.msra.mxu0 %v3918_v9 }
 0x13d   : > { %7189 = vst [vmem:[#allocation27_spill] sm:$0xff] %v6167_v8  ;;  %v1189_v8 = vadd.f32 %v1182_v52, %v1066_v54  ;;  %1831 = vmatpush.msrb.mxu1 %v6188_v61  ;;  %1857 = vmatpush.msrb.mxu2 %v6199_v29 }
 0x13e   : > { %7190 = vst [vmem:[#allocation37_spill] sm:$0xff] %v6177_v12  ;;  %v6204_v12 = vld [vmem:[%s6871_s1 + $0x290] sm:$0xff]  ;;  %2010 = vmatpush.msra.mxu0 %v3917_v32  ;;  %v6236_v32 = vld [vmem:[%s6871_s1 + $0x280] sm:$0xff] }
 0x13f   : > { %7191 = vst [vmem:[#allocation58_spill] sm:$0xff] %v6182_v35  ;;  %1878 = vmatpush.msrb.mxu3 %v6204_v12  ;;  %v1273_v6 = vadd.f32 %v1265_v56, %v1189_v8  ;;  %1832 = vmatpush.msrb.mxu1 %v6211_v26  ;;  %v6242_v56 = vld [vmem:[%s6871_s1 + $0x180] sm:$0xff] }
 0x140   : > { %7192 = vst [vmem:[#allocation63_spill] sm:$0xff] %v6188_v61  ;;  %2011 = vmatpush.msra.mxu0 %v5612_v11  ;;  %v3915_v11 = vld [vmem:[%s6871_s1 + $0x328] sm:$0xff] }
 0x141   : > { %v1061_v30 = vpop.f32.mrf.mxu3  ;;  %v1161_v43 = vpop.f32.mrf.mxu0  ;;  %7193 = vst [vmem:[#allocation29_spill] sm:$0xff] %v6199_v29  ;;  %v6318_v29 = vld [vmem:[%s6871_s1 + $0x3d0] sm:$0xff] }
 0x142   : > { %v1184_v1 = vpop.f32.mrf.mxu1  ;;  %7194 = vst [vmem:[#allocation40_spill] sm:$0xff] %v6204_v12  ;;  %v1067_v54 = vadd.f32 %v1061_v30, %v979_v39  ;;  %v4236_v12 = vld [vmem:[%s6872_s2] ss:$0 sm:$0xff]  ;;  %2012 = vmatpush.msra.mxu0 %v3915_v11  ;;  %v6261_v11 = vld [vmem:[%s6871_s1 + $0x3f0] sm:$0xff] }
 0x143   : > { %v1185_v35 = vadd.f32 %v1184_v1, %v1161_v43  ;;  %7195 = vst [vmem:[#allocation60_spill] sm:$0xff] %v6211_v26  ;;  %v6223_v43 = vld [vmem:[%s6871_s1 + $0x288] sm:$0xff] }
 0x144   : > { %7196 = vst [vmem:[#allocation66_spill] sm:$0xff] %v6223_v43  ;;  %1879 = vmatpush.msrb.mxu3 %v6223_v43 }
 0x145   : > { %v1190_v30 = vadd.f32 %v1185_v35, %v1067_v54  ;;  %v1268_v8 = vpop.f32.mrf.mxu2  ;;  %7198 = vst [vmem:[#allocation45_spill] sm:$0xff] %v6236_v32 }
 0x146   : > { %1880 = vmatpush.msrb.mxu3 %v6236_v32  ;;  %7199 = vst [vmem:[#allocation62_spill] sm:$0xff] %v6242_v56  ;;  %v3914_v32 = vld [vmem:[%s6871_s1 + $0x320] sm:$0xff] }
 0x147   : > { %v1274_v54 = vadd.f32 %v1268_v8, %v1190_v30  ;;  %2013 = vmatpush.msra.mxu0 %v3914_v32  ;;  %7201 = vst [vmem:[#allocation34_spill] sm:$0xff] %v6261_v11  ;;  %v6268_v8 = vld [vmem:[%s6871_s1 + $0x318] sm:$0xff] }
 0x148   : > { %7202 = vst [vmem:[#allocation48_spill] sm:$0xff] %v6268_v8 }
 0x149   : > { %2014 = vmatpush.msra.mxu0 %v6268_v8 }
 0x154   : > { %v1365_v20 = vpop.f32.mrf.mxu3  ;;  %v1388_v52 = vpop.f32.mrf.mxu0 }
 0x155   : > { %v1389_v61 = vadd.f32 %v1388_v52, %v1365_v20 }
 0x157   : > { %v1396_v9 = vadd.f32 %v1389_v61, %v1273_v6  ;;  %v6229_v61 = vld [vmem:[%s6871_s1 + $0x188] sm:$0xff]  ;;  %v6251_v6 = vld [vmem:[%s6871_s1 + $0x3f8] sm:$0xff] }
 0x158   : > { %v1472_v39 = vpop.f32.mrf.mxu1  ;;  %7197 = vst [vmem:[#allocation30_spill] sm:$0xff] %v6229_v61  ;;  %1833 = vmatpush.msrb.mxu1 %v6229_v61 }
 0x159   : > { %v1480_v1 = vadd.f32 %v1472_v39, %v1396_v9  ;;  %7200 = vst [vmem:[#allocation69_spill] sm:$0xff] %v6251_v6 }
 0x15a   : > { %1834 = vmatpush.msrb.mxu1 %v6242_v56  ;;  %v3829_v56 = vld [vmem:[%s4769_s15 + $0xc0] sm:$0xf] }
 0x15b   : > { %v1490_v35 = vadd.f32 %v4236_v12, %v1480_v1 }
 0x15c   : > { %v1368_v20 = vpop.f32.mrf.mxu3  ;;  %v1391_v52 = vpop.f32.mrf.mxu0  ;;  %2025 = vmatpush.msra.mxu1 %v6251_v6 }
 0x15d   : > { %v1494_v9 = vrot.slane %v1490_v35, 4  ;;  %1498 = vst [vmem:[%s5704_s20 + $0x4] sm:$0xf] %v1490_v35  ;;  %v1502_v39 = vmax.f32 %v1490_v35, 0.0  ;;  %v1392_v1 = vadd.f32 %v1391_v52, %v1368_v20  ;;  %v6274_v35 = vld [vmem:[%s6871_s1 + $0x3e8] sm:$0xff]  ;;  %v6279_v20 = vld [vmem:[%s6871_s1 + $0x310] sm:$0xff] }
 0x15e   : > { %2026 = vmatpush.msra.mxu1 %v6261_v11  ;;  %7203 = vst [vmem:[#allocation65_spill] sm:$0xff] %v6274_v35  ;;  %2015 = vmatpush.msra.mxu0 %v6279_v20  ;;  %v3836_v11 = vld [vmem:[%s4769_s15 + $0x1c8] sm:$0xf] }
 0x15f   : > { %1499 = vst [vmem:[%s5704_s20 + $0x14] sm:$0xf] %v1494_v9  ;;  %v1503_v43 = vmax.f32 %v1494_v9, 0.0  ;;  %v1397_v30 = vadd.f32 %v1392_v1, %v1274_v54  ;;  %v6286_v54 = vld [vmem:[%s6871_s1 + $0x3e0] sm:$0xff]  ;;  %v6291_v9 = vld [vmem:[%s6871_s1 + $0x308] sm:$0xff] }
 0x160   : > { %1510 = vst [vmem:[#allocation1] ss:$2 sm:$0xff] %v1502_v39  ;;  %v1475_v32 = vpop.f32.mrf.mxu1  ;;  %2027 = vmatpush.msra.mxu1 %v6274_v35  ;;  %v3828_v1 = vld [vmem:[%s4769_s15 + $0x50] sm:$0xf]  ;;  %2016 = vmatpush.msra.mxu0 %v6291_v9 }
 0x161   : > { %7204 = vst [vmem:[#allocation74_spill] sm:$0xff] %v6279_v20  ;;  %v1481_v52 = vadd.f32 %v1475_v32, %v1397_v30  ;;  %v3830_v30 = vld [vmem:[%s4769_s15 + $0xc8] sm:$0xf]  ;;  %v6301_v32 = vld [vmem:[%s6871_s1 + $0x3d8] sm:$0xff]  ;;  %v6306_v20 = vld [vmem:[%s6871_s1 + $0x300] sm:$0xff] }
 0x162   : > { %1513 = vst [vmem:[#allocation1 + $0x10] ss:$2 sm:$0xff] %v1503_v43  ;;  %v3827_v43 = vld [vmem:[%s4769_s15 + $0x48] sm:$0xf]  ;;  %2028 = vmatpush.msra.mxu1 %v6286_v54  ;;  %2017 = vmatpush.msra.mxu0 %v6306_v20  ;;  %v1606_v61 = vrot.slane %v3830_v30, 4  ;;  %v1608_v30 = vrot.slane %v3836_v11, 4 }
 0x163   : > { %7205 = vst [vmem:[#allocation36_spill] sm:$0xff] %v6286_v54  ;;  %v1491_v39 = vadd.f32 %v4236_v12, %v1481_v52  ;;  %v3831_v12 = vld [vmem:[%s4769_s15 + $0xd0] sm:$0xf]  ;;  %v3826_v54 = vld [vmem:[%s4769_s15 + $0x40] sm:$0xf]  ;;  %v1605_v35 = vrot.slane %v3827_v43, 4 }
 0x164   : > { %7206 = vst [vmem:[#allocation53_spill] sm:$0xff] %v6291_v9  ;;  %2029 = vmatpush.msra.mxu1 %v6301_v32  ;;  %v3833_v9 = vld [vmem:[%s4769_s15 + $0x148] sm:$0xf]  ;;  %v6342_v11 = vld [vmem:[%s6871_s1 + $0x3b8] sm:$0xff] }
 0x165   : > { %7207 = vst [vmem:[#allocation70_spill] sm:$0xff] %v6301_v32  ;;  %v1495_v52 = vrot.slane %v1491_v39, 4  ;;  %v1504_v8 = vmax.f32 %v1491_v39, 0.0 }
 0x166   : > { %7208 = vst [vmem:[#allocation78_spill] sm:$0xff] %v6306_v20  ;;  %2030 = vmatpush.msra.mxu1 %v6318_v29  ;;  %v1607_v20 = vrot.slane %v3833_v9, 4  ;;  %v3835_v9 = vld [vmem:[%s4769_s15 + $0x1c0] sm:$0xf] }
 0x167   : > { %1500 = vst [vmem:[%s5704_s20 + $0x24] sm:$0xf] %v1491_v39  ;;  %v1511_v6 = vld.sshfl [vmem:[#allocation1] sm:$0xff pattern:$0x75316420]  ;;  %v1505_v26 = vmax.f32 %v1495_v52, 0.0 }
 0x168   : > { %1501 = vst [vmem:[%s5704_s20 + $0x34] sm:$0xf] %v1495_v52  ;;  %v1521_v32 = vrot.slane %v1511_v6, 7  ;;  %2031 = vmatpush.msra.mxu1 %v6326_v33  ;;  %v6333_v6 = vld [vmem:[%s6871_s1 + $0x3c0] sm:$0xff]  ;;  %v3839_v52 = vld [vmem:[%s4769_s15 + $0x68] sm:$0xf] }
 0x169   : > { %v1514_v39 = vld.sshfl [vmem:[#allocation1 + $0x10] sm:$0xff pattern:$0x75316420]  ;;  %1516 = vst [vmem:[#allocation1 + $0x20] ss:$2 sm:$0xff] %v1504_v8  ;;  %v1609_v8 = vsel %vm366_vm0, %v3826_v54, %v1605_v35  ;;  %v1612_v35 = vsel %vm366_vm0, %v3835_v9, %v1608_v30 }
 0x16a   : > { %1617 = vst [vmem:[#allocation1 + $0x10] ss:$2 sm:$0xff] %v3828_v1  ;;  %v1522_v43 = vrot.slane %v1514_v39, 7  ;;  %v1610_v1 = vsel %vm366_vm0, %v3829_v56, %v1606_v61  ;;  %2032 = vmatpush.msra.mxu1 %v6333_v6  ;;  %v3842_v54 = vld [vmem:[%s4769_s15 + $0xe8] sm:$0xf]  ;;  %v6352_v61 = vld [vmem:[%s6871_s1 + $0x3b0] sm:$0xff] }
 0x16b   : > { %1619 = vst [vmem:[#allocation1 + $0x11] ss:$2 sm:$0xff] %v3831_v12  ;;  %v1611_v12 = vsel %vm366_vm0, %v3832_v27, %v1607_v20  ;;  %v3840_v20 = vld [vmem:[%s4769_s15 + $0x70] sm:$0xf]  ;;  %v3845_v30 = vld [vmem:[%s4769_s15 + $0x168] sm:$0xf] }
 0x16c   : > { %1529 = vst [vmem:[#allocation2 + $0x90] sm:$0x1e] %v1521_v32  ;;  %2033 = vmatpush.msra.mxu1 %v6342_v11  ;;  %v6360_v32 = vld [vmem:[%s6871_s1 + $0x3a8] sm:$0xff]  ;;  %v3838_v9 = vld [vmem:[%s4769_s15 + $0x60] sm:$0xf] }
 0x16d   : > { %1530 = vst [vmem:[#allocation2 + $0x50] sm:$0x1e] %v1522_v43  ;;  %v1784_v43 = vrot.slane %v3839_v52, 4 }
 0x16e   : > { %1519 = vst [vmem:[#allocation1 + $0x30] ss:$2 sm:$0xff] %v1505_v26  ;;  %v3834_v26 = vld [vmem:[%s4769_s15 + $0x150] sm:$0xf]  ;;  %2034 = vmatpush.msra.mxu1 %v6352_v61 }
 0x16f   : > { %1613 = vst [vmem:[#allocation1] ss:$2 sm:$0xff] %v1609_v8  ;;  %v3848_v8 = vld [vmem:[%s4769_s15 + $0x1e8] sm:$0xf] }
 0x170   : > { %7209 = vst [vmem:[#allocation41_spill] sm:$0xff] %v6352_v61  ;;  %v1517_v56 = vld.sshfl [vmem:[#allocation1 + $0x20] sm:$0xff pattern:$0x75316420]  ;;  %2035 = vmatpush.msra.mxu1 %v6360_v32 }
 0x171   : > { %1615 = vst [vmem:[#allocation1 + $0x1] ss:$2 sm:$0xff] %v1610_v1  ;;  %v1523_v27 = vrot.slane %v1517_v56, 7  ;;  %v3841_v1 = vld [vmem:[%s4769_s15 + $0xe0] sm:$0xf] }
 0x172   : > { %1621 = vst [vmem:[#allocation1 + $0x20] ss:$2 sm:$0xff] %v1611_v12  ;;  %v1630_v39 = vld.sshfl [vmem:[#allocation1 + $0x10] sm:$0xff pattern:$0x75316420]  ;;  %v1785_v12 = vrot.slane %v3842_v54, 4 }
 0x173   : > { %7210 = vst [vmem:[#allocation57_spill] sm:$0xff] %v6360_v32  ;;  %1702 = vmatmul.f32.vlgmr.msrb.gmra.mxu0 %v1630_v39  ;;  %v6371_v56 = vld [vmem:[%s6871_s1 + $0x3a0] sm:$0xff]  ;;  %v1786_v54 = vrot.slane %v3845_v30, 4  ;;  %v6405_v30 = vld [vmem:[%s6871_s1 + $0x468] sm:$0xff] }
 0x174   : > { %1623 = vst [vmem:[#allocation1 + $0x21] ss:$2 sm:$0xff] %v1612_v35  ;;  %2199 = vmatpush.msrb.mxu0 %v5673_v57  ;;  %v3844_v35 = vld [vmem:[%s4769_s15 + $0x160] sm:$0xf]  ;;  %2036 = vmatpush.msra.mxu1 %v6371_v56  ;;  %v6378_v57 = vld [vmem:[%s6871_s1 + $0x478] sm:$0xff] }
 0x175   : > { %1531 = vst [vmem:[#allocation2 + $0x28] sm:$0x1e] %v1523_v27  ;;  %v1520_v61 = vld.sshfl [vmem:[#allocation1 + $0x30] sm:$0xff pattern:$0x75316420]  ;;  %v1787_v27 = vrot.slane %v3848_v8, 4  ;;  %v1790_v8 = vsel %vm366_vm0, %v3844_v35, %v1786_v54 }
 0x176   : > { %7211 = vst [vmem:[#allocation73_spill] sm:$0xff] %v6371_v56  ;;  %v1524_v52 = vrot.slane %v1520_v61, 7  ;;  %2200 = vmatpush.msrb.mxu0 %v5690_v50  ;;  %v6385_v61 = vld [vmem:[%s6871_s1 + $0x470] sm:$0xff]  ;;  %v3847_v56 = vld [vmem:[%s4769_s15 + $0x1e0] sm:$0xf]  ;;  %v6392_v50 = vld [vmem:[%s6871_s1 + $0x398] sm:$0xff] }
 0x177   : > { %1796 = vst [vmem:[#allocation1 + $0x10] ss:$2 sm:$0xff] %v3840_v20  ;;  %v1788_v20 = vsel %vm366_vm0, %v3838_v9, %v1784_v43  ;;  %v3843_v43 = vld [vmem:[%s4769_s15 + $0xf0] sm:$0xf]  ;;  %2037 = vmatpush.msra.mxu1 %v6392_v50 }
 0x178   : > { %1625 = vst [vmem:[#allocation1 + $0x30] ss:$2 sm:$0xff] %v3834_v26  ;;  %v1628_v39 = vld.sshfl [vmem:[#allocation1] sm:$0xff pattern:$0x75316420]  ;;  %v1789_v26 = vsel %vm366_vm0, %v3841_v1, %v1785_v12  ;;  %2201 = vmatpush.msrb.mxu0 %v5702_v44  ;;  %v1791_v1 = vsel %vm366_vm0, %v3847_v56, %v1787_v27  ;;  %v6417_v12 = vld [vmem:[%s6871_s1 + $0x388] sm:$0xff] }
 0x179   : > { %v1629_v32 = vld.sshfl [vmem:[#allocation1 + $0x8] sm:$0xff pattern:$0x75316420]  ;;  %1532 = vst [vmem:[#allocation2 + $0x8] sm:$0x1e] %v1524_v52  ;;  %1656 = vmatmul.f32.vlgmr.msra.gmra.mxu2 %v1628_v39  ;;  %v6422_v44 = vld [vmem:[%s6871_s1 + $0x460] sm:$0xff] }
 0x17a   : > { %1679 = vmatmul.f32.vlgmr.msra.gmra.mxu3 %v1629_v32  ;;  %2048 = vmatpush.msra.mxu2 %v6378_v57  ;;  %v6400_v32 = vld [vmem:[%s6871_s1 + $0x390] sm:$0xff]  ;;  %1792 = vst [vmem:[#allocation1] ss:$2 sm:$0xff] %v1788_v20  ;;  %v6432_v56 = vld [vmem:[%s6871_s1 + $0x458] sm:$0xff]  ;;  %v3898_v52 = vld [vmem:[%s4769_s15 + $0x80] sm:$0xf] }
 0x17b   : > { %2176 = vmatpush.msra.mxu3 %v5654_v14  ;;  %v3837_v9 = vld [vmem:[%s4769_s15 + $0x1d0] sm:$0xf]  ;;  %v1631_v14 = vld.sshfl [vmem:[#allocation1 + $0x20] sm:$0xff pattern:$0x75316420]  ;;  %2202 = vmatpush.msrb.mxu0 %v5718_v37 }
 0x17c   : > { %2049 = vmatpush.msra.mxu2 %v6385_v61  ;;  %1794 = vst [vmem:[#allocation1 + $0x1] ss:$2 sm:$0xff] %v1789_v26  ;;  %v1632_v35 = vld.sshfl [vmem:[#allocation1 + $0x28] sm:$0xff pattern:$0x75316420]  ;;  %2038 = vmatpush.msra.mxu1 %v6400_v32 }
 0x17d   : > { %2177 = vmatpush.msra.mxu3 %v5663_v58  ;;  %1798 = vst [vmem:[#allocation1 + $0x11] ss:$2 sm:$0xff] %v3843_v43  ;;  %v3899_v58 = vld [vmem:[%s4769_s15 + $0x88] sm:$0xf]  ;;  %2203 = vmatpush.msrb.mxu0 %v5730_v47  ;;  %v6448_v47 = vld [vmem:[%s6871_s1 + $0x450] sm:$0xff] }
 0x17e   : > { %2050 = vmatpush.msra.mxu2 %v6405_v30  ;;  %1800 = vst [vmem:[#allocation1 + $0x20] ss:$2 sm:$0xff] %v1790_v8  ;;  %2039 = vmatpush.msra.mxu1 %v6417_v12  ;;  %v3902_v37 = vld [vmem:[%s4769_s15 + $0x108] sm:$0xf]  ;;  %v3900_v54 = vld [vmem:[%s4769_s15 + $0x90] sm:$0xf] }
 0x17f   : > { %2178 = vmatpush.msra.mxu3 %v5668_v59  ;;  %1802 = vst [vmem:[#allocation1 + $0x21] ss:$2 sm:$0xff] %v1791_v1  ;;  %v6442_v59 = vld [vmem:[%s6871_s1 + $0x380] sm:$0xff]  ;;  %v1967_v27 = vrot.slane %v3899_v58, 4  ;;  %v3903_v39 = vld [vmem:[%s4769_s15 + $0x110] sm:$0xf]  ;;  %2204 = vmatpush.msrb.mxu0 %v5742_v60 }
 0x180   : > { %2051 = vmatpush.msra.mxu2 %v6422_v44  ;;  %1627 = vst [vmem:[#allocation1 + $0x31] ss:$2 sm:$0xff] %v3837_v9  ;;  %v3901_v20 = vld [vmem:[%s4769_s15 + $0x100] sm:$0xf]  ;;  %v1968_v26 = vrot.slane %v3902_v37, 4  ;;  %2040 = vmatpush.msra.mxu1 %v6442_v59 }
 0x181   : > { %2179 = vmatpush.msra.mxu3 %v5685_v22  ;;  %7212 = vst [vmem:[#allocation44_spill] sm:$0xff] %v6442_v59  ;;  %1659 = vmatmul.f32.gmra.mxu2 %v1631_v14  ;;  %v6455_v22 = vld [vmem:[%s6871_s1 + $0x448] sm:$0xff]  ;;  %v3846_v1 = vld [vmem:[%s4769_s15 + $0x170] sm:$0xf]  ;;  %v6471_v37 = vld [vmem:[%s6871_s1 + $0x440] sm:$0xff] }
 0x182   : > { %1682 = vmatmul.f32.gmra.mxu3 %v1632_v35  ;;  %2052 = vmatpush.msra.mxu2 %v6432_v56  ;;  %v3905_v43 = vld [vmem:[%s4769_s15 + $0x188] sm:$0xf]  ;;  %v1971_v35 = vsel %vm366_vm0, %v3898_v52, %v1967_v27  ;;  %v3904_v60 = vld [vmem:[%s4769_s15 + $0x180] sm:$0xf]  ;;  %v3849_v52 = vld [vmem:[%s4769_s15 + $0x1f0] sm:$0xf] }
 0x183   : > { %2180 = vmatpush.msra.mxu3 %v5695_v5  ;;  %v3908_v8 = vld [vmem:[%s4769_s15 + $0x208] sm:$0xf]  ;;  %v1807_v14 = vld.sshfl [vmem:[#allocation1] sm:$0xff pattern:$0x75316420]  ;;  %v1969_v58 = vrot.slane %v3905_v43, 4  ;;  %2205 = vmatpush.msrb.mxu0 %v5760_v4  ;;  %v1972_v4 = vsel %vm366_vm0, %v3901_v20, %v1968_v26 }
 0x184   : > { %v1808_v9 = vld.sshfl [vmem:[#allocation1 + $0x8] sm:$0xff pattern:$0x75316420]  ;;  %2053 = vmatpush.msra.mxu2 %v6448_v47  ;;  %v1809_v5 = vld.sshfl [vmem:[#allocation1 + $0x10] sm:$0xff pattern:$0x75316420]  ;;  %1835 = vmatmul.f32.vlgmr.msrb.gmra.mxu1 %v1807_v14 }
 0x185   : > { %2181 = vmatpush.msra.mxu3 %v5713_v28  ;;  %1975 = vst [vmem:[#allocation1] ss:$2 sm:$0xff] %v1971_v35  ;;  %v1970_v59 = vrot.slane %v3908_v8, 4  ;;  %v3907_v28 = vld [vmem:[%s4769_s15 + $0x200] sm:$0xf]  ;;  %v6482_v27 = vld [vmem:[%s6871_s1 + $0x438] sm:$0xff]  ;;  %2206 = vmatpush.msrb.mxu0 %v5779_v7  ;;  %v1973_v8 = vsel %vm366_vm0, %v3904_v60, %v1969_v58 }
 0x186   : > { %1979 = vst [vmem:[#allocation1 + $0x10] ss:$2 sm:$0xff] %v3900_v54  ;;  %2054 = vmatpush.msra.mxu2 %v6455_v22  ;;  %2279 = vmatpush.msrb.mxu1 %v5747_v34  ;;  %v1810_v54 = vld.sshfl [vmem:[#allocation1 + $0x20] sm:$0xff pattern:$0x75316420]  ;;  %v6493_v7 = vld [vmem:[%s6871_s1 + $0x430] sm:$0xff] }
 0x187   : > { %2182 = vmatpush.msra.mxu3 %v5723_v21  ;;  %v1633_v43 = vld.sshfl [vmem:[#allocation1 + $0x30] sm:$0xff pattern:$0x75316420]  ;;  %1981 = vst [vmem:[#allocation1 + $0x11] ss:$2 sm:$0xff] %v3903_v39  ;;  %v1974_v34 = vsel %vm366_vm0, %v3907_v28, %v1970_v59  ;;  %v6504_v26 = vld [vmem:[%s6871_s1 + $0x428] sm:$0xff]  ;;  %2207 = vmatpush.msrb.mxu0 %v5796_v51 }
 0x188   : > { %2055 = vmatpush.msra.mxu2 %v6471_v37  ;;  %v1811_v21 = vld.sshfl [vmem:[#allocation1 + $0x28] sm:$0xff pattern:$0x75316420]  ;;  %1804 = vst [vmem:[#allocation1 + $0x30] ss:$2 sm:$0xff] %v3846_v1  ;;  %1705 = vmatmul.f32.gmra.mxu0 %v1633_v43  ;;  %v6515_v1 = vld [vmem:[%s6871_s1 + $0x420] sm:$0xff] }
 0x189   : > { %2183 = vmatpush.msra.mxu3 %v5737_v0  ;;  %1858 = vmatmul.f32.vlgmr.msrb.gmra.mxu2 %v1808_v9  ;;  %1806 = vst [vmem:[#allocation1 + $0x31] ss:$2 sm:$0xff] %v3849_v52  ;;  %v3963_v39 = vld [vmem:[%s4769_s15 + $0x58] sm:$0xf]  ;;  %v3966_v59 = vld [vmem:[%s4769_s15 + $0x150] sm:$0xf] }
 0x18a   : > { %1881 = vmatmul.f32.vlgmr.msrb.gmra.mxu3 %v1809_v5  ;;  %2056 = vmatpush.msra.mxu2 %v6482_v27  ;;  %1977 = vst [vmem:[#allocation1 + $0x1] ss:$2 sm:$0xff] %v1972_v4  ;;  %v3965_v0 = vld [vmem:[%s4769_s15 + $0xd8] sm:$0xf]  ;;  %v3906_v35 = vld [vmem:[%s4769_s15 + $0x190] sm:$0xf] }
 0x18b   : > { %2184 = vmatpush.msra.mxu3 %v5755_v25  ;;  %v3967_v20 = vld [vmem:[%s4769_s15 + $0x158] sm:$0xf]  ;;  %2280 = vmatpush.msrb.mxu1 %v5769_v38  ;;  %1983 = vst [vmem:[#allocation1 + $0x20] ss:$2 sm:$0xff] %v1973_v8  ;;  %v3968_v25 = vld [vmem:[%s4769_s15 + $0x1d0] sm:$0xf] }
 0x18c   : > { %v2155_v9 = vrot.slane %v3967_v20, 4  ;;  %2057 = vmatpush.msra.mxu2 %v6493_v7  ;;  %1985 = vst [vmem:[#allocation1 + $0x21] ss:$2 sm:$0xff] %v1974_v34  ;;  %v3969_v14 = vld [vmem:[%s4769_s15 + $0x1d8] sm:$0xf]  ;;  %1838 = vmatmul.f32.gmra.mxu1 %v1810_v54  ;;  %v2154_v28 = vrot.slane %v3965_v0, 4 }
 0x18d   : > { %2185 = vmatpush.msra.mxu3 %v5774_v2  ;;  %v6520_v38 = vld [vmem:[%s6871_s1 + $0x418] sm:$0xff]  ;;  %v2153_v2 = vrot.slane %v3963_v39, 4  ;;  %v2156_v5 = vrot.slane %v3969_v14, 4  ;;  %v3962_v52 = vld [vmem:[%s4769_s15 + $0x50] sm:$0xf]  ;;  %2208 = vmatpush.msrb.mxu0 %v5815_v19  ;;  %v6547_v8 = vld [vmem:[%s6871_s1 + $0x408] sm:$0xff] }
 0x18e   : > { %v2159_v58 = vsel %vm366_vm0, %v3966_v59, %v2155_v9  ;;  %2058 = vmatpush.msra.mxu2 %v6504_v26  ;;  %v1992_v60 = vld.sshfl [vmem:[#allocation1 + $0x10] sm:$0xff pattern:$0x75316420]  ;;  %2281 = vmatpush.msrb.mxu1 %v5786_v10  ;;  %v3972_v34 = vld [vmem:[%s4769_s15 + $0x140] sm:$0x1e] }
 0x18f   : > { %2186 = vmatpush.msra.mxu3 %v5791_v13  ;;  %v3909_v43 = vld [vmem:[%s4769_s15 + $0x210] sm:$0xf]  ;;  %v2160_v54 = vsel %vm366_vm0, %v3968_v25, %v2156_v5  ;;  %2165 = vst [vmem:[#allocation1 + $0x10] ss:$2 sm:$0xff] %v2159_v58  ;;  %v2157_v10 = vsel %vm366_vm0, %v3962_v52, %v2153_v2  ;;  %2209 = vmatpush.msrb.mxu0 %v5832_v41  ;;  %v3970_v41 = vld [vmem:[%s4769_s15 + $0x40] sm:$0x1e] }
 0x190   : > { %v3964_v4 = vld [vmem:[%s4769_s15 + $0xd0] sm:$0xf]  ;;  %2059 = vmatpush.msra.mxu2 %v6515_v1  ;;  %2167 = vst [vmem:[#allocation1 + $0x11] ss:$2 sm:$0xff] %v2160_v54  ;;  %2282 = vmatpush.msrb.mxu1 %v5804_v55  ;;  %v3971_v55 = vld [vmem:[%s4769_s15 + $0xc0] sm:$0x1e] }
 0x191   : > { %v1812_v51 = vld.sshfl [vmem:[#allocation1 + $0x30] sm:$0xff pattern:$0x75316420]  ;;  %2187 = vmatpush.msra.mxu3 %v5810_v15  ;;  %1861 = vmatmul.f32.gmra.mxu2 %v1811_v21  ;;  %v1990_v19 = vld.sshfl [vmem:[#allocation1] sm:$0xff pattern:$0x75316420]  ;;  %v2158_v21 = vsel %vm366_vm0, %v3964_v4, %v2154_v28 }
 0x192   : > { %1884 = vmatmul.f32.gmra.mxu3 %v1812_v51  ;;  %1987 = vst [vmem:[#allocation1 + $0x30] ss:$2 sm:$0xff] %v3906_v35  ;;  %v6538_v13 = vld [vmem:[%s6871_s1 + $0x410] sm:$0xff]  ;;  %2060 = vmatpush.msra.mxu2 %v6520_v38  ;;  %v1991_v15 = vld.sshfl [vmem:[#allocation1 + $0x8] sm:$0xff pattern:$0x75316420] }
 0x193   : > { %1989 = vst [vmem:[#allocation1 + $0x31] ss:$2 sm:$0xff] %v3909_v43  ;;  %2188 = vmatpush.msra.mxu3 %v5827_v23  ;;  %v6556_v23 = vld [vmem:[%s6871_s1 + $0x400] sm:$0xff]  ;;  %2018 = vmatmul.f32.vlgmr.msra.gmra.mxu0 %v1990_v19  ;;  %v3976_v20 = vrot.slane %v3971_v55, 9  ;;  %v3983_v59 = vld [vmem:[%s4769_s15 + $0x78] sm:$0xf] }
 0x194   : > { %2061 = vmatpush.msra.mxu2 %v6538_v13  ;;  %2161 = vst [vmem:[#allocation1] ss:$2 sm:$0xff] %v2157_v10  ;;  %2041 = vmatmul.f32.vlgmr.msra.gmra.mxu1 %v1991_v15  ;;  %v3973_v0 = vld [vmem:[%s4769_s15 + $0x1c0] sm:$0x1e]  ;;  %v3985_v9 = vld [vmem:[%s4769_s15 + $0xf8] sm:$0xf] }
 0x195   : > { %2189 = vmatpush.msra.mxu3 %v5843_v31  ;;  %2163 = vst [vmem:[#allocation1 + $0x1] ss:$2 sm:$0xff] %v2158_v21  ;;  %2210 = vmatpush.msrb.mxu0 %v5850_v36  ;;  %v3978_v36 = vrot.slane %v3972_v34, 9  ;;  %v3980_v25 = vrot.slane %v3973_v0, 9  ;;  %v2357_v14 = vrot.slane %v3985_v9, 4  ;;  %v7214_v35 = vld [vmem:[#allocation43_spill] sm:$0xff] }
 0x196   : > { %2062 = vmatpush.msra.mxu2 %v6547_v8  ;;  %2283 = vmatpush.msrb.mxu1 %v5822_v46  ;;  %v1994_v46 = vld.sshfl [vmem:[#allocation1 + $0x28] sm:$0xff pattern:$0x75316420]  ;;  %v7215_v2 = vld [vmem:[#allocation18_spill] sm:$0xff]  ;;  %v7218_v28 = vld [vmem:[#allocation39_spill] sm:$0xff] }
 0x197   : > { %2190 = vmatpush.msra.mxu3 %v5859_v49  ;;  %v6564_v31 = vld.sshfl [vmem:[#allocation1 + $0x10] sm:$0xff pattern:$0x75316420]  ;;  %v6569_v39 = vld.sshfl [vmem:[#allocation1 + $0x18] sm:$0xff pattern:$0x75316420]  ;;  %2211 = vmatpush.msrb.mxu0 %v5866_v24 }
 0x198   : > { %2063 = vmatpush.msra.mxu2 %v6556_v23  ;;  %v3974_v49 = vrot.slane %v3970_v41, 9  ;;  %2272 = vst [vmem:[#allocation1 + $0x10] ss:$2 sm:$0xff] %v3978_v36  ;;  %2284 = vmatpush.msrb.mxu1 %v5838_v63  ;;  %v3987_v63 = vld [vmem:[%s4769_s15 + $0x178] sm:$0xf]  ;;  %v7216_v58 = vld [vmem:[#allocation13_spill] sm:$0xff] }
 0x199   : > { %2191 = vmatpush.msra.mxu3 %v5875_v53  ;;  %2064 = vmatmul.f32.vlgmr.msra.gmra.mxu2 %v1992_v60  ;;  %v1993_v53 = vld.sshfl [vmem:[#allocation1 + $0x20] sm:$0xff pattern:$0x75316420]  ;;  %2274 = vst [vmem:[#allocation1 + $0x11] ss:$2 sm:$0xff] %v3980_v25  ;;  %v2358_v5 = vrot.slane %v3987_v63, 4 }
 0x19a   : > { %2379 = vmatpush.msrb.mxu2 %v5935_v18  ;;  %2212 = vmatpush.msrb.mxu0 %v5881_v17  ;;  %v1995_v24 = vld.sshfl [vmem:[#allocation1 + $0x30] sm:$0xff pattern:$0x75316420]  ;;  %v7213_v17 = vld [vmem:[#allocation31_spill] sm:$0xff]  ;;  %v2236_v43 = vld [vmem:[%s6871_s1 + $0x140] sm:$0xff] }
 0x19b   : > { %2402 = vmatpush.msrb.mxu3 %v5886_v16  ;;  %2021 = vmatmul.f32.gmra.mxu0 %v1993_v53  ;;  %v7217_v52 = vld [vmem:[#allocation38_spill] sm:$0xff]  ;;  %v7219_v51 = vld [vmem:[#allocation16_spill] sm:$0xff]  ;;  %v2235_v21 = vld [vmem:[%s6871_s1 + $0x138] sm:$0xff] }
 0x19c   : > { %2380 = vmatpush.msrb.mxu2 %v5956_v42  ;;  %v2168_v16 = vld.sshfl [vmem:[#allocation1] sm:$0xff pattern:$0x75316420]  ;;  %v6581_v18 = vld.sshfl [vmem:[#allocation1 + $0x8] sm:$0xff pattern:$0x75316420]  ;;  %2213 = vmatpush.msrb.mxu0 %v5896_v62 }
 0x19d   : > { %2403 = vmatpush.msrb.mxu3 %v5901_v45  ;;  %v2237_v45 = vld [vmem:[%s6871_s1 + $0x148] sm:$0xff]  ;;  %2268 = vst [vmem:[#allocation1] ss:$2 sm:$0xff] %v3974_v49  ;;  %2044 = vmatmul.f32.gmra.mxu1 %v1994_v46  ;;  %v2356_v42 = vrot.slane %v3983_v59, 4  ;;  %v3984_v62 = vld [vmem:[%s4769_s15 + $0xf0] sm:$0xf] }
 0x19e   : > { %2381 = vmatpush.msrb.mxu2 %v5978_v48  ;;  %2270 = vst [vmem:[#allocation1 + $0x1] ss:$2 sm:$0xff] %v3976_v20  ;;  %2285 = vmatpush.msrb.mxu1 %v2237_v45  ;;  %v3982_v48 = vld [vmem:[%s4769_s15 + $0x70] sm:$0xf]  ;;  %v2361_v19 = vsel %vm366_vm0, %v3984_v62, %v2357_v14  ;;  %v7220_v10 = vld [vmem:[#allocation24_spill] sm:$0xff]  ;;  %v7223_v36 = vld [vmem:[#allocation21_spill] sm:$0xff] }
 0x19f   : > { %2404 = vmatpush.msrb.mxu3 %v5923_v40  ;;  %v3989_v40 = vld [vmem:[%s4769_s15 + $0x1f8] sm:$0xf]  ;;  %2214 = vmatpush.msrb.mxu0 %v7216_v58  ;;  %v2360_v4 = vsel %vm366_vm0, %v3982_v48, %v2356_v42  ;;  %v3988_v54 = vld [vmem:[%s4769_s15 + $0x1f0] sm:$0xf]  ;;  %v7221_v15 = vld [vmem:[#allocation20_spill] sm:$0xff] }
 0x1a0   : > { %2382 = vmatpush.msrb.mxu2 %v6000_v3  ;;  %v3986_v3 = vld [vmem:[%s4769_s15 + $0x170] sm:$0xf]  ;;  %v2359_v60 = vrot.slane %v3989_v40, 4  ;;  %2192 = vmatmul.f32.vlgmr.msra.gmra.mxu3 %v2168_v16  ;;  %v7224_v46 = vld [vmem:[#allocation17_spill] sm:$0xff]  ;;  %v7225_v59 = vld [vmem:[#allocation32_spill] sm:$0xff] }
 0x1a1   : > { %2405 = vmatpush.msrb.mxu3 %v7213_v17  ;;  %2067 = vmatmul.f32.gmra.mxu2 %v1995_v24  ;;  %v2362_v55 = vsel %vm366_vm0, %v3986_v3, %v2358_v5  ;;  %v7222_v34 = vld [vmem:[#allocation14_spill] sm:$0xff]  ;;  %v4022_v53 = vld [vmem:[%s4769_s15 + $0x60] sm:$0x1e]  ;;  %v2233_v16 = vld [vmem:[%s6871_s1 + $0x128] sm:$0xff] }
 0x1a2   : > { %2383 = vmatpush.msrb.mxu2 %v7214_v35  ;;  %2486 = vmatpush.msra.mxu0 %v7219_v51  ;;  %v6617_v0 = vld.sshfl [vmem:[#allocation1 + $0x10] sm:$0xff pattern:$0x75316420]  ;;  %v2363_v49 = vsel %vm366_vm0, %v3988_v54, %v2359_v60  ;;  %v7226_v9 = vld [vmem:[#allocation52_spill] sm:$0xff]  ;;  %v7228_v24 = vld [vmem:[#allocation15_spill] sm:$0xff]  ;;  %v4042_v48 = vrot.slane %v4022_v53, 9 }
 0x1a3   : > { %2406 = vmatpush.msrb.mxu3 %v7215_v2  ;;  %2286 = vmatpush.msrb.mxu1 %v2236_v43  ;;  %v2234_v20 = vld [vmem:[%s6871_s1 + $0x130] sm:$0xff]  ;;  %2368 = vst [vmem:[#allocation1 + $0x10] ss:$2 sm:$0xff] %v2362_v55  ;;  %v4023_v45 = vld [vmem:[%s4769_s15 + $0xe0] sm:$0x1e]  ;;  %v7231_v14 = vld [vmem:[#allocation35_spill] sm:$0xff] }
 0x1a4   : > { %2384 = vmatpush.msrb.mxu2 %v7217_v52  ;;  %2487 = vmatpush.msra.mxu0 %v7222_v34  ;;  %v7227_v25 = vld [vmem:[#allocation46_spill] sm:$0xff]  ;;  %2370 = vst [vmem:[#allocation1 + $0x11] ss:$2 sm:$0xff] %v2363_v49  ;;  %v4024_v63 = vld [vmem:[%s4769_s15 + $0x160] sm:$0x1e]  ;;  %v7232_v35 = vld [vmem:[#allocation33_spill] sm:$0xff] }
 0x1a5   : > { %2407 = vmatpush.msrb.mxu3 %v7218_v28  ;;  %v6613_v41 = vld.sshfl [vmem:[#allocation1] sm:$0xff pattern:$0x75316420]  ;;  %2287 = vmatpush.msrb.mxu1 %v2235_v21  ;;  %v7229_v42 = vld [vmem:[#allocation50_spill] sm:$0xff]  ;;  %v2231_v5 = vld [vmem:[%s6871_s1 + $0x118] sm:$0xff]  ;;  %v4044_v58 = vrot.slane %v4023_v45, 9 }
 0x1a6   : > { %2385 = vmatpush.msrb.mxu2 %v7220_v10  ;;  %2364 = vst [vmem:[#allocation1] ss:$2 sm:$0xff] %v2360_v4  ;;  %2488 = vmatpush.msra.mxu0 %v7225_v59  ;;  %v4025_v17 = vld [vmem:[%s4769_s15 + $0x1e0] sm:$0x1e]  ;;  %v7230_v40 = vld [vmem:[#allocation42_spill] sm:$0xff]  ;;  %v4046_v3 = vrot.slane %v4024_v63, 9 }
 0x1a7   : > { %2408 = vmatpush.msrb.mxu3 %v7221_v15  ;;  %2366 = vst [vmem:[#allocation1 + $0x1] ss:$2 sm:$0xff] %v2361_v19  ;;  %2288 = vmatpush.msrb.mxu1 %v2234_v20  ;;  %v7233_v2 = vld [vmem:[#allocation26_spill] sm:$0xff]  ;;  %v2232_v62 = vld [vmem:[%s6871_s1 + $0x120] sm:$0xff]  ;;  %v4048_v60 = vrot.slane %v4025_v17, 9  ;;  %v7235_v4 = vld [vmem:[#allocation27_spill] sm:$0xff] }
 0x1a8   : > { %2386 = vmatpush.msrb.mxu2 %v7223_v36  ;;  %2489 = vmatpush.msra.mxu0 %v7228_v24  ;;  %v7234_v52 = vld [vmem:[#allocation22_spill] sm:$0xff]  ;;  %v7236_v54 = vld [vmem:[#allocation23_spill] sm:$0xff]  ;;  %v7240_v49 = vld [vmem:[#allocation49_spill] sm:$0xff] }
 0x1a9   : > { %2409 = vmatpush.msrb.mxu3 %v7224_v46  ;;  %2289 = vmatpush.msrb.mxu1 %v2233_v16  ;;  %v4051_v51 = vld [vmem:[%s4769_s15 + $0x98] sm:$0xf]  ;;  %v2230_v36 = vld [vmem:[%s6871_s1 + $0x110] sm:$0xff]  ;;  %v7241_v20 = vld [vmem:[#allocation60_spill] sm:$0xff] }
 0x1aa   : > { %2387 = vmatpush.msrb.mxu2 %v7226_v9  ;;  %2490 = vmatpush.msra.mxu0 %v7231_v14  ;;  %v4053_v19 = vld [vmem:[%s4769_s15 + $0x118] sm:$0xf]  ;;  %v2563_v46 = vrot.slane %v4051_v51, 4  ;;  %v4050_v59 = vld [vmem:[%s4769_s15 + $0x90] sm:$0xf]  ;;  %v2229_v16 = vld [vmem:[%s6871_s1 + $0x108] sm:$0xff] }
 0x1ab   : > { %2410 = vmatpush.msrb.mxu3 %v7227_v25  ;;  %v7237_v10 = vld [vmem:[#allocation19_spill] sm:$0xff]  ;;  %2290 = vmatpush.msrb.mxu1 %v2232_v62  ;;  %v6654_v15 = vld.sshfl [vmem:[#allocation1 + $0x10] sm:$0xff pattern:$0x75316420]  ;;  %v2564_v53 = vrot.slane %v4053_v19, 4  ;;  %v2228_v62 = vld [vmem:[%s6871_s1 + $0x100] sm:$0xff] }
 0x1ac   : > { %2388 = vmatpush.msrb.mxu2 %v7229_v42  ;;  %2491 = vmatpush.msra.mxu0 %v7234_v52  ;;  %v6656_v21 = vld.sshfl [vmem:[#allocation1 + $0x18] sm:$0xff pattern:$0x75316420]  ;;  %v7242_v9 = vld [vmem:[#allocation54_spill] sm:$0xff] }
 0x1ad   : > { %2411 = vmatpush.msrb.mxu3 %v7230_v40  ;;  %v7238_v55 = vld [vmem:[#allocation63_spill] sm:$0xff]  ;;  %2291 = vmatpush.msrb.mxu1 %v2231_v5  ;;  %2479 = vst [vmem:[#allocation1 + $0x10] ss:$2 sm:$0xff] %v4046_v3  ;;  %v4052_v24 = vld [vmem:[%s4769_s15 + $0x110] sm:$0xf]  ;;  %v7246_v40 = vld [vmem:[#allocation28_spill] sm:$0xff] }
 0x1ae   : > { %2389 = vmatpush.msrb.mxu2 %v7232_v35  ;;  %2195 = vmatmul.f32.gmra.mxu3 %v6564_v31  ;;  %v2371_v28 = vld.sshfl [vmem:[#allocation1] sm:$0xff pattern:$0x75316420]  ;;  %v2372_v43 = vld.sshfl [vmem:[#allocation1 + $0x8] sm:$0xff pattern:$0x75316420]  ;;  %v2568_v5 = vsel %vm366_vm0, %v4052_v24, %v2564_v53 }
 0x1af   : > { %2412 = vmatpush.msrb.mxu3 %v7233_v2  ;;  %2475 = vst [vmem:[#allocation1] ss:$2 sm:$0xff] %v4042_v48  ;;  %2492 = vmatpush.msra.mxu0 %v7237_v10  ;;  %v7239_v31 = vld [vmem:[#allocation56_spill] sm:$0xff]  ;;  %v4055_v34 = vld [vmem:[%s4769_s15 + $0x198] sm:$0xf]  ;;  %v7244_v63 = vld [vmem:[#allocation30_spill] sm:$0xff]  ;;  %v2567_v48 = vsel %vm366_vm0, %v4050_v59, %v2563_v46 }
 0x1b0   : > { %2390 = vmatpush.msrb.mxu2 %v7235_v4  ;;  %2477 = vst [vmem:[#allocation1 + $0x1] ss:$2 sm:$0xff] %v4044_v58  ;;  %2215 = vmatmul.f32.vlgmr.msrb.gmra.mxu0 %v6581_v18  ;;  %v7243_v25 = vld [vmem:[#allocation47_spill] sm:$0xff]  ;;  %v2565_v45 = vrot.slane %v4055_v34, 4  ;;  %v4054_v17 = vld [vmem:[%s4769_s15 + $0x190] sm:$0xf] }
 0x1b1   : > { %2413 = vmatpush.msrb.mxu3 %v7236_v54  ;;  %2493 = vmatpush.msra.mxu0 %v7240_v49  ;;  %2481 = vst [vmem:[#allocation1 + $0x11] ss:$2 sm:$0xff] %v4048_v60  ;;  %v4057_v42 = vld [vmem:[%s4769_s15 + $0x218] sm:$0xf]  ;;  %v7245_v18 = vld [vmem:[#allocation37_spill] sm:$0xff]  ;;  %v7247_v2 = vld [vmem:[#allocation62_spill] sm:$0xff] }
 0x1b2   : > { %2391 = vmatpush.msrb.mxu2 %v7238_v55  ;;  %2292 = vmatpush.msrb.mxu1 %v2230_v36  ;;  %v4056_v14 = vld [vmem:[%s4769_s15 + $0x210] sm:$0xf]  ;;  %v2566_v35 = vrot.slane %v4057_v42, 4  ;;  %v7248_v58 = vld [vmem:[#allocation69_spill] sm:$0xff]  ;;  %v2569_v52 = vsel %vm366_vm0, %v4054_v17, %v2565_v45  ;;  %v4073_v19 = vld [vmem:[%s6871_s1 + $0x378] sm:$0xff] }
 0x1b3   : > { %2414 = vmatpush.msrb.mxu3 %v7239_v31  ;;  %2494 = vmatpush.msra.mxu0 %v7243_v25  ;;  %v7249_v3 = vld [vmem:[#allocation29_spill] sm:$0xff]  ;;  %v7251_v51 = vld [vmem:[#allocation34_spill] sm:$0xff]  ;;  %v4090_v55 = vld [vmem:[%s4769_s15 + $0x80] sm:$0x1e] }
 0x1b4   : > { %2392 = vmatpush.msrb.mxu2 %v7241_v20  ;;  %2293 = vmatpush.msrb.mxu1 %v2229_v16  ;;  %v7250_v4 = vld [vmem:[#allocation25_spill] sm:$0xff]  ;;  %v2570_v54 = vsel %vm366_vm0, %v4056_v14, %v2566_v35  ;;  %v4072_v34 = vld [vmem:[%s6871_s1 + $0x370] sm:$0xff]  ;;  %v4091_v49 = vld [vmem:[%s4769_s15 + $0x100] sm:$0x1e] }
 0x1b5   : > { %2415 = vmatpush.msrb.mxu3 %v7242_v9  ;;  %2495 = vmatpush.msra.mxu0 %v7246_v40  ;;  %v7252_v31 = vld [vmem:[#allocation65_spill] sm:$0xff]  ;;  %v4092_v36 = vld [vmem:[%s4769_s15 + $0x180] sm:$0x1e]  ;;  %v7255_v20 = vld [vmem:[#allocation58_spill] sm:$0xff]  ;;  %v4112_v59 = vrot.slane %v4091_v49, 9 }
 0x1b6   : > { %2393 = vmatpush.msrb.mxu2 %v7244_v63  ;;  %2294 = vmatpush.msrb.mxu1 %v2228_v62  ;;  %v7254_v46 = vld [vmem:[#allocation36_spill] sm:$0xff]  ;;  %v7256_v9 = vld [vmem:[#allocation70_spill] sm:$0xff]  ;;  %v4114_v25 = vrot.slane %v4092_v36, 9  ;;  %v4069_v17 = vld [vmem:[%s6871_s1 + $0x358] sm:$0xff] }
 0x1b7   : > { %2416 = vmatpush.msrb.mxu3 %v7245_v18  ;;  %v2482_v60 = vld.sshfl [vmem:[#allocation1] sm:$0xff pattern:$0x75316420]  ;;  %2496 = vmatpush.msra.mxu0 %v7250_v4 }
 0x1b8   : > { %2394 = vmatpush.msrb.mxu2 %v7247_v2  ;;  %2571 = vst [vmem:[#allocation1] ss:$2 sm:$0xff] %v2567_v48  ;;  %v6696_v10 = vld.sshfl [vmem:[#allocation1 + $0x10] sm:$0xff pattern:$0x75316420]  ;;  %2586 = vmatpush.msra.mxu1 %v4073_v19 }
 0x1b9   : > { %2417 = vmatpush.msrb.mxu3 %v7249_v3  ;;  %2573 = vst [vmem:[#allocation1 + $0x1] ss:$2 sm:$0xff] %v2568_v5  ;;  %2395 = vmatmul.f32.vlgmr.msrb.gmra.mxu2 %v2371_v28  ;;  %v4071_v28 = vld [vmem:[%s6871_s1 + $0x368] sm:$0xff]  ;;  %v4093_v53 = vld [vmem:[%s4769_s15 + $0x200] sm:$0x1e]  ;;  %s3409_s15 = scalar_lea.sflag [#allocation6], %s5658_s16 }
 0x1ba   : > { %2609 = vmatpush.msra.mxu2 %v7248_v58  ;;  %2418 = vmatmul.f32.vlgmr.msrb.gmra.mxu3 %v2372_v43  ;;  %2575 = vst [vmem:[#allocation1 + $0x10] ss:$2 sm:$0xff] %v2569_v52  ;;  %v4110_v43 = vrot.slane %v4090_v55, 9  ;;  %v4116_v45 = vrot.slane %v4093_v53, 9 }
 0x1bb   : > { %2693 = vmatpush.msra.mxu3 %v6378_v57  ;;  %v7253_v57 = vld [vmem:[#allocation61_spill] sm:$0xff]  ;;  %2577 = vst [vmem:[#allocation1 + $0x11] ss:$2 sm:$0xff] %v2570_v54  ;;  %2218 = vmatmul.f32.gmra.mxu0 %v6569_v39  ;;  %v7257_v39 = vld [vmem:[#allocation40_spill] sm:$0xff] }
 0x1bc   : > { %2610 = vmatpush.msra.mxu2 %v7251_v51  ;;  %2497 = vmatpush.msra.mxu0 %v7253_v57 }
 0x1bd   : > { %2694 = vmatpush.msra.mxu3 %v6385_v61  ;;  %2587 = vmatpush.msra.mxu1 %v4072_v34  ;;  %v4070_v61 = vld [vmem:[%s6871_s1 + $0x360] sm:$0xff] }
 0x1be   : > { %2611 = vmatpush.msra.mxu2 %v7252_v31  ;;  %2498 = vmatpush.msra.mxu0 %v7255_v20  ;;  %v4237_v31 = vld [vmem:[%s6872_s2] ss:$0 sm:$0xff] }
 0x1bf   : > { %2695 = vmatpush.msra.mxu3 %v6405_v30  ;;  %2588 = vmatpush.msra.mxu1 %v4071_v28  ;;  %v7258_v30 = vld [vmem:[#allocation66_spill] sm:$0xff] }
 0x1c0   : > { %2612 = vmatpush.msra.mxu2 %v7254_v46  ;;  %2499 = vmatpush.msra.mxu0 %v7257_v39  ;;  %v6720_v16 = vld.sshfl [vmem:[#allocation1] sm:$0xff pattern:$0x75316420]  ;;  %v2579_v24 = vld.sshfl [vmem:[#allocation1 + $0x8] sm:$0xff pattern:$0x75316420] }
 0x1c1   : > { %2696 = vmatpush.msra.mxu3 %v6422_v44  ;;  %2682 = vst [vmem:[#allocation1] ss:$2 sm:$0xff] %v4110_v43  ;;  %2295 = vmatmul.f32.vlgmr.msrb.gmra.mxu1 %v6613_v41  ;;  %v4068_v44 = vld [vmem:[%s6871_s1 + $0x350] sm:$0xff]  ;;  %v7260_v41 = vld [vmem:[#allocation41_spill] sm:$0xff] }
 0x1c2   : > { %2613 = vmatpush.msra.mxu2 %v7256_v9  ;;  %2500 = vmatpush.msra.mxu0 %v7258_v30  ;;  %2684 = vst [vmem:[#allocation1 + $0x1] ss:$2 sm:$0xff] %v4112_v59  ;;  %v2580_v63 = vld.sshfl [vmem:[#allocation1 + $0x10] sm:$0xff pattern:$0x75316420] }
 0x1c3   : > { %2589 = vmatpush.msra.mxu1 %v4070_v61  ;;  %v2581_v42 = vld.sshfl [vmem:[#allocation1 + $0x18] sm:$0xff pattern:$0x75316420]  ;;  %2697 = vmatpush.msra.mxu3 %v6432_v56  ;;  %v4066_v56 = vld [vmem:[%s6871_s1 + $0x340] sm:$0xff] }
 0x1c4   : > { %2614 = vmatpush.msra.mxu2 %v6318_v29  ;;  %2686 = vst [vmem:[#allocation1 + $0x10] ss:$2 sm:$0xff] %v4114_v25  ;;  %2421 = vmatmul.f32.gmra.mxu3 %v6656_v21  ;;  %v7259_v29 = vld [vmem:[#allocation45_spill] sm:$0xff] }
 0x1c5   : > { %2398 = vmatmul.f32.gmra.mxu2 %v6654_v15  ;;  %2501 = vmatpush.msra.mxu0 %v7259_v29  ;;  %2688 = vst [vmem:[#allocation1 + $0x11] ss:$2 sm:$0xff] %v4116_v45  ;;  %v2791_v29 = vld [vmem:[#allocation4 + $0x60] sm:$0xff] }
 0x1c6   : > { %2615 = vmatpush.msra.mxu2 %v6326_v33  ;;  %2590 = vmatpush.msra.mxu1 %v4069_v17  ;;  %v4067_v33 = vld [vmem:[%s6871_s1 + $0x348] sm:$0xff]  ;;  %v2793_v17 = vld [vmem:[#allocation4 + $0x70] sm:$0xff] }
 0x1c7   : > { %2698 = vmatpush.msra.mxu3 %v6448_v47  ;;  %2502 = vmatmul.f32.vlgmr.msra.gmra.mxu0 %v2482_v60  ;;  %v7261_v47 = vld [vmem:[#allocation57_spill] sm:$0xff] }
 0x1c8   : > { %2616 = vmatpush.msra.mxu2 %v6333_v6  ;;  %2591 = vmatpush.msra.mxu1 %v4068_v44  ;;  %v4065_v6 = vld [vmem:[%s6871_s1 + $0x338] sm:$0xff]  ;;  %v2810_v44 = vld [vmem:[#allocation4 + $0xf8] sm:$0xff] }
 0x1c9   : > { %2699 = vmatpush.msra.mxu3 %v6455_v22  ;;  %2298 = vmatmul.f32.gmra.mxu1 %v6617_v0  ;;  %v7262_v22 = vld [vmem:[#allocation73_spill] sm:$0xff]  ;;  %v7264_v0 = vld [vmem:[#allocation44_spill] sm:$0xff] }
 0x1ca   : > { %2617 = vmatpush.msra.mxu2 %v6342_v11  ;;  %2592 = vmatpush.msra.mxu1 %v4067_v33  ;;  %v4064_v11 = vld [vmem:[%s6871_s1 + $0x330] sm:$0xff]  ;;  %v2809_v33 = vld [vmem:[#allocation4 + $0xf0] sm:$0xff] }
 0x1cb   : > { %2700 = vmatpush.msra.mxu3 %v6471_v37  ;;  %v4063_v37 = vld [vmem:[%s6871_s1 + $0x328] sm:$0xff] }
 0x1cc   : > { %2618 = vmatpush.msra.mxu2 %v7260_v41  ;;  %2593 = vmatpush.msra.mxu1 %v4066_v56  ;;  %v2790_v56 = vld [vmem:[#allocation4 + $0x58] sm:$0xff]  ;;  %v2808_v41 = vld [vmem:[#allocation4 + $0xe8] sm:$0xff] }
 0x1cd   : > { %2701 = vmatpush.msra.mxu3 %v6482_v27  ;;  %v4062_v27 = vld [vmem:[%s6871_s1 + $0x320] sm:$0xff] }
 0x1ce   : > { %2619 = vmatpush.msra.mxu2 %v7261_v47  ;;  %2594 = vmatpush.msra.mxu1 %v4065_v6  ;;  %v2789_v6 = vld [vmem:[#allocation4 + $0x50] sm:$0xff]  ;;  %v2807_v47 = vld [vmem:[#allocation4 + $0xe0] sm:$0xff] }
 0x1cf   : > { %2702 = vmatpush.msra.mxu3 %v6493_v7  ;;  %2505 = vmatmul.f32.gmra.mxu0 %v6696_v10  ;;  %v7263_v7 = vld [vmem:[#allocation48_spill] sm:$0xff] }
 0x1d0   : > { %2620 = vmatpush.msra.mxu2 %v7262_v22  ;;  %2595 = vmatpush.msra.mxu1 %v4064_v11  ;;  %v2788_v11 = vld [vmem:[#allocation4 + $0x48] sm:$0xff] }
 0x1d1   : > { %2703 = vmatpush.msra.mxu3 %v6504_v26  ;;  %v2689_v26 = vld.sshfl [vmem:[#allocation1] sm:$0xff pattern:$0x75316420] }
 0x1d2   : > { %2621 = vmatpush.msra.mxu2 %v6392_v50  ;;  %2596 = vmatpush.msra.mxu1 %v4063_v37  ;;  %v7265_v50 = vld [vmem:[#allocation74_spill] sm:$0xff]  ;;  %v2787_v37 = vld [vmem:[#allocation4 + $0x40] sm:$0xff] }
 0x1d3   : > { %2704 = vmatpush.msra.mxu3 %v6515_v1  ;;  %v2690_v1 = vld.sshfl [vmem:[#allocation1 + $0x10] sm:$0xff pattern:$0x75316420] }
 0x1d4   : > { %2622 = vmatpush.msra.mxu2 %v6400_v32  ;;  %2597 = vmatpush.msra.mxu1 %v4062_v27  ;;  %v7266_v32 = vld [vmem:[#allocation53_spill] sm:$0xff]  ;;  %v2786_v27 = vld [vmem:[#allocation4 + $0x38] sm:$0xff] }
 0x1d5   : > { %2705 = vmatpush.msra.mxu3 %v6520_v38 }
 0x1d6   : > { %2623 = vmatpush.msra.mxu2 %v6417_v12  ;;  %2598 = vmatpush.msra.mxu1 %v7263_v7  ;;  %v7267_v12 = vld [vmem:[#allocation78_spill] sm:$0xff]  ;;  %v2806_v7 = vld [vmem:[#allocation4 + $0xd8] sm:$0xff] }
 0x1d7   : > { %2706 = vmatpush.msra.mxu3 %v6538_v13 }
 0x1d8   : > { %2624 = vmatpush.msra.mxu2 %v7264_v0  ;;  %2599 = vmatpush.msra.mxu1 %v7265_v50  ;;  %v2805_v0 = vld [vmem:[#allocation4 + $0xd0] sm:$0xff] }
 0x1d9   : > { %2625 = vmatmul.f32.vlgmr.msra.gmra.mxu2 %v2579_v24  ;;  %2707 = vmatpush.msra.mxu3 %v6547_v8  ;;  %v2794_v24 = vld [vmem:[#allocation4 + $0x78] sm:$0xff]  ;;  %v2785_v50 = vld [vmem:[#allocation4 + $0x30] sm:$0xff] }
 0x1da   : > { %2600 = vmatpush.msra.mxu1 %v7266_v32  ;;  %2842 = vmatpush.msrb.mxu0 %v2794_v24  ;;  %v2804_v32 = vld [vmem:[#allocation4 + $0xc8] sm:$0xff]  ;;  %v2991_v24 = vld [vmem:[#allocation4 + $0x1c0] sm:$0xff] }
 0x1db   : > { %2708 = vmatpush.msra.mxu3 %v6556_v23 }
 0x1dc   : > { %2709 = vmatmul.f32.vlgmr.msra.gmra.mxu3 %v2689_v26  ;;  %2601 = vmatpush.msra.mxu1 %v7267_v12  ;;  %v2784_v26 = vld [vmem:[#allocation4 + $0x28] sm:$0xff] }
 0x1dd   : > { %2602 = vmatmul.f32.vlgmr.msra.gmra.mxu1 %v6720_v16  ;;  %2843 = vmatpush.msrb.mxu0 %v2793_v17  ;;  %v2990_v17 = vld [vmem:[#allocation4 + $0x1b8] sm:$0xff] }
 0x1de   : > { %2865 = vmatpush.msrb.mxu1 %v2810_v44 }
 0x1e0   : > { %2866 = vmatpush.msrb.mxu1 %v2809_v33 }
 0x1e1   : > { %2628 = vmatmul.f32.gmra.mxu2 %v2581_v42  ;;  %v2792_v42 = vld [vmem:[#allocation4 + $0x68] sm:$0xff] }
 0x1e2   : > { %2844 = vmatpush.msrb.mxu0 %v2792_v42  ;;  %2867 = vmatpush.msrb.mxu1 %v2808_v41  ;;  %v3010_v42 = vld [vmem:[#allocation4 + $0x258] sm:$0xff]  ;;  %v2989_v41 = vld [vmem:[#allocation4 + $0x1b0] sm:$0xff] }
 0x1e4   : > { %2712 = vmatmul.f32.gmra.mxu3 %v2690_v1  ;;  %2845 = vmatpush.msrb.mxu0 %v2791_v29  ;;  %v2783_v1 = vld [vmem:[#allocation4 + $0x20] sm:$0xff]  ;;  %v3117_v29 = vld [vmem:[#allocation4 + $0x2f8] sm:$0xff] }
 0x1e5   : > { %2605 = vmatmul.f32.gmra.mxu1 %v2580_v63 }
 0x1e6   : > { %2846 = vmatpush.msrb.mxu0 %v2790_v56  ;;  %2868 = vmatpush.msrb.mxu1 %v2807_v47  ;;  %v2900_v56 = vld [vmem:[#allocation4 + $0x130] sm:$0xff] }
 0x1e8   : > { %2847 = vmatpush.msrb.mxu0 %v2789_v6  ;;  %2869 = vmatpush.msrb.mxu1 %v2806_v7  ;;  %v3009_v6 = vld [vmem:[#allocation4 + $0x250] sm:$0xff]  ;;  %v3008_v7 = vld [vmem:[#allocation4 + $0x248] sm:$0xff] }
 0x1ea   : > { %2848 = vmatpush.msrb.mxu0 %v2788_v11  ;;  %2870 = vmatpush.msrb.mxu1 %v2805_v0  ;;  %v3115_v0 = vld [vmem:[#allocation4 + $0x2e8] sm:$0xff] }
 0x1ec   : > { %2849 = vmatpush.msrb.mxu0 %v2787_v37  ;;  %2871 = vmatpush.msrb.mxu1 %v2804_v32  ;;  %v2899_v37 = vld [vmem:[#allocation4 + $0x128] sm:$0xff] }
 0x1ee   : > { %2850 = vmatpush.msrb.mxu0 %v2786_v27  ;;  %v2988_v27 = vld [vmem:[#allocation4 + $0x1a8] sm:$0xff] }
 0x1f0   : > { %v1703_v21 = vpop.f32.mrf.mxu0  ;;  %2851 = vmatpush.msrb.mxu0 %v2785_v50 }
 0x1f2   : > { %2852 = vmatpush.msrb.mxu0 %v2784_v26 }
 0x1f4   : > { %2853 = vmatpush.msrb.mxu0 %v2783_v1  ;;  %v2987_v1 = vld [vmem:[#allocation4 + $0x1a0] sm:$0xff] }
 0x1fc   : > { %v1657_v38 = vpop.f32.mrf.mxu2 }
 0x1fd   : > { %v1680_v13 = vpop.f32.mrf.mxu3 }
 0x1fe   : > { %v1681_v58 = vadd.f32 %v1680_v13, %v1657_v38  ;;  %v2803_v38 = vld [vmem:[#allocation4 + $0xc0] sm:$0xff] }
 0x1ff   : > { %2872 = vmatpush.msrb.mxu1 %v2803_v38  ;;  %v3007_v38 = vld [vmem:[#allocation4 + $0x240] sm:$0xff] }
 0x200   : > { %v1704_v52 = vadd.f32 %v1703_v21, %v1681_v58  ;;  %v2998_v21 = vld [vmem:[#allocation4 + $0x1f8] sm:$0xff]  ;;  %v2780_v58 = vld [vmem:[#allocation4 + $0x8] sm:$0xff] }
 0x201   : > { %v1836_v15 = vpop.f32.mrf.mxu1  ;;  %3046 = vmatpush.msrb.mxu3 %v2998_v21 }
 0x204   : > { %v1660_v18 = vpop.f32.mrf.mxu2 }
 0x205   : > { %v1683_v8 = vpop.f32.mrf.mxu3  ;;  %v1706_v40 = vpop.f32.mrf.mxu0 }
 0x206   : > { %v1684_v54 = vadd.f32 %v1683_v8, %v1660_v18  ;;  %v2782_v18 = vld [vmem:[#allocation4 + $0x18] sm:$0xff] }
 0x207   : > { %v2802_v8 = vld [vmem:[#allocation4 + $0xb8] sm:$0xff]  ;;  %2854 = vmatpush.msrb.mxu0 %v2782_v18  ;;  %v3114_v18 = vld [vmem:[#allocation4 + $0x2e0] sm:$0xff] }
 0x208   : > { %v1707_v36 = vadd.f32 %v1706_v40, %v1684_v54  ;;  %2873 = vmatpush.msrb.mxu1 %v2802_v8  ;;  %v2908_v40 = vld [vmem:[#allocation4 + $0x170] sm:$0xff]  ;;  %v2799_v54 = vld [vmem:[#allocation4 + $0xa0] sm:$0xff]  ;;  %v2897_v8 = vld [vmem:[#allocation4 + $0x118] sm:$0xff] }
 0x209   : > { %v1839_v48 = vpop.f32.mrf.mxu1 }
 0x20c   : > { %v1859_v14 = vpop.f32.mrf.mxu2 }
 0x20d   : > { %v1882_v35 = vpop.f32.mrf.mxu3  ;;  %v1860_v5 = vadd.f32 %v1859_v14, %v1836_v15  ;;  %v2909_v15 = vld [vmem:[#allocation4 + $0x178] sm:$0xff]  ;;  %v2781_v14 = vld [vmem:[#allocation4 + $0x10] sm:$0xff] }
 0x20e   : > { %2945 = vmatpush.msrb.mxu2 %v2909_v15  ;;  %2855 = vmatpush.msrb.mxu0 %v2781_v14 }
 0x20f   : > { %v1883_v3 = vadd.f32 %v1882_v35, %v1860_v5  ;;  %v2801_v35 = vld [vmem:[#allocation4 + $0xb0] sm:$0xff]  ;;  %v2996_v5 = vld [vmem:[#allocation4 + $0x1e8] sm:$0xff] }
 0x210   : > { %v2019_v2 = vpop.f32.mrf.mxu0  ;;  %2946 = vmatpush.msrb.mxu2 %v2908_v40  ;;  %2874 = vmatpush.msrb.mxu1 %v2801_v35  ;;  %v2986_v40 = vld [vmem:[#allocation4 + $0x198] sm:$0xff] }
 0x211   : > { %v2042_v62 = vpop.f32.mrf.mxu1  ;;  %v1890_v51 = vadd.f32 %v1883_v3, %v1704_v52  ;;  %v2800_v3 = vld [vmem:[#allocation4 + $0xa8] sm:$0xff]  ;;  %2856 = vmatpush.msrb.mxu0 %v2780_v58  ;;  %v2995_v52 = vld [vmem:[#allocation4 + $0x1e0] sm:$0xff]  ;;  %v6798_v35 = vld [vmem:[%s6872_s2] ss:$0 sm:$0xff] }
 0x212   : > { %v2043_v60 = vadd.f32 %v2042_v62, %v2019_v2  ;;  %v2907_v62 = vld [vmem:[#allocation4 + $0x168] sm:$0xff]  ;;  %2875 = vmatpush.msrb.mxu1 %v2800_v3 }
 0x213   : > { %2947 = vmatpush.msrb.mxu2 %v2907_v62  ;;  %v2985_v62 = vld [vmem:[#allocation4 + $0x190] sm:$0xff] }
 0x214   : > { %v1862_v23 = vpop.f32.mrf.mxu2  ;;  %2876 = vmatpush.msrb.mxu1 %v2799_v54  ;;  %v2895_v54 = vld [vmem:[#allocation4 + $0x108] sm:$0xff] }
 0x215   : > { %v1863_v19 = vadd.f32 %v1862_v23, %v1839_v48  ;;  %v1885_v10 = vpop.f32.mrf.mxu3  ;;  %v2997_v48 = vld [vmem:[#allocation4 + $0x1f0] sm:$0xff] }
 0x216   : > { %3047 = vmatpush.msrb.mxu3 %v2997_v48  ;;  %v3006_v48 = vld [vmem:[#allocation4 + $0x238] sm:$0xff] }
 0x217   : > { %v1886_v46 = vadd.f32 %v1885_v10, %v1863_v19  ;;  %v2905_v19 = vld [vmem:[#allocation4 + $0x158] sm:$0xff] }
 0x218   : > { %v2022_v57 = vpop.f32.mrf.mxu0  ;;  %3048 = vmatpush.msrb.mxu3 %v2996_v5  ;;  %v2994_v10 = vld [vmem:[#allocation4 + $0x1d8] sm:$0xff]  ;;  %v3005_v5 = vld [vmem:[#allocation4 + $0x230] sm:$0xff] }
 0x219   : > { %v1891_v9 = vadd.f32 %v1886_v46, %v1707_v36  ;;  %v2993_v36 = vld [vmem:[#allocation4 + $0x1d0] sm:$0xff] }
 0x21a   : > { %v2045_v34 = vpop.f32.mrf.mxu1  ;;  %3049 = vmatpush.msrb.mxu3 %v2995_v52  ;;  %v3013_v46 = vld [vmem:[#allocation4 + $0x270] sm:$0xff] }
 0x21b   : > { %v2046_v43 = vadd.f32 %v2045_v34, %v2022_v57  ;;  %v2798_v57 = vld [vmem:[#allocation4 + $0x98] sm:$0xff] }
 0x21c   : > { %v2065_v4 = vpop.f32.mrf.mxu2  ;;  %3050 = vmatpush.msrb.mxu3 %v2994_v10  ;;  %2877 = vmatpush.msrb.mxu1 %v2798_v57  ;;  %v3111_v10 = vld [vmem:[#allocation4 + $0x2c8] sm:$0xff] }
 0x21d   : > { %v2066_v55 = vadd.f32 %v2065_v4, %v2043_v60  ;;  %v2906_v60 = vld [vmem:[#allocation4 + $0x160] sm:$0xff] }
 0x21e   : > { %2948 = vmatpush.msrb.mxu2 %v2906_v60  ;;  %v2779_v4 = vld [vmem:[#allocation4] sm:$0xff]  ;;  %3051 = vmatpush.msrb.mxu3 %v2993_v36  ;;  %v3112_v60 = vld [vmem:[#allocation4 + $0x2d0] sm:$0xff] }
 0x21f   : > { %v2073_v49 = vadd.f32 %v2066_v55, %v1890_v51  ;;  %2857 = vmatpush.msrb.mxu0 %v2779_v4  ;;  %v3014_v55 = vld [vmem:[#allocation4 + $0x278] sm:$0xff] }
 0x220   : > { %2949 = vmatpush.msrb.mxu2 %v2905_v19  ;;  %v3004_v19 = vld [vmem:[#allocation4 + $0x228] sm:$0xff] }
 0x221   : > { %v2083_v28 = vadd.f32 %v4237_v31, %v2073_v49  ;;  %3069 = vmatpush.msra.mxu0 %v3014_v55  ;;  %v2904_v49 = vld [vmem:[#allocation4 + $0x150] sm:$0xff] }
 0x222   : > { %2950 = vmatpush.msrb.mxu2 %v2904_v49 }
 0x223   : > { %v2087_v20 = vrot.slane %v2083_v28, 4  ;;  %3958 = vst [vmem:[%s5704_s20 + $0x8] sm:$0xf] %v2083_v28  ;;  %v2096_v59 = vmax.f32 %v2083_v28, 0.0  ;;  %v6789_v22 = vpop.f32.mrf.mxu3  ;;  %v2797_v28 = vld [vmem:[#allocation4 + $0x90] sm:$0xff]  ;;  %3070 = vmatpush.msra.mxu0 %v3013_v46 }
 0x224   : > { %v2068_v53 = vpop.f32.mrf.mxu2  ;;  %2878 = vmatpush.msrb.mxu1 %v2797_v28  ;;  %v2894_v28 = vld [vmem:[#allocation4 + $0x100] sm:$0xff] }
 0x225   : > { %3959 = vst [vmem:[%s5704_s20 + $0x18] sm:$0xf] %v2087_v20  ;;  %v2097_v61 = vmax.f32 %v2087_v20, 0.0  ;;  %v2069_v25 = vadd.f32 %v2068_v53, %v2046_v43  ;;  %v2903_v43 = vld [vmem:[#allocation4 + $0x148] sm:$0xff] }
 0x226   : > { %2101 = vst [vmem:[#allocation2 + $0x78] sm:$0xf] %v2096_v59  ;;  %v2992_v20 = vld [vmem:[#allocation4 + $0x1c8] sm:$0xff]  ;;  %2951 = vmatpush.msrb.mxu2 %v2903_v43  ;;  %v2983_v43 = vld [vmem:[#allocation4 + $0x180] sm:$0xff] }
 0x227   : > { %2102 = vst [vmem:[#allocation2 + $0x38] sm:$0xf] %v2097_v61  ;;  %v2074_v39 = vadd.f32 %v2069_v25, %v1891_v9  ;;  %v3012_v59 = vld [vmem:[#allocation4 + $0x268] sm:$0xff]  ;;  %3052 = vmatpush.msrb.mxu3 %v2992_v20 }
 0x228   : > { %v2796_v53 = vld [vmem:[#allocation4 + $0x88] sm:$0xff]  ;;  %3071 = vmatpush.msra.mxu0 %v3012_v59  ;;  %v3003_v59 = vld [vmem:[#allocation4 + $0x220] sm:$0xff] }
 0x229   : > { %v2084_v16 = vadd.f32 %v4237_v31, %v2074_v39  ;;  %2879 = vmatpush.msrb.mxu1 %v2796_v53  ;;  %3053 = vmatpush.msrb.mxu3 %v2991_v24  ;;  %v3110_v53 = vld [vmem:[#allocation4 + $0x2c0] sm:$0xff]  ;;  %v3109_v24 = vld [vmem:[#allocation4 + $0x2b8] sm:$0xff] }
 0x22b   : > { %v2088_v45 = vrot.slane %v2084_v16, 4  ;;  %3960 = vst [vmem:[%s5704_s20 + $0x28] sm:$0xf] %v2084_v16  ;;  %v2098_v30 = vmax.f32 %v2084_v16, 0.0  ;;  %v2902_v16 = vld [vmem:[#allocation4 + $0x140] sm:$0xff]  ;;  %3054 = vmatpush.msrb.mxu3 %v2990_v17  ;;  %v3001_v17 = vld [vmem:[#allocation4 + $0x210] sm:$0xff] }
 0x22c   : > { %2952 = vmatpush.msrb.mxu2 %v2902_v16  ;;  %v3002_v16 = vld [vmem:[#allocation4 + $0x218] sm:$0xff] }
 0x22d   : > { %3961 = vst [vmem:[%s5704_s20 + $0x38] sm:$0xf] %v2088_v45  ;;  %v2099_v63 = vmax.f32 %v2088_v45, 0.0  ;;  %v2216_v12 = vpop.f32.mrf.mxu0  ;;  %v3011_v45 = vld [vmem:[#allocation4 + $0x260] sm:$0xff]  ;;  %3055 = vmatpush.msrb.mxu3 %v2989_v41  ;;  %v3107_v41 = vld [vmem:[#allocation4 + $0x2a8] sm:$0xff] }
 0x22e   : > { %2103 = vst [vmem:[#allocation2 + $0x88] sm:$0xf] %v2098_v30  ;;  %v2217_v34 = vadd.f32 %v2216_v12, %v6789_v22  ;;  %v2795_v30 = vld [vmem:[#allocation4 + $0x80] sm:$0xff]  ;;  %3072 = vmatpush.msra.mxu0 %v3011_v45  ;;  %v3116_v22 = vld [vmem:[#allocation4 + $0x2f0] sm:$0xff] }
 0x22f   : > { %2104 = vst [vmem:[#allocation2 + $0x80] sm:$0xf] %v2099_v63  ;;  %2880 = vmatpush.msrb.mxu1 %v2795_v30  ;;  %v2901_v63 = vld [vmem:[#allocation4 + $0x138] sm:$0xff]  ;;  %3056 = vmatpush.msrb.mxu3 %v2988_v27  ;;  %v2898_v12 = vld [vmem:[#allocation4 + $0x120] sm:$0xff]  ;;  %v3205_v30 = vld [vmem:[#allocation4 + $0x370] sm:$0xff] }
 0x230   : > { %2953 = vmatpush.msrb.mxu2 %v2901_v63  ;;  %3073 = vmatpush.msra.mxu0 %v3010_v42  ;;  %v3221_v63 = vld [vmem:[#allocation4 + $0x3f0] sm:$0xff] }
 0x231   : > { %v6791_v13 = vpop.f32.mrf.mxu3  ;;  %3153 = vmatpush.msra.mxu1 %v3117_v29  ;;  %3057 = vmatpush.msrb.mxu3 %v2987_v1  ;;  %v3108_v29 = vld [vmem:[#allocation4 + $0x2b0] sm:$0xff] }
 0x232   : > { %2954 = vmatpush.msrb.mxu2 %v2900_v56  ;;  %3074 = vmatpush.msra.mxu0 %v3009_v6  ;;  %v3000_v56 = vld [vmem:[#allocation4 + $0x208] sm:$0xff] }
 0x233   : > { %3154 = vmatpush.msra.mxu1 %v3116_v22  ;;  %3058 = vmatpush.msrb.mxu3 %v2986_v40  ;;  %v3217_v40 = vld [vmem:[#allocation4 + $0x3d0] sm:$0xff] }
 0x234   : > { %2955 = vmatpush.msrb.mxu2 %v2899_v37  ;;  %3075 = vmatpush.msra.mxu0 %v3008_v7  ;;  %v2771_v37 = vld [vmem:[#allocation2] sm:$0xf] }
 0x235   : > { %3155 = vmatpush.msra.mxu1 %v3115_v0  ;;  %3059 = vmatpush.msrb.mxu3 %v2985_v62  ;;  %v2999_v0 = vld [vmem:[#allocation4 + $0x200] sm:$0xff] }
 0x236   : > { %2956 = vmatpush.msrb.mxu2 %v2898_v12  ;;  %3076 = vmatpush.msra.mxu0 %v3007_v38  ;;  %v3199_v62 = vld [vmem:[#allocation4 + $0x340] sm:$0xff] }
 0x237   : > { %3156 = vmatpush.msra.mxu1 %v3114_v18  ;;  %v3105_v18 = vld [vmem:[#allocation4 + $0x298] sm:$0xff] }
 0x238   : > { %v2219_v51 = vpop.f32.mrf.mxu0  ;;  %2957 = vmatpush.msrb.mxu2 %v2897_v8  ;;  %3077 = vmatpush.msra.mxu0 %v3006_v48  ;;  %v3201_v8 = vld [vmem:[#allocation4 + $0x350] sm:$0xff] }
 0x239   : > { %v2220_v47 = vadd.f32 %v2219_v51, %v6791_v13  ;;  %v2984_v51 = vld [vmem:[#allocation4 + $0x188] sm:$0xff]  ;;  %v3104_v48 = vld [vmem:[#allocation4 + $0x290] sm:$0xff] }
 0x23a   : > { %3078 = vmatpush.msra.mxu0 %v3005_v5  ;;  %3060 = vmatpush.msrb.mxu3 %v2984_v51  ;;  %v3215_v5 = vld [vmem:[#allocation4 + $0x3c0] sm:$0xff] }
 0x23c   : > { %v2396_v2 = vpop.f32.mrf.mxu2  ;;  %3079 = vmatpush.msra.mxu0 %v3004_v19  ;;  %3061 = vmatpush.msrb.mxu3 %v2983_v43  ;;  %v3213_v43 = vld [vmem:[#allocation4 + $0x3b0] sm:$0xff] }
 0x23d   : > { %v2419_v31 = vpop.f32.mrf.mxu3 }
 0x23e   : > { %v2296_v23 = vpop.f32.mrf.mxu1  ;;  %v2420_v61 = vadd.f32 %v2419_v31, %v2396_v2  ;;  %v2896_v2 = vld [vmem:[#allocation4 + $0x110] sm:$0xff]  ;;  %3080 = vmatpush.msra.mxu0 %v3003_v59  ;;  %v3212_v59 = vld [vmem:[#allocation4 + $0x3a8] sm:$0xff] }
 0x23f   : > { %v2304_v9 = vadd.f32 %v2296_v23, %v2217_v34  ;;  %v3113_v23 = vld [vmem:[#allocation4 + $0x2d8] sm:$0xff]  ;;  %2958 = vmatpush.msrb.mxu2 %v2896_v2 }
 0x240   : > { %3157 = vmatpush.msra.mxu1 %v3113_v23  ;;  %3081 = vmatpush.msra.mxu0 %v3002_v16  ;;  %v3103_v23 = vld [vmem:[#allocation4 + $0x288] sm:$0xff]  ;;  %v2774_v2 = vld [vmem:[#allocation2 + $0x78] sm:$0xf] }
 0x241   : > { %v2427_v44 = vadd.f32 %v2420_v61, %v2304_v9  ;;  %2959 = vmatpush.msrb.mxu2 %v2895_v54  ;;  %v3206_v9 = vld [vmem:[#allocation4 + $0x378] sm:$0xff]  ;;  %v2772_v61 = vld [vmem:[#allocation2 + $0x60] sm:$0xf] }
 0x242   : > { %3158 = vmatpush.msra.mxu1 %v3112_v60  ;;  %3082 = vmatpush.msra.mxu0 %v3001_v17  ;;  %v2819_v22 = vrot.slane %v2772_v61, 4  ;;  %v2820_v60 = vrot.slane %v2774_v2, 4  ;;  %v3102_v54 = vld [vmem:[#allocation4 + $0x280] sm:$0xff]  ;;  %v3324_v17 = vld [vmem:[#allocation4 + $0x470] sm:$0xff] }
 0x243   : > { %2960 = vmatpush.msrb.mxu2 %v2894_v28  ;;  %v2890_v28 = vld [vmem:[#allocation2] sm:$0x1e]  ;;  %v2981_v2 = vld [vmem:[#allocation2 + $0x30] sm:$0xf] }
 0x244   : > { %v2503_v33 = vpop.f32.mrf.mxu0  ;;  %3159 = vmatpush.msra.mxu1 %v3111_v10  ;;  %3083 = vmatpush.msra.mxu0 %v3000_v56  ;;  %v2823_v12 = vsel %vm366_vm0, %v2771_v37, %v2819_v22  ;;  %v3198_v10 = vld [vmem:[#allocation4 + $0x338] sm:$0xff]  ;;  %v3211_v61 = vld [vmem:[#allocation4 + $0x3a0] sm:$0xff]  ;;  %v3193_v56 = vld [vmem:[#allocation4 + $0x310] sm:$0xff] }
 0x245   : > { %v2511_v50 = vadd.f32 %v2503_v33, %v2427_v44  ;;  %3254 = vmatpush.msra.mxu2 %v3206_v9  ;;  %v3204_v44 = vld [vmem:[#allocation4 + $0x368] sm:$0xff]  ;;  %v3195_v9 = vld [vmem:[#allocation4 + $0x320] sm:$0xff] }
 0x246   : > { %v2299_v25 = vpop.f32.mrf.mxu1  ;;  %3160 = vmatpush.msra.mxu1 %v3110_v53  ;;  %v3220_v33 = vld [vmem:[#allocation4 + $0x3e8] sm:$0xff]  ;;  %3084 = vmatpush.msra.mxu0 %v2999_v0  ;;  %v2977_v0 = vld [vmem:[#allocation2 + $0x18] sm:$0xf] }
 0x247   : > { %v2422_v11 = vpop.f32.mrf.mxu3  ;;  %v2305_v13 = vadd.f32 %v2299_v25, %v2220_v47  ;;  %3255 = vmatpush.msra.mxu2 %v3205_v30  ;;  %v3203_v47 = vld [vmem:[#allocation4 + $0x360] sm:$0xff]  ;;  %v3194_v30 = vld [vmem:[#allocation4 + $0x318] sm:$0xff]  ;;  %v3208_v37 = vld [vmem:[#allocation4 + $0x388] sm:$0xff] }
 0x248   : > { %v2399_v39 = vpop.f32.mrf.mxu2  ;;  %3161 = vmatpush.msra.mxu1 %v3109_v24 }
 0x249   : > { %v2423_v15 = vadd.f32 %v2422_v11, %v2399_v39  ;;  %v3222_v39 = vld [vmem:[#allocation4 + $0x3f8] sm:$0xff]  ;;  %v3219_v11 = vld [vmem:[#allocation4 + $0x3e0] sm:$0xff]  ;;  %3256 = vmatpush.msra.mxu2 %v3204_v44  ;;  %v2975_v44 = vld [vmem:[#allocation2 + $0x70] sm:$0xf] }
 0x24a   : > { %3277 = vmatpush.msra.mxu3 %v3222_v39  ;;  %3162 = vmatpush.msra.mxu1 %v3108_v29 }
 0x24b   : > { %v2428_v58 = vadd.f32 %v2423_v15, %v2305_v13  ;;  %3257 = vmatpush.msra.mxu2 %v3203_v47  ;;  %v3202_v15 = vld [vmem:[#allocation4 + $0x358] sm:$0xff]  ;;  %v3192_v47 = vld [vmem:[#allocation4 + $0x308] sm:$0xff] }
 0x24c   : > { %v2506_v52 = vpop.f32.mrf.mxu0  ;;  %3278 = vmatpush.msra.mxu3 %v3221_v63  ;;  %3163 = vmatpush.msra.mxu1 %v3107_v41  ;;  %v3323_v41 = vld [vmem:[#allocation4 + $0x468] sm:$0xff] }
 0x24d   : > { %v2512_v34 = vadd.f32 %v2506_v52, %v2428_v58  ;;  %3258 = vmatpush.msra.mxu2 %v3202_v15  ;;  %v2776_v58 = vld [vmem:[#allocation2 + $0x38] sm:$0xf] }
 0x24e   : > { %3279 = vmatpush.msra.mxu3 %v3220_v33  ;;  %v3210_v33 = vld [vmem:[#allocation4 + $0x398] sm:$0xff] }
 0x24f   : > { %3259 = vmatpush.msra.mxu2 %v3201_v8  ;;  %v3207_v8 = vld [vmem:[#allocation4 + $0x380] sm:$0xff] }
 0x250   : > { %3280 = vmatpush.msra.mxu3 %v3219_v11 }
 0x25a   : > { %v2603_v26 = vpop.f32.mrf.mxu1 }
 0x25c   : > { %v2626_v32 = vpop.f32.mrf.mxu2 }
 0x25d   : > { %v2627_v21 = vadd.f32 %v2626_v32, %v2603_v26 }
 0x25f   : > { %v2634_v14 = vadd.f32 %v2627_v21, %v2511_v50  ;;  %v2710_v3 = vpop.f32.mrf.mxu3  ;;  %v3106_v50 = vld [vmem:[#allocation4 + $0x2a0] sm:$0xff]  ;;  %v3218_v21 = vld [vmem:[#allocation4 + $0x3d8] sm:$0xff] }
 0x260   : > { %3164 = vmatpush.msra.mxu1 %v3106_v50  ;;  %3281 = vmatpush.msra.mxu3 %v3218_v21  ;;  %v2974_v50 = vld [vmem:[#allocation2 + $0x90] sm:$0xf]  ;;  %v3024_v21 = vrot.slane %v2977_v0, 4 }
 0x261   : > { %v2718_v4 = vadd.f32 %v2710_v3, %v2634_v14  ;;  %v3200_v14 = vld [vmem:[#allocation4 + $0x348] sm:$0xff] }
 0x262   : > { %v2606_v31 = vpop.f32.mrf.mxu1  ;;  %3165 = vmatpush.msra.mxu1 %v3105_v18  ;;  %3282 = vmatpush.msra.mxu3 %v3217_v40  ;;  %v3320_v18 = vld [vmem:[#allocation4 + $0x450] sm:$0xff] }
 0x263   : > { %v2728_v55 = vadd.f32 %v6798_v35, %v2718_v4  ;;  %3260 = vmatpush.msra.mxu2 %v3200_v14 }
 0x264   : > { %v2629_v57 = vpop.f32.mrf.mxu2  ;;  %3166 = vmatpush.msra.mxu1 %v3104_v48 }
 0x265   : > { %v2630_v49 = vadd.f32 %v2629_v57, %v2606_v31  ;;  %v2732_v36 = vrot.slane %v2728_v55, 4  ;;  %4118 = vst [vmem:[%s5704_s20 + $0xc] sm:$0xf] %v2728_v55  ;;  %v2740_v46 = vmax.f32 %v2728_v55, 0.0  ;;  %3261 = vmatpush.msra.mxu2 %v3199_v62  ;;  %v2821_v55 = vrot.slane %v2776_v58, 4  ;;  %v3214_v57 = vld [vmem:[#allocation4 + $0x3b8] sm:$0xff] }
 0x266   : > { %3167 = vmatpush.msra.mxu1 %v3103_v23  ;;  %v2979_v23 = vld [vmem:[#allocation2 + $0x10] sm:$0xf]  ;;  %v3318_v62 = vld [vmem:[#allocation4 + $0x440] sm:$0xff] }
 0x267   : > { %v2635_v20 = vadd.f32 %v2630_v49, %v2512_v34  ;;  %4119 = vst [vmem:[%s5704_s20 + $0x1c] sm:$0xf] %v2732_v36  ;;  %v2741_v25 = vmax.f32 %v2732_v36, 0.0  ;;  %v2713_v45 = vpop.f32.mrf.mxu3  ;;  %3262 = vmatpush.msra.mxu2 %v3198_v10  ;;  %v2778_v36 = vld [vmem:[#allocation2 + $0x88] sm:$0xf]  ;;  %v3025_v58 = vrot.slane %v2979_v23, 4 }
 0x268   : > { %2748 = vst [vmem:[#allocation1] ss:$2 sm:$0xff] %v2740_v46  ;;  %3168 = vmatpush.msra.mxu1 %v3102_v54  ;;  %v3197_v46 = vld [vmem:[#allocation4 + $0x330] sm:$0xff]  ;;  %v2822_v53 = vrot.slane %v2778_v36, 4 }
 0x269   : > { %2751 = vst [vmem:[#allocation1 + $0x10] ss:$2 sm:$0xff] %v2741_v25  ;;  %v2719_v42 = vadd.f32 %v2713_v45, %v2635_v20  ;;  %3263 = vmatpush.msra.mxu2 %v3197_v46  ;;  %v3196_v20 = vld [vmem:[#allocation4 + $0x328] sm:$0xff]  ;;  %v4122_v25 = vrot.slane %v2890_v28, 9  ;;  %v3325_v45 = vld [vmem:[#allocation4 + $0x478] sm:$0xff]  ;;  %v3316_v10 = vld [vmem:[#allocation4 + $0x430] sm:$0xff] }
 0x26a   : > { %v3099_v54 = vld [vmem:[#allocation2 + $0x50] sm:$0x1e]  ;;  %v3100_v46 = vld [vmem:[#allocation2 + $0x28] sm:$0x1e]  ;;  %v3314_v28 = vld [vmem:[#allocation4 + $0x420] sm:$0xff] }
 0x26b   : > { %v2729_v6 = vadd.f32 %v6798_v35, %v2719_v42  ;;  %v3216_v35 = vld [vmem:[#allocation4 + $0x3c8] sm:$0xff]  ;;  %3264 = vmatpush.msra.mxu2 %v3196_v20  ;;  %v3313_v20 = vld [vmem:[#allocation4 + $0x418] sm:$0xff] }
 0x26c   : > { %3283 = vmatpush.msra.mxu3 %v3216_v35  ;;  %v3319_v35 = vld [vmem:[#allocation4 + $0x448] sm:$0xff] }
 0x26d   : > { %v2733_v27 = vrot.slane %v2729_v6, 4  ;;  %4120 = vst [vmem:[%s5704_s20 + $0x2c] sm:$0xf] %v2729_v6  ;;  %v2742_v7 = vmax.f32 %v2729_v6, 0.0  ;;  %3265 = vmatpush.msra.mxu2 %v3195_v9  ;;  %v3209_v6 = vld [vmem:[#allocation4 + $0x390] sm:$0xff] }
 0x26e   : > { %3284 = vmatpush.msra.mxu3 %v3215_v5  ;;  %v2978_v5 = vld [vmem:[#allocation2 + $0x28] sm:$0xf] }
 0x26f   : > { %4121 = vst [vmem:[%s5704_s20 + $0x3c] sm:$0xf] %v2733_v27  ;;  %v2743_v26 = vmax.f32 %v2733_v27, 0.0  ;;  %v2749_v32 = vld.sshfl [vmem:[#allocation1] sm:$0xff pattern:$0x75316420]  ;;  %3266 = vmatpush.msra.mxu2 %v3194_v30 }
 0x270   : > { %2754 = vst [vmem:[#allocation1 + $0x20] ss:$2 sm:$0xff] %v2742_v7  ;;  %v2759_v1 = vrot.slane %v2749_v32, 7  ;;  %v2752_v38 = vld.sshfl [vmem:[#allocation1 + $0x10] sm:$0xff pattern:$0x75316420]  ;;  %3285 = vmatpush.msra.mxu3 %v3214_v57 }
 0x271   : > { %2757 = vst [vmem:[#allocation1 + $0x30] ss:$2 sm:$0xff] %v2743_v26  ;;  %v2760_v13 = vrot.slane %v2752_v38, 7  ;;  %3267 = vmatpush.msra.mxu2 %v3193_v56  ;;  %v3322_v27 = vld [vmem:[#allocation4 + $0x460] sm:$0xff]  ;;  %v3023_v26 = vrot.slane %v2975_v44, 4  ;;  %v3321_v38 = vld [vmem:[#allocation4 + $0x458] sm:$0xff] }
 0x272   : > { %2767 = vst [vmem:[#allocation2 + $0x20] sm:$0x1e] %v2759_v1  ;;  %3286 = vmatpush.msra.mxu3 %v3213_v43  ;;  %v3191_v7 = vld [vmem:[#allocation4 + $0x300] sm:$0xff]  ;;  %v2976_v32 = vld [vmem:[#allocation2 + $0x50] sm:$0xf] }
 0x273   : > { %2827 = vst [vmem:[#allocation1] ss:$2 sm:$0xff] %v2823_v12  ;;  %3268 = vmatpush.msra.mxu2 %v3192_v47  ;;  %v3027_v40 = vsel %vm366_vm0, %v2974_v50, %v3023_v26  ;;  %v3028_v14 = vsel %vm366_vm0, %v2976_v32, %v3024_v21  ;;  %v3101_v43 = vld [vmem:[#allocation2 + $0x8] sm:$0x1e]  ;;  %v3310_v44 = vld [vmem:[#allocation4 + $0x400] sm:$0xff] }
 0x274   : > { %2768 = vst [vmem:[#allocation2 + $0x58] sm:$0x1e] %v2760_v13  ;;  %3287 = vmatpush.msra.mxu3 %v3212_v59  ;;  %v4134_v59 = vrot.slane %v3100_v46, 9  ;;  %v4136_v9 = vrot.slane %v3101_v43, 9 }
 0x275   : > { %3269 = vmatpush.msra.mxu2 %v3191_v7 }
 0x276   : > { %3288 = vmatpush.msra.mxu3 %v3211_v61  ;;  %v3185_v61 = vld [vmem:[#allocation2 + $0x38] sm:$0xf] }
 0x277   : > { %v2755_v3 = vld.sshfl [vmem:[#allocation1 + $0x20] sm:$0xff pattern:$0x75316420] }
 0x278   : > { %v2758_v52 = vld.sshfl [vmem:[#allocation1 + $0x30] sm:$0xff pattern:$0x75316420]  ;;  %v2761_v4 = vrot.slane %v2755_v3, 7  ;;  %3289 = vmatpush.msra.mxu3 %v3210_v33  ;;  %v3098_v3 = vld [vmem:[#allocation2 + $0x90] sm:$0x1e] }
 0x279   : > { %v2762_v51 = vrot.slane %v2758_v52, 7  ;;  %v2773_v19 = vld [vmem:[#allocation2 + $0x20] sm:$0xf]  ;;  %v3317_v52 = vld [vmem:[#allocation4 + $0x438] sm:$0xff]  ;;  %v3187_v33 = vld [vmem:[#allocation2 + $0x88] sm:$0xf] }
 0x27a   : > { %2769 = vst [vmem:[#allocation2 + $0x48] sm:$0x1e] %v2761_v4  ;;  %v2824_v31 = vsel %vm366_vm0, %v2773_v19, %v2820_v60  ;;  %v2891_v16 = vld [vmem:[#allocation2 + $0x20] sm:$0x1e]  ;;  %3290 = vmatpush.msra.mxu3 %v3209_v6  ;;  %v2980_v60 = vld [vmem:[#allocation2 + $0x8] sm:$0xf] }
 0x27b   : > { %2770 = vst [vmem:[#allocation2 + $0x68] sm:$0x1e] %v2762_v51  ;;  %v2775_v34 = vld [vmem:[#allocation2 + $0x58] sm:$0xf]  ;;  %v4124_v42 = vrot.slane %v2891_v16, 9  ;;  %v3026_v4 = vrot.slane %v2981_v2, 4  ;;  %v3029_v51 = vsel %vm366_vm0, %v2978_v5, %v3025_v58 }
 0x27c   : > { %2829 = vst [vmem:[#allocation1 + $0x1] ss:$2 sm:$0xff] %v2824_v31  ;;  %v2825_v49 = vsel %vm366_vm0, %v2775_v34, %v2821_v55  ;;  %v2892_v22 = vld [vmem:[#allocation2 + $0x58] sm:$0x1e]  ;;  %3291 = vmatpush.msra.mxu3 %v3208_v37  ;;  %v4130_v55 = vrot.slane %v3098_v3, 9  ;;  %v3315_v34 = vld [vmem:[#allocation4 + $0x428] sm:$0xff] }
 0x27d   : > { %2831 = vst [vmem:[#allocation1 + $0x10] ss:$2 sm:$0xff] %v2825_v49  ;;  %v4126_v1 = vrot.slane %v2892_v22, 9  ;;  %v3030_v31 = vsel %vm366_vm0, %v2980_v60, %v3026_v4  ;;  %v4132_v49 = vrot.slane %v3099_v54, 9  ;;  %v3184_v30 = vld [vmem:[#allocation2 + $0x58] sm:$0xf] }
 0x27e   : > { %3292 = vmatpush.msra.mxu3 %v3207_v8  ;;  %v3233_v47 = vrot.slane %v3187_v33, 4  ;;  %v3306_v37 = vld [vmem:[#allocation2 + $0x20] sm:$0x1e] }
 0x27f   : > { %v4138_v26 = vrot.slane %v3306_v37, 9 }
 0x281   : > { %v2777_v39 = vld [vmem:[#allocation2 + $0x48] sm:$0xf] }
 0x282   : > { %v2826_v24 = vsel %vm366_vm0, %v2777_v39, %v2822_v53  ;;  %v2893_v11 = vld [vmem:[#allocation2 + $0x48] sm:$0x1e]  ;;  %v3183_v53 = vld [vmem:[#allocation2 + $0x78] sm:$0xf]  ;;  %v3312_v39 = vld [vmem:[#allocation4 + $0x410] sm:$0xff] }
 0x283   : > { %v2834_v63 = vld.sshfl [vmem:[#allocation1] sm:$0xff pattern:$0x75316420]  ;;  %v2835_v29 = vld.sshfl [vmem:[#allocation1 + $0x8] sm:$0xff pattern:$0x75316420] }
 0x284   : > { %2858 = vmatmul.f32.vlgmr.msrb.gmra.mxu0 %v2834_v63  ;;  %2833 = vst [vmem:[#allocation1 + $0x11] ss:$2 sm:$0xff] %v2826_v24  ;;  %2881 = vmatmul.f32.vlgmr.msrb.gmra.mxu1 %v2835_v29  ;;  %v4128_v12 = vrot.slane %v2893_v11, 9  ;;  %v3311_v63 = vld [vmem:[#allocation4 + $0x408] sm:$0xff] }
 0x285   : > { %2934 = vst [vmem:[#allocation1] ss:$2 sm:$0xff] %v4122_v25  ;;  %3361 = vmatpush.msrb.mxu0 %v3325_v45  ;;  %4156 = vmatpush.msrb.mxu1 %v3325_v45  ;;  %v3182_v25 = vld [vmem:[#allocation2 + $0x20] sm:$0xf]  ;;  %v3231_v45 = vrot.slane %v3183_v53, 4 }
 0x286   : > { %2936 = vst [vmem:[#allocation1 + $0x1] ss:$2 sm:$0xff] %v4124_v42  ;;  %v3186_v6 = vld [vmem:[#allocation2 + $0x48] sm:$0xf] }
 0x287   : > { %3362 = vmatpush.msrb.mxu0 %v3324_v17  ;;  %4157 = vmatpush.msrb.mxu1 %v3324_v17  ;;  %v3232_v17 = vrot.slane %v3185_v61, 4  ;;  %v3235_v42 = vsel %vm366_vm0, %v3182_v25, %v3231_v45  ;;  %v3188_v11 = vld [vmem:[#allocation2 + $0x68] sm:$0xf]  ;;  %v3237_v7 = vsel %vm366_vm0, %v3186_v6, %v3233_v47 }
 0x289   : > { %3363 = vmatpush.msrb.mxu0 %v3323_v41  ;;  %4158 = vmatpush.msrb.mxu1 %v3323_v41  ;;  %v3236_v56 = vsel %vm366_vm0, %v3184_v30, %v3232_v17  ;;  %v3189_v41 = vld [vmem:[#allocation2 + $0x80] sm:$0xf] }
 0x28a   : > { %v3234_v22 = vrot.slane %v3189_v41, 4 }
 0x28b   : > { %v2836_v13 = vld.sshfl [vmem:[#allocation1 + $0x10] sm:$0xff pattern:$0x75316420]  ;;  %v2837_v15 = vld.sshfl [vmem:[#allocation1 + $0x18] sm:$0xff pattern:$0x75316420]  ;;  %3364 = vmatpush.msrb.mxu0 %v3322_v27  ;;  %4159 = vmatpush.msrb.mxu1 %v3322_v27 }
 0x28c   : > { %2861 = vmatmul.f32.gmra.mxu0 %v2836_v13  ;;  %2938 = vst [vmem:[#allocation1 + $0x10] ss:$2 sm:$0xff] %v4126_v1  ;;  %2884 = vmatmul.f32.gmra.mxu1 %v2837_v15  ;;  %v3307_v27 = vld [vmem:[#allocation2 + $0x58] sm:$0x1e]  ;;  %v3238_v50 = vsel %vm366_vm0, %v3188_v11, %v3234_v22  ;;  %v3309_v13 = vld [vmem:[#allocation2 + $0x68] sm:$0x1e] }
 0x28d   : > { %2940 = vst [vmem:[#allocation1 + $0x11] ss:$2 sm:$0xff] %v4128_v12  ;;  %v2941_v48 = vld.sshfl [vmem:[#allocation1] sm:$0xff pattern:$0x75316420]  ;;  %3365 = vmatpush.msrb.mxu0 %v3321_v38  ;;  %4160 = vmatpush.msrb.mxu1 %v3321_v38  ;;  %v4140_v32 = vrot.slane %v3307_v27, 9 }
 0x28e   : > { %2961 = vmatmul.f32.vlgmr.msrb.gmra.mxu2 %v2941_v48  ;;  %3031 = vst [vmem:[#allocation1] ss:$2 sm:$0xff] %v3027_v40  ;;  %v3308_v38 = vld [vmem:[#allocation2 + $0x48] sm:$0x1e]  ;;  %v4144_v21 = vrot.slane %v3309_v13, 9 }
 0x28f   : > { %3033 = vst [vmem:[#allocation1 + $0x1] ss:$2 sm:$0xff] %v3028_v14  ;;  %3366 = vmatpush.msrb.mxu0 %v3320_v18  ;;  %4161 = vmatpush.msrb.mxu1 %v3320_v18  ;;  %v4142_v15 = vrot.slane %v3308_v38, 9 }
 0x291   : > { %3367 = vmatpush.msrb.mxu0 %v3319_v35  ;;  %4162 = vmatpush.msrb.mxu1 %v3319_v35 }
 0x293   : > { %3368 = vmatpush.msrb.mxu0 %v3318_v62  ;;  %4163 = vmatpush.msrb.mxu1 %v3318_v62 }
 0x294   : > { %v2942_v19 = vld.sshfl [vmem:[#allocation1 + $0x10] sm:$0xff pattern:$0x75316420] }
 0x295   : > { %3035 = vst [vmem:[#allocation1 + $0x10] ss:$2 sm:$0xff] %v3029_v51  ;;  %3369 = vmatpush.msrb.mxu0 %v3317_v52  ;;  %4164 = vmatpush.msrb.mxu1 %v3317_v52 }
 0x296   : > { %2964 = vmatmul.f32.gmra.mxu2 %v2942_v19  ;;  %3037 = vst [vmem:[#allocation1 + $0x11] ss:$2 sm:$0xff] %v3030_v31  ;;  %v3038_v57 = vld.sshfl [vmem:[#allocation1] sm:$0xff pattern:$0x75316420] }
 0x297   : > { %3062 = vmatmul.f32.vlgmr.msrb.gmra.mxu3 %v3038_v57  ;;  %v3039_v36 = vld.sshfl [vmem:[#allocation1 + $0x8] sm:$0xff pattern:$0x75316420]  ;;  %3370 = vmatpush.msrb.mxu0 %v3316_v10 }
 0x298   : > { %3085 = vmatmul.f32.vlgmr.msra.gmra.mxu0 %v3039_v36  ;;  %3142 = vst [vmem:[#allocation1] ss:$2 sm:$0xff] %v4130_v55  ;;  %4165 = vmatpush.msrb.mxu1 %v3316_v10 }
 0x299   : > { %3144 = vst [vmem:[#allocation1 + $0x1] ss:$2 sm:$0xff] %v4132_v49  ;;  %3371 = vmatpush.msrb.mxu0 %v3315_v34 }
 0x29a   : > { %4166 = vmatpush.msrb.mxu1 %v3315_v34 }
 0x29b   : > { %3372 = vmatpush.msrb.mxu0 %v3314_v28 }
 0x29c   : > { %4167 = vmatpush.msrb.mxu1 %v3314_v28 }
 0x29d   : > { %v3040_v16 = vld.sshfl [vmem:[#allocation1 + $0x10] sm:$0xff pattern:$0x75316420]  ;;  %v3041_v24 = vld.sshfl [vmem:[#allocation1 + $0x18] sm:$0xff pattern:$0x75316420]  ;;  %3373 = vmatpush.msrb.mxu0 %v3313_v20 }
 0x29e   : > { %3146 = vst [vmem:[#allocation1 + $0x10] ss:$2 sm:$0xff] %v4134_v59  ;;  %4168 = vmatpush.msrb.mxu1 %v3313_v20 }
 0x29f   : > { %3065 = vmatmul.f32.gmra.mxu3 %v3040_v16  ;;  %3148 = vst [vmem:[#allocation1 + $0x11] ss:$2 sm:$0xff] %v4136_v9  ;;  %3374 = vmatpush.msrb.mxu0 %v3312_v39 }
 0x2a0   : > { %3088 = vmatmul.f32.gmra.mxu0 %v3041_v24  ;;  %v3149_v29 = vld.sshfl [vmem:[#allocation1] sm:$0xff pattern:$0x75316420]  ;;  %4169 = vmatpush.msrb.mxu1 %v3312_v39 }
 0x2a1   : > { %3169 = vmatmul.f32.vlgmr.msra.gmra.mxu1 %v3149_v29  ;;  %3239 = vst [vmem:[#allocation1] ss:$2 sm:$0xff] %v3235_v42  ;;  %3375 = vmatpush.msrb.mxu0 %v3311_v63 }
 0x2a2   : > { %3241 = vst [vmem:[#allocation1 + $0x1] ss:$2 sm:$0xff] %v3236_v56  ;;  %4170 = vmatpush.msrb.mxu1 %v3311_v63 }
 0x2a3   : > { %3376 = vmatpush.msrb.mxu0 %v3310_v44 }
 0x2a4   : > { %4171 = vmatpush.msrb.mxu1 %v3310_v44 }
 0x2a6   : > { %v3150_v0 = vld.sshfl [vmem:[#allocation1 + $0x10] sm:$0xff pattern:$0x75316420] }
 0x2a7   : > { %3243 = vst [vmem:[#allocation1 + $0x10] ss:$2 sm:$0xff] %v3237_v7 }
 0x2a8   : > { %3245 = vst [vmem:[#allocation1 + $0x11] ss:$2 sm:$0xff] %v3238_v50 }
 0x2a9   : > { %3172 = vmatmul.f32.gmra.mxu1 %v3150_v0  ;;  %v3246_v12 = vld.sshfl [vmem:[#allocation1] sm:$0xff pattern:$0x75316420]  ;;  %v3247_v1 = vld.sshfl [vmem:[#allocation1 + $0x8] sm:$0xff pattern:$0x75316420] }
 0x2aa   : > { %3270 = vmatmul.f32.vlgmr.msra.gmra.mxu2 %v3246_v12  ;;  %3293 = vmatmul.f32.vlgmr.msra.gmra.mxu3 %v3247_v1  ;;  %3350 = vst [vmem:[#allocation1] ss:$2 sm:$0xff] %v4138_v26 }
 0x2ab   : > { %3352 = vst [vmem:[#allocation1 + $0x1] ss:$2 sm:$0xff] %v4140_v32 }
 0x2af   : > { %v3248_v18 = vld.sshfl [vmem:[#allocation1 + $0x10] sm:$0xff pattern:$0x75316420]  ;;  %v3249_v8 = vld.sshfl [vmem:[#allocation1 + $0x18] sm:$0xff pattern:$0x75316420] }
 0x2b0   : > { %3354 = vst [vmem:[#allocation1 + $0x10] ss:$2 sm:$0xff] %v4142_v15 }
 0x2b1   : > { %3356 = vst [vmem:[#allocation1 + $0x11] ss:$2 sm:$0xff] %v4144_v21 }
 0x2b2   : > { %3273 = vmatmul.f32.gmra.mxu2 %v3248_v18  ;;  %3296 = vmatmul.f32.gmra.mxu3 %v3249_v8  ;;  %v3357_v40 = vld.sshfl [vmem:[#allocation1] sm:$0xff pattern:$0x75316420] }
 0x2b3   : > { %3377 = vmatmul.f32.vlgmr.msrb.gmra.mxu0 %v3357_v40 }
 0x2b8   : > { %v3358_v48 = vld.sshfl [vmem:[#allocation1 + $0x10] sm:$0xff pattern:$0x75316420] }
 0x2b9   : > { %3380 = vmatmul.f32.vlgmr.msrb.gmra.mxu1 %v3358_v48 }
 0x2ba   : > { %4297 = shalt.err (!%p4294_p8)
}
 0x2bb   : > { %s4374_s20 = smov 128   ;;  %s4375_s11 = smov 8   ;;  %v4239_v43 = vld [vmem:[%s6874_s4] ss:$0 sm:$0xff] }
 0x2bc   : > { %4177 = dma.vmem_to_hbm [thread:$0]  (%p4451_p5), %s3427_s28, 1024, %s3429_s17, %s3409_s15, %s4374_s20, %s4374_s20, %s4375_s11  }
 0x2bd   : > { %s3560_s0 = sshll.u32 %s5658_s16, 4  ;;  %s4155_s14 = sshll.u32 %s4434_s25, 4 }
 0x2be   : > { %s272_s28 = scalar_lea.vmem [#allocation8], %s3560_s0  ;;  %s3442_s18 = scalar_lea.hbm %s6876_s6, %s4155_s14 }
 0x2bf   : > { %s3443_s19 = sshll.u32 %s272_s28, 4  ;;  %s3445_s10 = sshll.u32 %s3442_s18, 4  ;;  %s3444_s19 = int_to_ptr.vmem [resolvable:$true] %s3443_s19  ;;  %s3446_s10 = int_to_ptr.hbm [resolvable:$true] %s3445_s10 }
 0x2c0   : > { %s3414_s25 = scalar_lea.sflag [#allocation9], %s5658_s16  ;;  %s4312_s29 = sshra.s32 %s3446_s10, 4  ;;  %s4313_s29 = int_to_ptr.hbm [resolvable:$true] %s4312_s29 }
 0x2c1   : > { %s4314_s26 = scalar_lea.hbm %s4313_s29, 16  ;;  %s4318_s11 = scalar_lea.hbm %s6876_s6, 32 }
 0x2c2   : > { %p4315_p9 = scmp.ne.s32.totalorder %s4313_s29, %s4314_s26  ;;  %p4319_p12 = scmp.lt.s32.totalorder %s4313_s29, %s6876_s6 }
 0x2c3   : > { %p4320_p13 = scmp.lt.s32.totalorder %s4318_s11, %s4314_s26 }
 0x2c4   : > { %p4316_p10 = pnand %p4315_p9, %p4451_p5 }
 0x2c5   : > { %p4321_p0 = por %p4320_p13, %p4319_p12 }
 0x2c6   : > { %p4317_p11 = pneg %p4316_p10 }
 0x2c8   : > { %p4322_p1 = pnand %p4321_p0, %p4317_p11 }
 0x301   : > { %v2859_v14 = vpop.f32.mrf.mxu0  ;;  %v2882_v35 = vpop.f32.mrf.mxu1 }
 0x302   : > { %v2883_v52 = vadd.f32 %v2882_v35, %v2859_v14 }
 0x309   : > { %v2862_v23 = vpop.f32.mrf.mxu0  ;;  %v2885_v5 = vpop.f32.mrf.mxu1 }
 0x30a   : > { %v2886_v57 = vadd.f32 %v2885_v5, %v2862_v23 }
 0x311   : > { %v2962_v62 = vpop.f32.mrf.mxu2 }
 0x312   : > { %v2970_v51 = vadd.f32 %v2962_v62, %v2883_v52 }
 0x315   : > { %v3086_v58 = vpop.f32.mrf.mxu0 }
 0x319   : > { %v2965_v60 = vpop.f32.mrf.mxu2 }
 0x31a   : > { %v3063_v2 = vpop.f32.mrf.mxu3  ;;  %v2971_v46 = vadd.f32 %v2965_v60, %v2886_v57 }
 0x31b   : > { %v3087_v4 = vadd.f32 %v3086_v58, %v3063_v2 }
 0x31d   : > { %v3089_v19 = vpop.f32.mrf.mxu0  ;;  %v3094_v10 = vadd.f32 %v3087_v4, %v2970_v51 }
 0x31e   : > { %v3170_v54 = vpop.f32.mrf.mxu1 }
 0x31f   : > { %v3178_v34 = vadd.f32 %v3170_v54, %v3094_v10 }
 0x322   : > { %v3066_v3 = vpop.f32.mrf.mxu3 }
 0x323   : > { %v3090_v49 = vadd.f32 %v3089_v19, %v3066_v3 }
 0x325   : > { %v3095_v53 = vadd.f32 %v3090_v49, %v2971_v46 }
 0x326   : > { %v3173_v20 = vpop.f32.mrf.mxu1 }
 0x327   : > { %v3179_v16 = vadd.f32 %v3173_v20, %v3095_v53 }
 0x32d   : > { %v3271_v55 = vpop.f32.mrf.mxu2  ;;  %v3294_v31 = vpop.f32.mrf.mxu3 }
 0x32e   : > { %v3295_v36 = vadd.f32 %v3294_v31, %v3271_v55 }
 0x330   : > { %v3302_v28 = vadd.f32 %v3295_v36, %v3178_v34  ;;  %v3378_v59 = vpop.f32.mrf.mxu0 }
 0x332   : > { %v3386_v9 = vadd.f32 %v3378_v59, %v3302_v28 }
 0x334   : > { %v3396_v61 = vadd.f32 %v4239_v43, %v3386_v9 }
 0x335   : > { %v3274_v25 = vpop.f32.mrf.mxu2  ;;  %v3297_v39 = vpop.f32.mrf.mxu3 }
 0x336   : > { %v3400_v24 = vrot.slane %v3396_v61, 4  ;;  %3404 = vst [vmem:[%s272_s28] sm:$0xf] %v3396_v61  ;;  %v3298_v45 = vadd.f32 %v3297_v39, %v3274_v25  ;;  %v3381_v63 = vpop.f32.mrf.mxu1 }
 0x338   : > { %3405 = vst [vmem:[%s272_s28 + $0x4] sm:$0xf] %v3400_v24  ;;  %v3303_v30 = vadd.f32 %v3298_v45, %v3179_v16 }
 0x33a   : > { %v3387_v17 = vadd.f32 %v3381_v63, %v3303_v30 }
 0x33c   : > { %v3397_v42 = vadd.f32 %v4239_v43, %v3387_v17 }
 0x33e   : > { %v3401_v29 = vrot.slane %v3397_v42, 4  ;;  %3406 = vst [vmem:[%s272_s28 + $0x8] sm:$0xf] %v3397_v42 }
 0x340   : > { %3407 = vst [vmem:[%s272_s28 + $0xc] sm:$0xf] %v3401_v29 }
 0x341   : > { %4325 = shalt.err (!%p4322_p1)
}
 0x342   : > { %s4376_s16 = smov 64   ;;  %s4377_s13 = smov 4  }
 0x343   : > { %4178 = dma.vmem_to_hbm [thread:$0]  (%p4451_p5), %s3444_s19, 256, %s3446_s10, %s3414_s25, %s4376_s16, %s4376_s16, %s4377_s13  }
 0x344 PF: > { %p4194_p2 = scmp.ge.s32.totalorder %s4368_s24, 2  ;;  %s3460_s14 = sand.u32 1, %s4356_s21  }
 0x345   : > { %s3461_s28 = scalar_lea.sflag [#allocation6], %s3460_s14 }
 0x346   : > { %p4186_p3 = pnand %p4194_p2, %p4455_p6 }
 0x348   : > { %p4187_p4 = pneg %p4186_p3 }
 0x34a   : > { %4347 = dma.done.wait (%p4187_p4), %s3461_s28, 1024  }
 0x34b   : > { %4349 = vsyncadd (%p4187_p4), %s3461_s28, 4294966272  ;;  %s3471_s17 = scalar_lea.sflag [#allocation9], %s3460_s14 }
 0x34c   : > { %4351 = dma.done.wait (%p4187_p4), %s3471_s17, 256  }
 0x34d   : > { %4353 = vsyncadd (%p4187_p4), %s3471_s17, 4294967040  ;;  %p21_p5 = scmp.ge.s32.totalorder %s4438_s27, 4   ;;  %s7268_s21 = smov %s4360_s22 }
 0x34e   : > { %s7269_s22 = smov %s4364_s23  ;;  %s7270_s23 = smov %s4449_s30 }
 0x34f   : > { %s7271_s24 = smov %s4438_s27  ;;  %23 = sbr.rel (!%p21_p5) target bundleno = 8 (0x8), region = 210 }
 0x354   :  { %3477 = vsyncpa [#allocation5], 1 }
 0x355   :  { %3479 = vsyncpa [#allocation5 + $0x1], 1 }
 0x356   :  { %3480 = vsyncpa [#allocation6], 1 }
 0x357   :  { %3482 = vsyncpa [#allocation6 + $0x1], 1 }
 0x358   :  { %3483 = vsyncpa [#allocation9], 1 }
 0x359   :  { %3485 = vsyncpa [#allocation9 + $0x1], 1 }

</bundles_post_ra>
